<compile_context>
chip_gen: v7x
topology: tpu7x:2x2x1
jax: 0.10.0
libtpu: 0.0.40
codegen_flags: <defaults>
</compile_context>

<pallas_src>
import functools
import numpy as np
import jax
import jax.numpy as jnp
from jax.experimental import pallas as pl
from jax.experimental.pallas import tpu as pltpu

EPS = 1e-5                                  # nn.LayerNorm default eps
_VMEM_LIMIT_BYTES = 48 * 1024 * 1024        # < v7x physical 64 MiB, > default scoped limits


# ----------------------------- in-kernel helpers -----------------------------

def _layernorm(x, gamma, beta):
    mu = jnp.mean(x, axis=-1, keepdims=True)
    var = jnp.mean((x - mu) ** 2, axis=-1, keepdims=True)
    return (x - mu) * jax.lax.rsqrt(var + EPS) * gamma + beta


def _gelu(x):
    # TODO(synk): PyTorch nn.GELU default is the exact erf formulation; Mosaic has no erf
    # lowering, so we use the tanh approximation (max abs error ~1e-3).
    c = np.float32(np.sqrt(2.0 / np.pi))
    return 0.5 * x * (1.0 + jnp.tanh(c * (x + 0.044715 * x * x * x)))


# ---------------------- single-buffered resident-weight specs -----------------

_BUFFERED1_OK = None


def _buffered_single_supported():
    """Probe pipeline_mode=pl.Buffered(1) once; fall back to default double-buffering."""
    global _BUFFERED1_OK
    if _BUFFERED1_OK is None:
        def _copy(x_ref, o_ref):
            o_ref[...] = x_ref[...]
        try:
            with jax.ensure_compile_time_eval():
                spec = pl.BlockSpec((8, 128), lambda i: (0, 0),
                                    pipeline_mode=pl.Buffered(1))
                out = pl.pallas_call(
                    _copy,
                    out_shape=jax.ShapeDtypeStruct((8, 128), jnp.float32),
                    grid=(1,),
                    in_specs=[spec],
                    out_specs=pl.BlockSpec((8, 128), lambda i: (0, 0)),
                )(jnp.zeros((8, 128), jnp.float32))
                jax.block_until_ready(out)
            _BUFFERED1_OK = True
        except Exception:
            _BUFFERED1_OK = False
    return _BUFFERED1_OK


def _const_spec(shape):
    """BlockSpec for an operand whose block never changes across the grid (weights/biases).

    Single-buffered when supported: resident weights are otherwise double-buffered, doubling
    their VMEM footprint for zero benefit since the block index never changes.
    """
    index_map = lambda *_: (0,) * len(shape)
    if _buffered_single_supported():
        return pl.BlockSpec(shape, index_map, pipeline_mode=pl.Buffered(1))
    return pl.BlockSpec(shape, index_map)


# --------------------------- window attention kernel --------------------------

def _window_attn_kernel(x_ref, relb_ref, *args,
                        num_heads, head_dim, dim, wb, n, mask_windows):
    if mask_windows:
        mask_ref = args[0]
        g1_ref, b1_ref, qkvw_ref, qkvb_ref, projw_ref, projb_ref, o_ref = args[1:]
    else:
        mask_ref = None
        g1_ref, b1_ref, qkvw_ref, qkvb_ref, projw_ref, projb_ref, o_ref = args

    rows = wb * n
    # (wb, N, C) bf16 slab -> (wb*N, C) f32 for LayerNorm (leading-dim reshape only).
    x = x_ref[...].reshape(rows, dim).astype(jnp.float32)
    xn = _layernorm(x, g1_ref[0], b1_ref[0])

    # One MXU-sized QKV matmul over the whole slab; attention scale pre-folded into q columns.
    qkv = jnp.dot(xn.astype(jnp.bfloat16), qkvw_ref[...],
                  preferred_element_type=jnp.float32) + qkvb_ref[0]       # (rows, 3C) f32
    qkv = qkv.reshape(wb, n, 3 * dim)

    # Per head: window-batched score/context einsums, then accumulate the output projection
    # with that head's (head_dim, C) weight slice (no lane-concat, vregs freed per head).
    # TODO(synk): for nH >= 12 switch this static loop to lax.fori_loop(unroll=True).
    acc = jnp.zeros((rows, dim), jnp.float32)
    for h in range(num_heads):
        q = qkv[:, :, h * head_dim:(h + 1) * head_dim]                    # (wb, N, hd)
        k = qkv[:, :, dim + h * head_dim: dim + (h + 1) * head_dim]
        v = qkv[:, :, 2 * dim + h * head_dim: 2 * dim + (h + 1) * head_dim]

        s = jnp.einsum('wnd,wmd->wnm', q.astype(jnp.bfloat16), k.astype(jnp.bfloat16),
                       preferred_element_type=jnp.float32)                # (wb, N, N)
        s = s + relb_ref[h]                       # (N, N) rel-pos bias, broadcast over wb
        if mask_windows:
            m = mask_ref[...]                     # (mask_windows, N, N) shift mask
            if mask_windows == wb:
                s = s + m
            else:                                 # wb is a whole multiple of nW
                s = (s.reshape(wb // mask_windows, mask_windows, n, n) + m[None]
                     ).reshape(wb, n, n)

        s = s - jnp.max(s, axis=-1, keepdims=True)
        p = jnp.exp(s)
        p = p * pl.reciprocal(jnp.sum(p, axis=-1, keepdims=True), approx=True)

        ctx = jnp.einsum('wnm,wmd->wnd', p.astype(jnp.bfloat16), v.astype(jnp.bfloat16),
                         preferred_element_type=jnp.float32)              # (wb, N, hd)
        acc = acc + jnp.dot(ctx.reshape(rows, head_dim).astype(jnp.bfloat16),
                            projw_ref[h * head_dim:(h + 1) * head_dim, :],
                            preferred_element_type=jnp.float32)

    out = acc + projb_ref[0]
    # TODO(synk): for C < 128 this store is lane-masked; packing to (wb, N*C) would need a
    # minor-dim-changing reshape (Mosaic relayout risk), so the (wb, N, C) layout is kept.
    o_ref[...] = out.reshape(wb, n, dim).astype(o_ref.dtype)


def window_attention(x_win, rel_bias, shift_mask, p, wb, nW):
    """x_win: (B*nW, N, C) bf16; rel_bias: (nH, N, N) f32; shift_mask: (nW, N, N) f32 or None."""
    Bn, N, C = x_win.shape
    nH = rel_bias.shape[0]
    hd = C // nH

    in_specs = [pl.BlockSpec((wb, N, C), lambda i: (i, 0, 0)),    # wb windows per grid step
                _const_spec((nH, N, N))]                          # rel-pos bias (resident)
    args = [x_win, rel_bias]

    mask_windows = 0
    if shift_mask is not None:
        if wb >= nW:            # whole images per slab: mask resident, tiled in-kernel
            mask_windows = nW
            in_specs.append(_const_spec((nW, N, N)))
        else:                   # sub-image slabs: index_map picks the right mask windows
            mask_windows = wb
            nblk = nW // wb
            in_specs.append(pl.BlockSpec((wb, N, N), lambda i: (i % nblk, 0, 0)))
        args.append(shift_mask)

    in_specs += [_const_spec((1, C)), _const_spec((1, C)),          # norm1 gamma / beta
                 _const_spec((C, 3 * C)), _const_spec((1, 3 * C)),  # qkv weight / bias
                 _const_spec((C, C)), _const_spec((1, C))]          # proj weight / bias
    args += [p["g1"], p["b1"], p["qkv_w"], p["qkv_b"], p["proj_w"], p["proj_b"]]

    kernel = functools.partial(_window_attn_kernel, num_heads=nH, head_dim=hd,
                               dim=C, wb=wb, n=N, mask_windows=mask_windows)
    return pl.pallas_call(
        kernel,
        out_shape=jax.ShapeDtypeStruct((Bn, N, C), jnp.bfloat16),
        grid=(Bn // wb,),
        in_specs=in_specs,
        out_specs=pl.BlockSpec((wb, N, C), lambda i: (i, 0, 0)),
        compiler_params=pltpu.CompilerParams(
            dimension_semantics=("parallel",),
            vmem_limit_bytes=_VMEM_LIMIT_BYTES),
    )(*args)


# ------------------------------ MLP residual kernel ---------------------------

def _mlp_residual_kernel(sc_ref, at_ref, g2_ref, b2_ref,
                         w1_ref, bb1_ref, w2_ref, bb2_ref, o_ref,
                         xn_scr, acc_scr):
    kh = pl.program_id(1)

    @pl.when(kh == 0)
    def _():
        x = sc_ref[...].astype(jnp.float32) + at_ref[...].astype(jnp.float32)   # residual #1
        xn_scr[...] = _layernorm(x, g2_ref[0], b2_ref[0]).astype(xn_scr.dtype)  # norm2 (bf16)
        acc_scr[...] = jnp.zeros_like(acc_scr)

    # Partial FC1 -> GELU -> FC2 over one hidden-dim tile; bounds the (tm, Hm) live set.
    h = jnp.dot(xn_scr[...], w1_ref[...], preferred_element_type=jnp.float32) + bb1_ref[0]
    acc_scr[...] += jnp.dot(_gelu(h).astype(jnp.bfloat16), w2_ref[...],
                            preferred_element_type=jnp.float32)

    @pl.when(kh == pl.num_programs(1) - 1)
    def _():
        x = sc_ref[...].astype(jnp.float32) + at_ref[...].astype(jnp.float32)
        o_ref[...] = (x + acc_scr[...] + bb2_ref[0]).astype(o_ref.dtype)        # residual #2


def _pick_window_block(Bn, nW, N, target_rows=256):
    """Windows per attention grid step.

    Keeps slabs at ~target_rows rows (vreg / v7x VMEM budget) and the grid >= 2 (v7x has two
    TensorCores behind dimension_semantics="parallel").  wb is always a divisor or a whole
    multiple of nW so the shift mask can be addressed by the BlockSpec index_map.
    """
    B = Bn // nW
    cands = sorted({d for d in range(1, nW + 1) if nW % d == 0} |
                   {nW * m for m in range(1, B + 1) if B % m == 0})
    ok = [c for c in cands if Bn // c >= 2] or [cands[0]]
    fit = [c for c in ok if c * N <= target_rows]
    return max(fit) if fit else min(ok)


def _pick_row_tile(rows, cap=512):
    """Row tile for the MLP kernel: biggest divisor <= cap, preferring grid >= 2 (v7x)."""
    best = None
    for tm in (512, 256, 128, 64, 32, 16, 8):
        if tm <= cap and tm <= rows and rows % tm == 0:
            if rows // tm >= 2:
                return tm
            if best is None:
                best = tm
    return best if best is not None else rows


def _pick_hidden_tile(hm, cap=512):
    """Hidden-dim tile: bounds the (tm, th) GELU intermediate (v7x VMEM / vreg budget)."""
    for th in (512, 384, 256, 128, 64, 32, 16, 8):
        if th <= cap and th <= hm and hm % th == 0:
            return th
    return hm


def mlp_residual(shortcut, attn_out, p):
    B, L, C = shortcut.shape
    Hm = p["fc1_w"].shape[1]
    rows = B * L
    tm = _pick_row_tile(rows)
    th = _pick_hidden_tile(Hm)
    kh_steps = Hm // th

    row_spec = lambda: pl.BlockSpec((tm, C), lambda i, k: (i, 0))
    w1_spec = _const_spec((C, th)) if kh_steps == 1 else pl.BlockSpec((C, th), lambda i, k: (0, k))
    b1_spec = _const_spec((1, th)) if kh_steps == 1 else pl.BlockSpec((1, th), lambda i, k: (0, k))
    w2_spec = _const_spec((th, C)) if kh_steps == 1 else pl.BlockSpec((th, C), lambda i, k: (k, 0))

    sc2 = shortcut.reshape(rows, C)
    at2 = attn_out.reshape(rows, C)
    out = pl.pallas_call(
        _mlp_residual_kernel,
        out_shape=jax.ShapeDtypeStruct((rows, C), jnp.bfloat16),
        grid=(rows // tm, kh_steps),
        in_specs=[row_spec(), row_spec(),
                  _const_spec((1, C)), _const_spec((1, C)),
                  w1_spec, b1_spec, w2_spec,
                  _const_spec((1, C))],
        out_specs=pl.BlockSpec((tm, C), lambda i, k: (i, 0)),
        scratch_shapes=[pltpu.VMEM((tm, C), jnp.bfloat16),   # normalized activations
                        pltpu.VMEM((tm, C), jnp.float32)],   # FC2 accumulator
        compiler_params=pltpu.CompilerParams(
            dimension_semantics=("parallel", "arbitrary"),
            vmem_limit_bytes=_VMEM_LIMIT_BYTES),
    )(sc2, at2, p["g2"], p["b2"], p["fc1_w"], p["fc1_b"], p["fc2_w"], p["fc2_b"])
    return out.reshape(B, L, C)


# --------------------------------- JAX glue ------------------------------------

def window_partition(x, ws):
    B, H, W, C = x.shape
    x = x.reshape(B, H // ws, ws, W // ws, ws, C)
    return x.transpose(0, 1, 3, 2, 4, 5).reshape(-1, ws, ws, C)


def window_reverse(windows, ws, H, W):
    B = windows.shape[0] // (H * W // ws // ws)
    x = windows.reshape(B, H // ws, W // ws, ws, ws, -1)
    return x.transpose(0, 1, 3, 2, 4, 5).reshape(B, H, W, -1)


def relative_position_index(ws):
    coords = np.stack(np.meshgrid(np.arange(ws), np.arange(ws), indexing="ij"))  # (2,ws,ws)
    flat = coords.reshape(2, -1)
    rel = flat[:, :, None] - flat[:, None, :]
    rel = rel.transpose(1, 2, 0).astype(np.int32)
    rel[:, :, 0] += ws - 1
    rel[:, :, 1] += ws - 1
    rel[:, :, 0] *= 2 * ws - 1
    return rel.sum(-1)                                            # (N, N) int32


def make_shift_mask(H, W, ws, shift):
    """Matches SwinTransformerBlock.__init__ attn_mask construction (numpy). shift > 0 only."""
    N = ws * ws
    img_mask = np.zeros((1, H, W, 1), dtype=np.float32)
    slices = (slice(0, -ws), slice(-ws, -shift), slice(-shift, None))
    cnt = 0
    for h in slices:
        for w in slices:
            img_mask[:, h, w, :] = cnt
            cnt += 1
    mw = img_mask.reshape(1, H // ws, ws, W // ws, ws, 1)
    mw = mw.transpose(0, 1, 3, 2, 4, 5).reshape(-1, N)
    attn_mask = mw[:, None, :] - mw[:, :, None]
    attn_mask = np.where(attn_mask != 0, np.float32(-100.0), np.float32(0.0))
    return jnp.asarray(attn_mask, dtype=jnp.float32)              # (nW, N, N)


def swin_block(x, p, H, W, ws, shift, num_heads, attn_mask, rel_index):
    B, L, C = x.shape
    N = ws * ws
    nW = (H // ws) * (W // ws)
    Bn = B * nW
    wb = _pick_window_block(Bn, nW, N)

    shortcut = x                                             # bf16 residual stream
    xi = x.reshape(B, H, W, C)
    if shift > 0:
        xi = jnp.roll(xi, shift=(-shift, -shift), axis=(1, 2))
    xw = window_partition(xi, ws).reshape(Bn, N, C)          # bf16

    # relative position bias (nH, N, N) gathered from the table; broadcast happens in-kernel.
    rel_bias = p["rel_table"][rel_index.reshape(-1)].reshape(N, N, num_heads)
    rel_bias = jnp.transpose(rel_bias, (2, 0, 1)).astype(jnp.float32)

    attn_win = window_attention(xw, rel_bias, attn_mask, p, wb, nW)   # (B*nW, N, C) bf16
    # TODO(synk): fold window_reverse/roll/residual into the MLP kernel via a scalar-prefetched
    # row permutation to drop this (B, L, C) HBM round trip.
    xr = window_reverse(attn_win.reshape(-1, ws, ws, C), ws, H, W)
    if shift > 0:
        xr = jnp.roll(xr, shift=(shift, shift), axis=(1, 2))
    attn_full = xr.reshape(B, L, C)                          # bf16
    return mlp_residual(shortcut, attn_full, p)              # bf16


def basic_layer_forward(x, blocks_params, input_resolution, num_heads, window_size):
    H, W = input_resolution
    ws = window_size
    shrink = min(input_resolution) <= window_size
    if shrink:
        ws = min(input_resolution)
    rel_index = relative_position_index(ws)
    out_dtype = x.dtype
    x = x.astype(jnp.bfloat16)                               # bf16 inter-block residual stream
    for i, p in enumerate(blocks_params):
        shift = 0 if (i % 2 == 0 or shrink) else ws // 2
        attn_mask = make_shift_mask(H, W, ws, shift) if shift > 0 else None
        x = swin_block(x, p, H, W, ws, shift, num_heads, attn_mask, rel_index)
    # downsample is None -> identity
    return x.astype(out_dtype)


# ----------------------------- parameter initialization ------------------------

def init_block_params(key, dim, num_heads, window_size, mlp_hidden):
    ks = jax.random.split(key, 8)
    tbl_size = (2 * window_size - 1) * (2 * window_size - 1)
    f32, bf16 = jnp.float32, jnp.bfloat16
    head_dim = dim // num_heads
    scale = head_dim ** (-0.5)

    # Linear weights stored as (in, out) so kernels compute x @ W (== PyTorch x @ W^T).
    qkv_w = 0.02 * jax.random.normal(ks[0], (dim, 3 * dim), f32)
    qkv_b = 0.02 * jax.random.normal(ks[1], (1, 3 * dim), f32)
    # Fold the attention scale into the q columns (removes a per-token VALU multiply).
    q_scale = jnp.concatenate([jnp.full((dim,), scale, f32), jnp.ones((2 * dim,), f32)])
    qkv_w = qkv_w * q_scale[None, :]
    qkv_b = qkv_b * q_scale[None, :]

    return {
        "g1": jnp.ones((1, dim), f32),
        "b1": jnp.zeros((1, dim), f32),
        "qkv_w": qkv_w.astype(bf16),                                  # bf16 MXU operand
        "qkv_b": qkv_b,                                               # f32
        "proj_w": (0.02 * jax.random.normal(ks[2], (dim, dim), f32)).astype(bf16),
        "proj_b": 0.02 * jax.random.normal(ks[3], (1, dim), f32),
        "rel_table": 0.02 * jax.random.normal(ks[4], (tbl_size, num_heads), f32),
        "g2": jnp.ones((1, dim), f32),
        "b2": jnp.zeros((1, dim), f32),
        "fc1_w": (0.02 * jax.random.normal(ks[5], (dim, mlp_hidden), f32)).astype(bf16),
        "fc1_b": jnp.zeros((1, mlp_hidden), f32),
        "fc2_w": (0.02 * jax.random.normal(ks[6], (mlp_hidden, dim), f32)).astype(bf16),
        "fc2_b": jnp.zeros((1, dim), f32),
    }


# ------------------------------------- main -------------------------------------

if __name__ == "__main__":
    # BasicLayer(dim=32, input_resolution=(8, 8), depth=2, num_heads=2, window_size=4)
    B = 2
    dim = 32
    H = W = 8
    depth = 2
    num_heads = 2
    window_size = 4
    mlp_ratio = 4.0
    mlp_hidden = int(dim * mlp_ratio)

    key = jax.random.PRNGKey(0)
    kx, kp = jax.random.split(key)
    x = jax.random.normal(kx, (B, H * W, dim), dtype=jnp.float32)

    blocks_params = [
        init_block_params(jax.random.fold_in(kp, i), dim, num_heads, window_size, mlp_hidden)
        for i in range(depth)
    ]

    _buffered_single_supported()   # run the Buffered(1) capability probe eagerly, outside jit

    forward = jax.jit(
        lambda xx, bp: basic_layer_forward(xx, bp, (H, W), num_heads, window_size))
    out = forward(x, blocks_params)
    out = jax.block_until_ready(out)
    assert out.shape == (B, H * W, dim), out.shape
    assert bool(jnp.all(jnp.isfinite(out)))
    print("KERNEL_OK")
</pallas_src>

<mosaic_0001>
module attributes {stable_mosaic.version = 11 : i64} {
  func.func @_copy(%arg0: i32, %arg1: memref<8x128xf32, #tpu.memory_space<vmem>>, %arg2: memref<8x128xf32, #tpu.memory_space<vmem>>) attributes {dimension_semantics = [#tpu.dimension_semantics<arbitrary>], iteration_bounds = array<i64: 1>, scalar_prefetch = 0 : i64, scratch_operands = 0 : i64, tpu.core_type = #tpu.core_type<tc>, window_params = [{pipeline_mode = #tpu.pipeline_mode<synchronous>, transform_indices = @transform_0, window_bounds = array<i64: 8, 128>}, {pipeline_mode = #tpu.pipeline_mode<synchronous>, transform_indices = @transform_1, window_bounds = array<i64: 8, 128>}]} {
    %c0 = arith.constant 0 : index
    %c0_0 = arith.constant 0 : index
    %0 = vector.load %arg1[%c0, %c0_0] : memref<8x128xf32, #tpu.memory_space<vmem>>, vector<8x128xf32>
    %c0_1 = arith.constant 0 : index
    %c0_2 = arith.constant 0 : index
    %1 = vector.load %arg2[%c0_1, %c0_2] : memref<8x128xf32, #tpu.memory_space<vmem>>, vector<8x128xf32>
    tpu.vector_store %arg2[%c0_1, %c0_2], %0 {strides = array<i32>} : memref<8x128xf32, #tpu.memory_space<vmem>>, vector<8x128xf32>,
    return
  }
  func.func @transform_0(%arg0: i32) -> (i32, i32) {
    %c0_i32 = arith.constant 0 : i32
    %c0_i32_0 = arith.constant 0 : i32
    %c0_i32_1 = arith.constant 0 : i32
    return %c0_i32, %c0_i32_0 : i32, i32
  }
  func.func @transform_1(%arg0: i32) -> (i32, i32) {
    %c0_i32 = arith.constant 0 : i32
    %c0_i32_0 = arith.constant 0 : i32
    %c0_i32_1 = arith.constant 0 : i32
    return %c0_i32, %c0_i32_0 : i32, i32
  }
}

module attributes {stable_mosaic.version = 11 : i64} {
  func.func @_mlp_residual_kernel(%arg0: i32, %arg1: i32, %arg2: memref<64x32xbf16, #tpu.memory_space<vmem>>, %arg3: memref<64x32xbf16, #tpu.memory_space<vmem>>, %arg4: memref<1x32xf32, #tpu.memory_space<vmem>>, %arg5: memref<1x32xf32, #tpu.memory_space<vmem>>, %arg6: memref<32x128xbf16, #tpu.memory_space<vmem>>, %arg7: memref<1x128xf32, #tpu.memory_space<vmem>>, %arg8: memref<128x32xbf16, #tpu.memory_space<vmem>>, %arg9: memref<1x32xf32, #tpu.memory_space<vmem>>, %arg10: memref<64x32xbf16, #tpu.memory_space<vmem>>, %arg11: memref<64x32xbf16, #tpu.memory_space<vmem>>, %arg12: memref<64x32xf32, #tpu.memory_space<vmem>>) attributes {dimension_semantics = [#tpu.dimension_semantics<parallel>, #tpu.dimension_semantics<arbitrary>], iteration_bounds = array<i64: 2, 1>, scalar_prefetch = 0 : i64, scratch_operands = 2 : i64, tpu.core_type = #tpu.core_type<tc>, window_params = [{transform_indices = @transform_0, window_bounds = array<i64: 64, 32>}, {transform_indices = @transform_1, window_bounds = array<i64: 64, 32>}, {pipeline_mode = #tpu.pipeline_mode<synchronous>, transform_indices = @transform_2, window_bounds = array<i64: 1, 32>}, {pipeline_mode = #tpu.pipeline_mode<synchronous>, transform_indices = @transform_3, window_bounds = array<i64: 1, 32>}, {pipeline_mode = #tpu.pipeline_mode<synchronous>, transform_indices = @transform_4, window_bounds = array<i64: 32, 128>}, {pipeline_mode = #tpu.pipeline_mode<synchronous>, transform_indices = @transform_5, window_bounds = array<i64: 1, 128>}, {pipeline_mode = #tpu.pipeline_mode<synchronous>, transform_indices = @transform_6, window_bounds = array<i64: 128, 32>}, {pipeline_mode = #tpu.pipeline_mode<synchronous>, transform_indices = @transform_7, window_bounds = array<i64: 1, 32>}, {transform_indices = @transform_8, window_bounds = array<i64: 64, 32>}]} {
    %c0_i32 = arith.constant 0 : i32
    %0 = arith.cmpi eq, %arg1, %c0_i32 : i32
    %1 = arith.extui %0 : i1 to i32
    %c0_i32_0 = arith.constant 0 : i32
    %2 = arith.cmpi ne, %1, %c0_i32_0 : i32
    scf.if %2 {
      %c0_19 = arith.constant 0 : index
      %c0_20 = arith.constant 0 : index
      %33 = vector.load %arg2[%c0_19, %c0_20] : memref<64x32xbf16, #tpu.memory_space<vmem>>, vector<64x32xbf16>
      %34 = arith.extf %33 : vector<64x32xbf16> to vector<64x32xf32>
      %c0_21 = arith.constant 0 : index
      %c0_22 = arith.constant 0 : index
      %35 = vector.load %arg3[%c0_21, %c0_22] : memref<64x32xbf16, #tpu.memory_space<vmem>>, vector<64x32xbf16>
      %36 = arith.extf %35 : vector<64x32xbf16> to vector<64x32xf32>
      %37 = arith.addf %34, %36 : vector<64x32xf32>
      %c0_23 = arith.constant 0 : index
      %c0_24 = arith.constant 0 : index
      %38 = vector.load %arg4[%c0_23, %c0_24] : memref<1x32xf32, #tpu.memory_space<vmem>>, vector<1x32xf32>
      %39 = vector.shape_cast %38 : vector<1x32xf32> to vector<32xf32>
      %c0_25 = arith.constant 0 : index
      %c0_26 = arith.constant 0 : index
      %40 = vector.load %arg5[%c0_25, %c0_26] : memref<1x32xf32, #tpu.memory_space<vmem>>, vector<1x32xf32>
      %41 = vector.shape_cast %40 : vector<1x32xf32> to vector<32xf32>
      %cst_27 = arith.constant dense<0.000000e+00> : vector<64xf32>
      %42 = vector.multi_reduction <add>, %37, %cst_27 [1] : vector<64x32xf32> to vector<64xf32>
      %43 = vector.shape_cast %42 : vector<64xf32> to vector<64x1xf32>
      %cst_28 = arith.constant 3.200000e+01 : f32
      %44 = vector.broadcast %cst_28 : f32 to vector<64x1xf32>
      %45 = arith.divf %43, %44 : vector<64x1xf32>
      %46 = vector.broadcast %45 : vector<64x1xf32> to vector<64x32xf32>
      %47 = arith.subf %37, %46 : vector<64x32xf32>
      %48 = arith.mulf %47, %47 : vector<64x32xf32>
      %cst_29 = arith.constant dense<0.000000e+00> : vector<64xf32>
      %49 = vector.multi_reduction <add>, %48, %cst_29 [1] : vector<64x32xf32> to vector<64xf32>
      %50 = vector.shape_cast %49 : vector<64xf32> to vector<64x1xf32>
      %cst_30 = arith.constant 3.200000e+01 : f32
      %51 = vector.broadcast %cst_30 : f32 to vector<64x1xf32>
      %52 = arith.divf %50, %51 : vector<64x1xf32>
      %53 = vector.broadcast %45 : vector<64x1xf32> to vector<64x32xf32>
      %54 = arith.subf %37, %53 : vector<64x32xf32>
      %cst_31 = arith.constant 9.99999974E-6 : f32
      %55 = vector.broadcast %cst_31 : f32 to vector<64x1xf32>
      %56 = arith.addf %52, %55 : vector<64x1xf32>
      %57 = math.rsqrt %56 : vector<64x1xf32>
      %58 = vector.broadcast %57 : vector<64x1xf32> to vector<64x32xf32>
      %59 = arith.mulf %54, %58 : vector<64x32xf32>
      %60 = vector.shape_cast %39 : vector<32xf32> to vector<1x32xf32>
      %61 = vector.broadcast %60 : vector<1x32xf32> to vector<64x32xf32>
      %62 = arith.mulf %59, %61 : vector<64x32xf32>
      %63 = vector.shape_cast %41 : vector<32xf32> to vector<1x32xf32>
      %64 = vector.broadcast %63 : vector<1x32xf32> to vector<64x32xf32>
      %65 = arith.addf %62, %64 : vector<64x32xf32>
      %66 = arith.truncf %65 : vector<64x32xf32> to vector<64x32xbf16>
      %c0_32 = arith.constant 0 : index
      %c0_33 = arith.constant 0 : index
      %67 = vector.load %arg11[%c0_32, %c0_33] : memref<64x32xbf16, #tpu.memory_space<vmem>>, vector<64x32xbf16>
      tpu.vector_store %arg11[%c0_32, %c0_33], %66 {strides = array<i32>} : memref<64x32xbf16, #tpu.memory_space<vmem>>, vector<64x32xbf16>,
      %cst_34 = arith.constant 0.000000e+00 : f32
      %68 = vector.broadcast %cst_34 : f32 to vector<64x32xf32>
      %c0_35 = arith.constant 0 : index
      %c0_36 = arith.constant 0 : index
      %69 = vector.load %arg12[%c0_35, %c0_36] : memref<64x32xf32, #tpu.memory_space<vmem>>, vector<64x32xf32>
      tpu.vector_store %arg12[%c0_35, %c0_36], %68 {strides = array<i32>} : memref<64x32xf32, #tpu.memory_space<vmem>>, vector<64x32xf32>,
    } else {
    }
    %c0 = arith.constant 0 : index
    %c0_1 = arith.constant 0 : index
    %3 = vector.load %arg11[%c0, %c0_1] : memref<64x32xbf16, #tpu.memory_space<vmem>>, vector<64x32xbf16>
    %c0_2 = arith.constant 0 : index
    %c0_3 = arith.constant 0 : index
    %4 = vector.load %arg6[%c0_2, %c0_3] : memref<32x128xbf16, #tpu.memory_space<vmem>>, vector<32x128xbf16>
    %cst = arith.constant dense<0.000000e+00> : vector<64x128xf32>
    %5 = tpu.matmul %3, %4, %cst {dimension_numbers = #tpu.dot_dimension_numbers<[1], [0], [0], [1], [0, 0, 1, 1], [], []>} : vector<64x32xbf16>, vector<32x128xbf16>, vector<64x128xf32> -> vector<64x128xf32>
    %c0_4 = arith.constant 0 : index
    %c0_5 = arith.constant 0 : index
    %6 = vector.load %arg7[%c0_4, %c0_5] : memref<1x128xf32, #tpu.memory_space<vmem>>, vector<1x128xf32>
    %7 = vector.shape_cast %6 : vector<1x128xf32> to vector<128xf32>
    %8 = vector.shape_cast %7 : vector<128xf32> to vector<1x128xf32>
    %9 = vector.broadcast %8 : vector<1x128xf32> to vector<64x128xf32>
    %10 = arith.addf %5, %9 : vector<64x128xf32>
    %c0_6 = arith.constant 0 : index
    %c0_7 = arith.constant 0 : index
    %11 = vector.load %arg12[%c0_6, %c0_7] : memref<64x32xf32, #tpu.memory_space<vmem>>, vector<64x32xf32>
    %cst_8 = arith.constant 5.000000e-01 : f32
    %12 = vector.broadcast %cst_8 : f32 to vector<64x128xf32>
    %13 = arith.mulf %12, %10 : vector<64x128xf32>
    %cst_9 = arith.constant 4.471500e-02 : f32
    %14 = vector.broadcast %cst_9 : f32 to vector<64x128xf32>
    %15 = arith.mulf %14, %10 : vector<64x128xf32>
    %16 = arith.mulf %15, %10 : vector<64x128xf32>
    %17 = arith.mulf %16, %10 : vector<64x128xf32>
    %18 = arith.addf %10, %17 : vector<64x128xf32>
    %cst_10 = arith.constant 0.797884583 : f32
    %19 = vector.broadcast %cst_10 : f32 to vector<64x128xf32>
    %20 = arith.mulf %19, %18 : vector<64x128xf32>
    %21 = math.tanh %20 : vector<64x128xf32>
    %cst_11 = arith.constant 1.000000e+00 : f32
    %22 = vector.broadcast %cst_11 : f32 to vector<64x128xf32>
    %23 = arith.addf %22, %21 : vector<64x128xf32>
    %24 = arith.mulf %13, %23 : vector<64x128xf32>
    %25 = arith.truncf %24 : vector<64x128xf32> to vector<64x128xbf16>
    %c0_12 = arith.constant 0 : index
    %c0_13 = arith.constant 0 : index
    %26 = vector.load %arg8[%c0_12, %c0_13] : memref<128x32xbf16, #tpu.memory_space<vmem>>, vector<128x32xbf16>
    %cst_14 = arith.constant dense<0.000000e+00> : vector<64x32xf32>
    %27 = tpu.matmul %25, %26, %cst_14 {dimension_numbers = #tpu.dot_dimension_numbers<[1], [0], [0], [1], [0, 0, 1, 1], [], []>} : vector<64x128xbf16>, vector<128x32xbf16>, vector<64x32xf32> -> vector<64x32xf32>
    %28 = arith.addf %11, %27 : vector<64x32xf32>
    %c0_15 = arith.constant 0 : index
    %c0_16 = arith.constant 0 : index
    %29 = vector.load %arg12[%c0_15, %c0_16] : memref<64x32xf32, #tpu.memory_space<vmem>>, vector<64x32xf32>
    tpu.vector_store %arg12[%c0_15, %c0_16], %28 {strides = array<i32>} : memref<64x32xf32, #tpu.memory_space<vmem>>, vector<64x32xf32>,
    %c0_i32_17 = arith.constant 0 : i32
    %30 = arith.cmpi eq, %arg1, %c0_i32_17 : i32
    %31 = arith.extui %30 : i1 to i32
    %c0_i32_18 = arith.constant 0 : i32
    %32 = arith.cmpi ne, %31, %c0_i32_18 : i32
    scf.if %32 {
      %c0_19 = arith.constant 0 : index
      %c0_20 = arith.constant 0 : index
      %33 = vector.load %arg2[%c0_19, %c0_20] : memref<64x32xbf16, #tpu.memory_space<vmem>>, vector<64x32xbf16>
      %34 = arith.extf %33 : vector<64x32xbf16> to vector<64x32xf32>
      %c0_21 = arith.constant 0 : index
      %c0_22 = arith.constant 0 : index
      %35 = vector.load %arg3[%c0_21, %c0_22] : memref<64x32xbf16, #tpu.memory_space<vmem>>, vector<64x32xbf16>
      %36 = arith.extf %35 : vector<64x32xbf16> to vector<64x32xf32>
      %37 = arith.addf %34, %36 : vector<64x32xf32>
      %c0_23 = arith.constant 0 : index
      %c0_24 = arith.constant 0 : index
      %38 = vector.load %arg12[%c0_23, %c0_24] : memref<64x32xf32, #tpu.memory_space<vmem>>, vector<64x32xf32>
      %39 = arith.addf %37, %38 : vector<64x32xf32>
      %c0_25 = arith.constant 0 : index
      %c0_26 = arith.constant 0 : index
      %40 = vector.load %arg9[%c0_25, %c0_26] : memref<1x32xf32, #tpu.memory_space<vmem>>, vector<1x32xf32>
      %41 = vector.shape_cast %40 : vector<1x32xf32> to vector<32xf32>
      %42 = vector.shape_cast %41 : vector<32xf32> to vector<1x32xf32>
      %43 = vector.broadcast %42 : vector<1x32xf32> to vector<64x32xf32>
      %44 = arith.addf %39, %43 : vector<64x32xf32>
      %45 = arith.truncf %44 : vector<64x32xf32> to vector<64x32xbf16>
      %c0_27 = arith.constant 0 : index
      %c0_28 = arith.constant 0 : index
      %46 = vector.load %arg10[%c0_27, %c0_28] : memref<64x32xbf16, #tpu.memory_space<vmem>>, vector<64x32xbf16>
      tpu.vector_store %arg10[%c0_27, %c0_28], %45 {strides = array<i32>} : memref<64x32xbf16, #tpu.memory_space<vmem>>, vector<64x32xbf16>,
    } else {
    }
    return
  }
  func.func @transform_0(%arg0: i32, %arg1: i32) -> (i32, i32) {
    %c0_i32 = arith.constant 0 : i32
    %c0_i32_0 = arith.constant 0 : i32
    return %arg0, %c0_i32 : i32, i32
  }
  func.func @transform_1(%arg0: i32, %arg1: i32) -> (i32, i32) {
    %c0_i32 = arith.constant 0 : i32
    %c0_i32_0 = arith.constant 0 : i32
    return %arg0, %c0_i32 : i32, i32
  }
  func.func @transform_2(%arg0: i32, %arg1: i32) -> (i32, i32) {
    %c0_i32 = arith.constant 0 : i32
    %c0_i32_0 = arith.constant 0 : i32
    %c0_i32_1 = arith.constant 0 : i32
    return %c0_i32, %c0_i32_0 : i32, i32
  }
  func.func @transform_3(%arg0: i32, %arg1: i32) -> (i32, i32) {
    %c0_i32 = arith.constant 0 : i32
    %c0_i32_0 = arith.constant 0 : i32
    %c0_i32_1 = arith.constant 0 : i32
    return %c0_i32, %c0_i32_0 : i32, i32
  }
  func.func @transform_4(%arg0: i32, %arg1: i32) -> (i32, i32) {
    %c0_i32 = arith.constant 0 : i32
    %c0_i32_0 = arith.constant 0 : i32
    %c0_i32_1 = arith.constant 0 : i32
    return %c0_i32, %c0_i32_0 : i32, i32
  }
  func.func @transform_5(%arg0: i32, %arg1: i32) -> (i32, i32) {
    %c0_i32 = arith.constant 0 : i32
    %c0_i32_0 = arith.constant 0 : i32
    %c0_i32_1 = arith.constant 0 : i32
    return %c0_i32, %c0_i32_0 : i32, i32
  }
  func.func @transform_6(%arg0: i32, %arg1: i32) -> (i32, i32) {
    %c0_i32 = arith.constant 0 : i32
    %c0_i32_0 = arith.constant 0 : i32
    %c0_i32_1 = arith.constant 0 : i32
    return %c0_i32, %c0_i32_0 : i32, i32
  }
  func.func @transform_7(%arg0: i32, %arg1: i32) -> (i32, i32) {
    %c0_i32 = arith.constant 0 : i32
    %c0_i32_0 = arith.constant 0 : i32
    %c0_i32_1 = arith.constant 0 : i32
    return %c0_i32, %c0_i32_0 : i32, i32
  }
  func.func @transform_8(%arg0: i32, %arg1: i32) -> (i32, i32) {
    %c0_i32 = arith.constant 0 : i32
    %c0_i32_0 = arith.constant 0 : i32
    return %arg0, %c0_i32 : i32, i32
  }
}

module attributes {stable_mosaic.version = 11 : i64} {
  func.func @_window_attn_kernel(%arg0: i32, %arg1: memref<4x16x32xbf16, #tpu.memory_space<vmem>>, %arg2: memref<2x16x16xf32, #tpu.memory_space<vmem>>, %arg3: memref<1x32xf32, #tpu.memory_space<vmem>>, %arg4: memref<1x32xf32, #tpu.memory_space<vmem>>, %arg5: memref<32x96xbf16, #tpu.memory_space<vmem>>, %arg6: memref<1x96xf32, #tpu.memory_space<vmem>>, %arg7: memref<32x32xbf16, #tpu.memory_space<vmem>>, %arg8: memref<1x32xf32, #tpu.memory_space<vmem>>, %arg9: memref<4x16x32xbf16, #tpu.memory_space<vmem>>) attributes {dimension_semantics = [#tpu.dimension_semantics<parallel>], iteration_bounds = array<i64: 2>, scalar_prefetch = 0 : i64, scratch_operands = 0 : i64, tpu.core_type = #tpu.core_type<tc>, window_params = [{transform_indices = @transform_0, window_bounds = array<i64: 4, 16, 32>}, {pipeline_mode = #tpu.pipeline_mode<synchronous>, transform_indices = @transform_1, window_bounds = array<i64: 2, 16, 16>}, {pipeline_mode = #tpu.pipeline_mode<synchronous>, transform_indices = @transform_2, window_bounds = array<i64: 1, 32>}, {pipeline_mode = #tpu.pipeline_mode<synchronous>, transform_indices = @transform_3, window_bounds = array<i64: 1, 32>}, {pipeline_mode = #tpu.pipeline_mode<synchronous>, transform_indices = @transform_4, window_bounds = array<i64: 32, 96>}, {pipeline_mode = #tpu.pipeline_mode<synchronous>, transform_indices = @transform_5, window_bounds = array<i64: 1, 96>}, {pipeline_mode = #tpu.pipeline_mode<synchronous>, transform_indices = @transform_6, window_bounds = array<i64: 32, 32>}, {pipeline_mode = #tpu.pipeline_mode<synchronous>, transform_indices = @transform_7, window_bounds = array<i64: 1, 32>}, {transform_indices = @transform_8, window_bounds = array<i64: 4, 16, 32>}]} {
    %c0 = arith.constant 0 : index
    %c0_0 = arith.constant 0 : index
    %c0_1 = arith.constant 0 : index
    %0 = vector.load %arg1[%c0, %c0_0, %c0_1] : memref<4x16x32xbf16, #tpu.memory_space<vmem>>, vector<4x16x32xbf16>
    %1 = vector.shape_cast %0 : vector<4x16x32xbf16> to vector<64x32xbf16>
    %2 = arith.extf %1 : vector<64x32xbf16> to vector<64x32xf32>
    %c0_2 = arith.constant 0 : index
    %c0_3 = arith.constant 0 : index
    %3 = vector.load %arg3[%c0_2, %c0_3] : memref<1x32xf32, #tpu.memory_space<vmem>>, vector<1x32xf32>
    %4 = vector.shape_cast %3 : vector<1x32xf32> to vector<32xf32>
    %c0_4 = arith.constant 0 : index
    %c0_5 = arith.constant 0 : index
    %5 = vector.load %arg4[%c0_4, %c0_5] : memref<1x32xf32, #tpu.memory_space<vmem>>, vector<1x32xf32>
    %6 = vector.shape_cast %5 : vector<1x32xf32> to vector<32xf32>
    %cst = arith.constant dense<0.000000e+00> : vector<64xf32>
    %7 = vector.multi_reduction <add>, %2, %cst [1] : vector<64x32xf32> to vector<64xf32>
    %8 = vector.shape_cast %7 : vector<64xf32> to vector<64x1xf32>
    %cst_6 = arith.constant 3.200000e+01 : f32
    %9 = vector.broadcast %cst_6 : f32 to vector<64x1xf32>
    %10 = arith.divf %8, %9 : vector<64x1xf32>
    %11 = vector.broadcast %10 : vector<64x1xf32> to vector<64x32xf32>
    %12 = arith.subf %2, %11 : vector<64x32xf32>
    %13 = arith.mulf %12, %12 : vector<64x32xf32>
    %cst_7 = arith.constant dense<0.000000e+00> : vector<64xf32>
    %14 = vector.multi_reduction <add>, %13, %cst_7 [1] : vector<64x32xf32> to vector<64xf32>
    %15 = vector.shape_cast %14 : vector<64xf32> to vector<64x1xf32>
    %cst_8 = arith.constant 3.200000e+01 : f32
    %16 = vector.broadcast %cst_8 : f32 to vector<64x1xf32>
    %17 = arith.divf %15, %16 : vector<64x1xf32>
    %18 = vector.broadcast %10 : vector<64x1xf32> to vector<64x32xf32>
    %19 = arith.subf %2, %18 : vector<64x32xf32>
    %cst_9 = arith.constant 9.99999974E-6 : f32
    %20 = vector.broadcast %cst_9 : f32 to vector<64x1xf32>
    %21 = arith.addf %17, %20 : vector<64x1xf32>
    %22 = math.rsqrt %21 : vector<64x1xf32>
    %23 = vector.broadcast %22 : vector<64x1xf32> to vector<64x32xf32>
    %24 = arith.mulf %19, %23 : vector<64x32xf32>
    %25 = vector.shape_cast %4 : vector<32xf32> to vector<1x32xf32>
    %26 = vector.broadcast %25 : vector<1x32xf32> to vector<64x32xf32>
    %27 = arith.mulf %24, %26 : vector<64x32xf32>
    %28 = vector.shape_cast %6 : vector<32xf32> to vector<1x32xf32>
    %29 = vector.broadcast %28 : vector<1x32xf32> to vector<64x32xf32>
    %30 = arith.addf %27, %29 : vector<64x32xf32>
    %31 = arith.truncf %30 : vector<64x32xf32> to vector<64x32xbf16>
    %c0_10 = arith.constant 0 : index
    %c0_11 = arith.constant 0 : index
    %32 = vector.load %arg5[%c0_10, %c0_11] : memref<32x96xbf16, #tpu.memory_space<vmem>>, vector<32x96xbf16>
    %cst_12 = arith.constant dense<0.000000e+00> : vector<64x96xf32>
    %33 = tpu.matmul %31, %32, %cst_12 {dimension_numbers = #tpu.dot_dimension_numbers<[1], [0], [0], [1], [0, 0, 1, 1], [], []>} : vector<64x32xbf16>, vector<32x96xbf16>, vector<64x96xf32> -> vector<64x96xf32>
    %c0_13 = arith.constant 0 : index
    %c0_14 = arith.constant 0 : index
    %34 = vector.load %arg6[%c0_13, %c0_14] : memref<1x96xf32, #tpu.memory_space<vmem>>, vector<1x96xf32>
    %35 = vector.shape_cast %34 : vector<1x96xf32> to vector<96xf32>
    %36 = vector.shape_cast %35 : vector<96xf32> to vector<1x96xf32>
    %37 = vector.broadcast %36 : vector<1x96xf32> to vector<64x96xf32>
    %38 = arith.addf %33, %37 : vector<64x96xf32>
    %39 = vector.shape_cast %38 : vector<64x96xf32> to vector<4x16x96xf32>
    %cst_15 = arith.constant 0.000000e+00 : f32
    %40 = vector.broadcast %cst_15 : f32 to vector<64x32xf32>
    %41 = vector.extract_strided_slice %39 {offsets = [0, 0, 0], sizes = [4, 16, 16], strides = [1, 1, 1]} : vector<4x16x96xf32> to vector<4x16x16xf32>
    %42 = vector.extract_strided_slice %39 {offsets = [0, 0, 32], sizes = [4, 16, 16], strides = [1, 1, 1]} : vector<4x16x96xf32> to vector<4x16x16xf32>
    %43 = vector.extract_strided_slice %39 {offsets = [0, 0, 64], sizes = [4, 16, 16], strides = [1, 1, 1]} : vector<4x16x96xf32> to vector<4x16x16xf32>
    %44 = arith.truncf %41 : vector<4x16x16xf32> to vector<4x16x16xbf16>
    %45 = arith.truncf %42 : vector<4x16x16xf32> to vector<4x16x16xbf16>
    "tpu.trace_start"() <{level = 10 : i32, message = "wnd,wmd->wnm"}> : () -> ()
    %cst_16 = arith.constant dense<0.000000e+00> : vector<4x16x16xf32>
    %46 = tpu.matmul %44, %45, %cst_16 {dimension_numbers = #tpu.dot_dimension_numbers<[2], [2], [1], [1], [0, 0, 0, 1, 1, 1], [0], [0]>} : vector<4x16x16xbf16>, vector<4x16x16xbf16>, vector<4x16x16xf32> -> vector<4x16x16xf32>
    "tpu.trace_stop"() : () -> ()
    %c0_17 = arith.constant 0 : index
    %c0_18 = arith.constant 0 : index
    %c0_19 = arith.constant 0 : index
    %47 = vector.load %arg2[%c0_17, %c0_18, %c0_19] : memref<2x16x16xf32, #tpu.memory_space<vmem>>, vector<1x16x16xf32>
    %48 = vector.shape_cast %47 : vector<1x16x16xf32> to vector<16x16xf32>
    %49 = vector.shape_cast %48 : vector<16x16xf32> to vector<1x16x16xf32>
    %50 = vector.broadcast %49 : vector<1x16x16xf32> to vector<4x16x16xf32>
    %51 = arith.addf %46, %50 : vector<4x16x16xf32>
    %cst_20 = arith.constant dense<0xFF800000> : vector<4x16xf32>
    %52 = vector.multi_reduction <maximumf>, %51, %cst_20 [2] : vector<4x16x16xf32> to vector<4x16xf32>
    %53 = vector.shape_cast %52 : vector<4x16xf32> to vector<4x16x1xf32>
    %54 = vector.broadcast %53 : vector<4x16x1xf32> to vector<4x16x16xf32>
    %55 = arith.subf %51, %54 : vector<4x16x16xf32>
    %56 = math.exp %55 : vector<4x16x16xf32>
    %cst_21 = arith.constant dense<0.000000e+00> : vector<4x16xf32>
    %57 = vector.multi_reduction <add>, %56, %cst_21 [2] : vector<4x16x16xf32> to vector<4x16xf32>
    %58 = vector.shape_cast %57 : vector<4x16xf32> to vector<4x16x1xf32>
    %59 = tpu.reciprocal %58 {approx = true} : vector<4x16x1xf32> -> vector<4x16x1xf32>
    %60 = vector.broadcast %59 : vector<4x16x1xf32> to vector<4x16x16xf32>
    %61 = arith.mulf %56, %60 : vector<4x16x16xf32>
    %62 = arith.truncf %61 : vector<4x16x16xf32> to vector<4x16x16xbf16>
    %63 = arith.truncf %43 : vector<4x16x16xf32> to vector<4x16x16xbf16>
    "tpu.trace_start"() <{level = 10 : i32, message = "wnm,wmd->wnd"}> : () -> ()
    %cst_22 = arith.constant dense<0.000000e+00> : vector<4x16x16xf32>
    %64 = tpu.matmul %62, %63, %cst_22 {dimension_numbers = #tpu.dot_dimension_numbers<[2], [1], [1], [2], [0, 0, 0, 1, 1, 2], [0], [0]>} : vector<4x16x16xbf16>, vector<4x16x16xbf16>, vector<4x16x16xf32> -> vector<4x16x16xf32>
    "tpu.trace_stop"() : () -> ()
    %65 = vector.shape_cast %64 : vector<4x16x16xf32> to vector<64x16xf32>
    %66 = arith.truncf %65 : vector<64x16xf32> to vector<64x16xbf16>
    %c0_23 = arith.constant 0 : index
    %c0_24 = arith.constant 0 : index
    %67 = vector.load %arg7[%c0_23, %c0_24] : memref<32x32xbf16, #tpu.memory_space<vmem>>, vector<16x32xbf16>
    %cst_25 = arith.constant dense<0.000000e+00> : vector<64x32xf32>
    %68 = tpu.matmul %66, %67, %cst_25 {dimension_numbers = #tpu.dot_dimension_numbers<[1], [0], [0], [1], [0, 0, 1, 1], [], []>} : vector<64x16xbf16>, vector<16x32xbf16>, vector<64x32xf32> -> vector<64x32xf32>
    %69 = arith.addf %40, %68 : vector<64x32xf32>
    %70 = vector.extract_strided_slice %39 {offsets = [0, 0, 16], sizes = [4, 16, 16], strides = [1, 1, 1]} : vector<4x16x96xf32> to vector<4x16x16xf32>
    %71 = vector.extract_strided_slice %39 {offsets = [0, 0, 48], sizes = [4, 16, 16], strides = [1, 1, 1]} : vector<4x16x96xf32> to vector<4x16x16xf32>
    %72 = vector.extract_strided_slice %39 {offsets = [0, 0, 80], sizes = [4, 16, 16], strides = [1, 1, 1]} : vector<4x16x96xf32> to vector<4x16x16xf32>
    %73 = arith.truncf %70 : vector<4x16x16xf32> to vector<4x16x16xbf16>
    %74 = arith.truncf %71 : vector<4x16x16xf32> to vector<4x16x16xbf16>
    "tpu.trace_start"() <{level = 10 : i32, message = "wnd,wmd->wnm"}> : () -> ()
    %cst_26 = arith.constant dense<0.000000e+00> : vector<4x16x16xf32>
    %75 = tpu.matmul %73, %74, %cst_26 {dimension_numbers = #tpu.dot_dimension_numbers<[2], [2], [1], [1], [0, 0, 0, 1, 1, 1], [0], [0]>} : vector<4x16x16xbf16>, vector<4x16x16xbf16>, vector<4x16x16xf32> -> vector<4x16x16xf32>
    "tpu.trace_stop"() : () -> ()
    %c1 = arith.constant 1 : index
    %c0_27 = arith.constant 0 : index
    %c0_28 = arith.constant 0 : index
    %76 = vector.load %arg2[%c1, %c0_27, %c0_28] : memref<2x16x16xf32, #tpu.memory_space<vmem>>, vector<1x16x16xf32>
    %77 = vector.shape_cast %76 : vector<1x16x16xf32> to vector<16x16xf32>
    %78 = vector.shape_cast %77 : vector<16x16xf32> to vector<1x16x16xf32>
    %79 = vector.broadcast %78 : vector<1x16x16xf32> to vector<4x16x16xf32>
    %80 = arith.addf %75, %79 : vector<4x16x16xf32>
    %cst_29 = arith.constant dense<0xFF800000> : vector<4x16xf32>
    %81 = vector.multi_reduction <maximumf>, %80, %cst_29 [2] : vector<4x16x16xf32> to vector<4x16xf32>
    %82 = vector.shape_cast %81 : vector<4x16xf32> to vector<4x16x1xf32>
    %83 = vector.broadcast %82 : vector<4x16x1xf32> to vector<4x16x16xf32>
    %84 = arith.subf %80, %83 : vector<4x16x16xf32>
    %85 = math.exp %84 : vector<4x16x16xf32>
    %cst_30 = arith.constant dense<0.000000e+00> : vector<4x16xf32>
    %86 = vector.multi_reduction <add>, %85, %cst_30 [2] : vector<4x16x16xf32> to vector<4x16xf32>
    %87 = vector.shape_cast %86 : vector<4x16xf32> to vector<4x16x1xf32>
    %88 = tpu.reciprocal %87 {approx = true} : vector<4x16x1xf32> -> vector<4x16x1xf32>
    %89 = vector.broadcast %88 : vector<4x16x1xf32> to vector<4x16x16xf32>
    %90 = arith.mulf %85, %89 : vector<4x16x16xf32>
    %91 = arith.truncf %90 : vector<4x16x16xf32> to vector<4x16x16xbf16>
    %92 = arith.truncf %72 : vector<4x16x16xf32> to vector<4x16x16xbf16>
    "tpu.trace_start"() <{level = 10 : i32, message = "wnm,wmd->wnd"}> : () -> ()
    %cst_31 = arith.constant dense<0.000000e+00> : vector<4x16x16xf32>
    %93 = tpu.matmul %91, %92, %cst_31 {dimension_numbers = #tpu.dot_dimension_numbers<[2], [1], [1], [2], [0, 0, 0, 1, 1, 2], [0], [0]>} : vector<4x16x16xbf16>, vector<4x16x16xbf16>, vector<4x16x16xf32> -> vector<4x16x16xf32>
    "tpu.trace_stop"() : () -> ()
    %94 = vector.shape_cast %93 : vector<4x16x16xf32> to vector<64x16xf32>
    %95 = arith.truncf %94 : vector<64x16xf32> to vector<64x16xbf16>
    %c16 = arith.constant 16 : index
    %c0_32 = arith.constant 0 : index
    %96 = vector.load %arg7[%c16, %c0_32] : memref<32x32xbf16, #tpu.memory_space<vmem>>, vector<16x32xbf16>
    %cst_33 = arith.constant dense<0.000000e+00> : vector<64x32xf32>
    %97 = tpu.matmul %95, %96, %cst_33 {dimension_numbers = #tpu.dot_dimension_numbers<[1], [0], [0], [1], [0, 0, 1, 1], [], []>} : vector<64x16xbf16>, vector<16x32xbf16>, vector<64x32xf32> -> vector<64x32xf32>
    %98 = arith.addf %69, %97 : vector<64x32xf32>
    %c0_34 = arith.constant 0 : index
    %c0_35 = arith.constant 0 : index
    %99 = vector.load %arg8[%c0_34, %c0_35] : memref<1x32xf32, #tpu.memory_space<vmem>>, vector<1x32xf32>
    %100 = vector.shape_cast %99 : vector<1x32xf32> to vector<32xf32>
    %101 = vector.shape_cast %100 : vector<32xf32> to vector<1x32xf32>
    %102 = vector.broadcast %101 : vector<1x32xf32> to vector<64x32xf32>
    %103 = arith.addf %98, %102 : vector<64x32xf32>
    %104 = vector.shape_cast %103 : vector<64x32xf32> to vector<4x16x32xf32>
    %105 = arith.truncf %104 : vector<4x16x32xf32> to vector<4x16x32xbf16>
    %c0_36 = arith.constant 0 : index
    %c0_37 = arith.constant 0 : index
    %c0_38 = arith.constant 0 : index
    %106 = vector.load %arg9[%c0_36, %c0_37, %c0_38] : memref<4x16x32xbf16, #tpu.memory_space<vmem>>, vector<4x16x32xbf16>
    tpu.vector_store %arg9[%c0_36, %c0_37, %c0_38], %105 {strides = array<i32>} : memref<4x16x32xbf16, #tpu.memory_space<vmem>>, vector<4x16x32xbf16>,
    return
  }
  func.func @transform_0(%arg0: i32) -> (i32, i32, i32) {
    %c0_i32 = arith.constant 0 : i32
    %c0_i32_0 = arith.constant 0 : i32
    %c0_i32_1 = arith.constant 0 : i32
    return %arg0, %c0_i32, %c0_i32_0 : i32, i32, i32
  }
  func.func @transform_1(%arg0: i32) -> (i32, i32, i32) {
    %c0_i32 = arith.constant 0 : i32
    %c0_i32_0 = arith.constant 0 : i32
    %c0_i32_1 = arith.constant 0 : i32
    %c0_i32_2 = arith.constant 0 : i32
    return %c0_i32, %c0_i32_0, %c0_i32_1 : i32, i32, i32
  }
  func.func @transform_2(%arg0: i32) -> (i32, i32) {
    %c0_i32 = arith.constant 0 : i32
    %c0_i32_0 = arith.constant 0 : i32
    %c0_i32_1 = arith.constant 0 : i32
    return %c0_i32, %c0_i32_0 : i32, i32
  }
  func.func @transform_3(%arg0: i32) -> (i32, i32) {
    %c0_i32 = arith.constant 0 : i32
    %c0_i32_0 = arith.constant 0 : i32
    %c0_i32_1 = arith.constant 0 : i32
    return %c0_i32, %c0_i32_0 : i32, i32
  }
  func.func @transform_4(%arg0: i32) -> (i32, i32) {
    %c0_i32 = arith.constant 0 : i32
    %c0_i32_0 = arith.constant 0 : i32
    %c0_i32_1 = arith.constant 0 : i32
    return %c0_i32, %c0_i32_0 : i32, i32
  }
  func.func @transform_5(%arg0: i32) -> (i32, i32) {
    %c0_i32 = arith.constant 0 : i32
    %c0_i32_0 = arith.constant 0 : i32
    %c0_i32_1 = arith.constant 0 : i32
    return %c0_i32, %c0_i32_0 : i32, i32
  }
  func.func @transform_6(%arg0: i32) -> (i32, i32) {
    %c0_i32 = arith.constant 0 : i32
    %c0_i32_0 = arith.constant 0 : i32
    %c0_i32_1 = arith.constant 0 : i32
    return %c0_i32, %c0_i32_0 : i32, i32
  }
  func.func @transform_7(%arg0: i32) -> (i32, i32) {
    %c0_i32 = arith.constant 0 : i32
    %c0_i32_0 = arith.constant 0 : i32
    %c0_i32_1 = arith.constant 0 : i32
    return %c0_i32, %c0_i32_0 : i32, i32
  }
  func.func @transform_8(%arg0: i32) -> (i32, i32, i32) {
    %c0_i32 = arith.constant 0 : i32
    %c0_i32_0 = arith.constant 0 : i32
    %c0_i32_1 = arith.constant 0 : i32
    return %arg0, %c0_i32, %c0_i32_0 : i32, i32, i32
  }
}

module attributes {stable_mosaic.version = 11 : i64} {
  func.func @_window_attn_kernel(%arg0: i32, %arg1: memref<4x16x32xbf16, #tpu.memory_space<vmem>>, %arg2: memref<2x16x16xf32, #tpu.memory_space<vmem>>, %arg3: memref<4x16x16xf32, #tpu.memory_space<vmem>>, %arg4: memref<1x32xf32, #tpu.memory_space<vmem>>, %arg5: memref<1x32xf32, #tpu.memory_space<vmem>>, %arg6: memref<32x96xbf16, #tpu.memory_space<vmem>>, %arg7: memref<1x96xf32, #tpu.memory_space<vmem>>, %arg8: memref<32x32xbf16, #tpu.memory_space<vmem>>, %arg9: memref<1x32xf32, #tpu.memory_space<vmem>>, %arg10: memref<4x16x32xbf16, #tpu.memory_space<vmem>>) attributes {dimension_semantics = [#tpu.dimension_semantics<parallel>], iteration_bounds = array<i64: 2>, scalar_prefetch = 0 : i64, scratch_operands = 0 : i64, tpu.core_type = #tpu.core_type<tc>, window_params = [{transform_indices = @transform_0, window_bounds = array<i64: 4, 16, 32>}, {pipeline_mode = #tpu.pipeline_mode<synchronous>, transform_indices = @transform_1, window_bounds = array<i64: 2, 16, 16>}, {pipeline_mode = #tpu.pipeline_mode<synchronous>, transform_indices = @transform_2, window_bounds = array<i64: 4, 16, 16>}, {pipeline_mode = #tpu.pipeline_mode<synchronous>, transform_indices = @transform_3, window_bounds = array<i64: 1, 32>}, {pipeline_mode = #tpu.pipeline_mode<synchronous>, transform_indices = @transform_4, window_bounds = array<i64: 1, 32>}, {pipeline_mode = #tpu.pipeline_mode<synchronous>, transform_indices = @transform_5, window_bounds = array<i64: 32, 96>}, {pipeline_mode = #tpu.pipeline_mode<synchronous>, transform_indices = @transform_6, window_bounds = array<i64: 1, 96>}, {pipeline_mode = #tpu.pipeline_mode<synchronous>, transform_indices = @transform_7, window_bounds = array<i64: 32, 32>}, {pipeline_mode = #tpu.pipeline_mode<synchronous>, transform_indices = @transform_8, window_bounds = array<i64: 1, 32>}, {transform_indices = @transform_9, window_bounds = array<i64: 4, 16, 32>}]} {
    %c0 = arith.constant 0 : index
    %c0_0 = arith.constant 0 : index
    %c0_1 = arith.constant 0 : index
    %0 = vector.load %arg1[%c0, %c0_0, %c0_1] : memref<4x16x32xbf16, #tpu.memory_space<vmem>>, vector<4x16x32xbf16>
    %1 = vector.shape_cast %0 : vector<4x16x32xbf16> to vector<64x32xbf16>
    %2 = arith.extf %1 : vector<64x32xbf16> to vector<64x32xf32>
    %c0_2 = arith.constant 0 : index
    %c0_3 = arith.constant 0 : index
    %3 = vector.load %arg4[%c0_2, %c0_3] : memref<1x32xf32, #tpu.memory_space<vmem>>, vector<1x32xf32>
    %4 = vector.shape_cast %3 : vector<1x32xf32> to vector<32xf32>
    %c0_4 = arith.constant 0 : index
    %c0_5 = arith.constant 0 : index
    %5 = vector.load %arg5[%c0_4, %c0_5] : memref<1x32xf32, #tpu.memory_space<vmem>>, vector<1x32xf32>
    %6 = vector.shape_cast %5 : vector<1x32xf32> to vector<32xf32>
    %cst = arith.constant dense<0.000000e+00> : vector<64xf32>
    %7 = vector.multi_reduction <add>, %2, %cst [1] : vector<64x32xf32> to vector<64xf32>
    %8 = vector.shape_cast %7 : vector<64xf32> to vector<64x1xf32>
    %cst_6 = arith.constant 3.200000e+01 : f32
    %9 = vector.broadcast %cst_6 : f32 to vector<64x1xf32>
    %10 = arith.divf %8, %9 : vector<64x1xf32>
    %11 = vector.broadcast %10 : vector<64x1xf32> to vector<64x32xf32>
    %12 = arith.subf %2, %11 : vector<64x32xf32>
    %13 = arith.mulf %12, %12 : vector<64x32xf32>
    %cst_7 = arith.constant dense<0.000000e+00> : vector<64xf32>
    %14 = vector.multi_reduction <add>, %13, %cst_7 [1] : vector<64x32xf32> to vector<64xf32>
    %15 = vector.shape_cast %14 : vector<64xf32> to vector<64x1xf32>
    %cst_8 = arith.constant 3.200000e+01 : f32
    %16 = vector.broadcast %cst_8 : f32 to vector<64x1xf32>
    %17 = arith.divf %15, %16 : vector<64x1xf32>
    %18 = vector.broadcast %10 : vector<64x1xf32> to vector<64x32xf32>
    %19 = arith.subf %2, %18 : vector<64x32xf32>
    %cst_9 = arith.constant 9.99999974E-6 : f32
    %20 = vector.broadcast %cst_9 : f32 to vector<64x1xf32>
    %21 = arith.addf %17, %20 : vector<64x1xf32>
    %22 = math.rsqrt %21 : vector<64x1xf32>
    %23 = vector.broadcast %22 : vector<64x1xf32> to vector<64x32xf32>
    %24 = arith.mulf %19, %23 : vector<64x32xf32>
    %25 = vector.shape_cast %4 : vector<32xf32> to vector<1x32xf32>
    %26 = vector.broadcast %25 : vector<1x32xf32> to vector<64x32xf32>
    %27 = arith.mulf %24, %26 : vector<64x32xf32>
    %28 = vector.shape_cast %6 : vector<32xf32> to vector<1x32xf32>
    %29 = vector.broadcast %28 : vector<1x32xf32> to vector<64x32xf32>
    %30 = arith.addf %27, %29 : vector<64x32xf32>
    %31 = arith.truncf %30 : vector<64x32xf32> to vector<64x32xbf16>
    %c0_10 = arith.constant 0 : index
    %c0_11 = arith.constant 0 : index
    %32 = vector.load %arg6[%c0_10, %c0_11] : memref<32x96xbf16, #tpu.memory_space<vmem>>, vector<32x96xbf16>
    %cst_12 = arith.constant dense<0.000000e+00> : vector<64x96xf32>
    %33 = tpu.matmul %31, %32, %cst_12 {dimension_numbers = #tpu.dot_dimension_numbers<[1], [0], [0], [1], [0, 0, 1, 1], [], []>} : vector<64x32xbf16>, vector<32x96xbf16>, vector<64x96xf32> -> vector<64x96xf32>
    %c0_13 = arith.constant 0 : index
    %c0_14 = arith.constant 0 : index
    %34 = vector.load %arg7[%c0_13, %c0_14] : memref<1x96xf32, #tpu.memory_space<vmem>>, vector<1x96xf32>
    %35 = vector.shape_cast %34 : vector<1x96xf32> to vector<96xf32>
    %36 = vector.shape_cast %35 : vector<96xf32> to vector<1x96xf32>
    %37 = vector.broadcast %36 : vector<1x96xf32> to vector<64x96xf32>
    %38 = arith.addf %33, %37 : vector<64x96xf32>
    %39 = vector.shape_cast %38 : vector<64x96xf32> to vector<4x16x96xf32>
    %cst_15 = arith.constant 0.000000e+00 : f32
    %40 = vector.broadcast %cst_15 : f32 to vector<64x32xf32>
    %41 = vector.extract_strided_slice %39 {offsets = [0, 0, 0], sizes = [4, 16, 16], strides = [1, 1, 1]} : vector<4x16x96xf32> to vector<4x16x16xf32>
    %42 = vector.extract_strided_slice %39 {offsets = [0, 0, 32], sizes = [4, 16, 16], strides = [1, 1, 1]} : vector<4x16x96xf32> to vector<4x16x16xf32>
    %43 = vector.extract_strided_slice %39 {offsets = [0, 0, 64], sizes = [4, 16, 16], strides = [1, 1, 1]} : vector<4x16x96xf32> to vector<4x16x16xf32>
    %44 = arith.truncf %41 : vector<4x16x16xf32> to vector<4x16x16xbf16>
    %45 = arith.truncf %42 : vector<4x16x16xf32> to vector<4x16x16xbf16>
    "tpu.trace_start"() <{level = 10 : i32, message = "wnd,wmd->wnm"}> : () -> ()
    %cst_16 = arith.constant dense<0.000000e+00> : vector<4x16x16xf32>
    %46 = tpu.matmul %44, %45, %cst_16 {dimension_numbers = #tpu.dot_dimension_numbers<[2], [2], [1], [1], [0, 0, 0, 1, 1, 1], [0], [0]>} : vector<4x16x16xbf16>, vector<4x16x16xbf16>, vector<4x16x16xf32> -> vector<4x16x16xf32>
    "tpu.trace_stop"() : () -> ()
    %c0_17 = arith.constant 0 : index
    %c0_18 = arith.constant 0 : index
    %c0_19 = arith.constant 0 : index
    %47 = vector.load %arg2[%c0_17, %c0_18, %c0_19] : memref<2x16x16xf32, #tpu.memory_space<vmem>>, vector<1x16x16xf32>
    %48 = vector.shape_cast %47 : vector<1x16x16xf32> to vector<16x16xf32>
    %49 = vector.shape_cast %48 : vector<16x16xf32> to vector<1x16x16xf32>
    %50 = vector.broadcast %49 : vector<1x16x16xf32> to vector<4x16x16xf32>
    %51 = arith.addf %46, %50 : vector<4x16x16xf32>
    %c0_20 = arith.constant 0 : index
    %c0_21 = arith.constant 0 : index
    %c0_22 = arith.constant 0 : index
    %52 = vector.load %arg3[%c0_20, %c0_21, %c0_22] : memref<4x16x16xf32, #tpu.memory_space<vmem>>, vector<4x16x16xf32>
    %53 = arith.addf %51, %52 : vector<4x16x16xf32>
    %cst_23 = arith.constant dense<0xFF800000> : vector<4x16xf32>
    %54 = vector.multi_reduction <maximumf>, %53, %cst_23 [2] : vector<4x16x16xf32> to vector<4x16xf32>
    %55 = vector.shape_cast %54 : vector<4x16xf32> to vector<4x16x1xf32>
    %56 = vector.broadcast %55 : vector<4x16x1xf32> to vector<4x16x16xf32>
    %57 = arith.subf %53, %56 : vector<4x16x16xf32>
    %58 = math.exp %57 : vector<4x16x16xf32>
    %cst_24 = arith.constant dense<0.000000e+00> : vector<4x16xf32>
    %59 = vector.multi_reduction <add>, %58, %cst_24 [2] : vector<4x16x16xf32> to vector<4x16xf32>
    %60 = vector.shape_cast %59 : vector<4x16xf32> to vector<4x16x1xf32>
    %61 = tpu.reciprocal %60 {approx = true} : vector<4x16x1xf32> -> vector<4x16x1xf32>
    %62 = vector.broadcast %61 : vector<4x16x1xf32> to vector<4x16x16xf32>
    %63 = arith.mulf %58, %62 : vector<4x16x16xf32>
    %64 = arith.truncf %63 : vector<4x16x16xf32> to vector<4x16x16xbf16>
    %65 = arith.truncf %43 : vector<4x16x16xf32> to vector<4x16x16xbf16>
    "tpu.trace_start"() <{level = 10 : i32, message = "wnm,wmd->wnd"}> : () -> ()
    %cst_25 = arith.constant dense<0.000000e+00> : vector<4x16x16xf32>
    %66 = tpu.matmul %64, %65, %cst_25 {dimension_numbers = #tpu.dot_dimension_numbers<[2], [1], [1], [2], [0, 0, 0, 1, 1, 2], [0], [0]>} : vector<4x16x16xbf16>, vector<4x16x16xbf16>, vector<4x16x16xf32> -> vector<4x16x16xf32>
    "tpu.trace_stop"() : () -> ()
    %67 = vector.shape_cast %66 : vector<4x16x16xf32> to vector<64x16xf32>
    %68 = arith.truncf %67 : vector<64x16xf32> to vector<64x16xbf16>
    %c0_26 = arith.constant 0 : index
    %c0_27 = arith.constant 0 : index
    %69 = vector.load %arg8[%c0_26, %c0_27] : memref<32x32xbf16, #tpu.memory_space<vmem>>, vector<16x32xbf16>
    %cst_28 = arith.constant dense<0.000000e+00> : vector<64x32xf32>
    %70 = tpu.matmul %68, %69, %cst_28 {dimension_numbers = #tpu.dot_dimension_numbers<[1], [0], [0], [1], [0, 0, 1, 1], [], []>} : vector<64x16xbf16>, vector<16x32xbf16>, vector<64x32xf32> -> vector<64x32xf32>
    %71 = arith.addf %40, %70 : vector<64x32xf32>
    %72 = vector.extract_strided_slice %39 {offsets = [0, 0, 16], sizes = [4, 16, 16], strides = [1, 1, 1]} : vector<4x16x96xf32> to vector<4x16x16xf32>
    %73 = vector.extract_strided_slice %39 {offsets = [0, 0, 48], sizes = [4, 16, 16], strides = [1, 1, 1]} : vector<4x16x96xf32> to vector<4x16x16xf32>
    %74 = vector.extract_strided_slice %39 {offsets = [0, 0, 80], sizes = [4, 16, 16], strides = [1, 1, 1]} : vector<4x16x96xf32> to vector<4x16x16xf32>
    %75 = arith.truncf %72 : vector<4x16x16xf32> to vector<4x16x16xbf16>
    %76 = arith.truncf %73 : vector<4x16x16xf32> to vector<4x16x16xbf16>
    "tpu.trace_start"() <{level = 10 : i32, message = "wnd,wmd->wnm"}> : () -> ()
    %cst_29 = arith.constant dense<0.000000e+00> : vector<4x16x16xf32>
    %77 = tpu.matmul %75, %76, %cst_29 {dimension_numbers = #tpu.dot_dimension_numbers<[2], [2], [1], [1], [0, 0, 0, 1, 1, 1], [0], [0]>} : vector<4x16x16xbf16>, vector<4x16x16xbf16>, vector<4x16x16xf32> -> vector<4x16x16xf32>
    "tpu.trace_stop"() : () -> ()
    %c1 = arith.constant 1 : index
    %c0_30 = arith.constant 0 : index
    %c0_31 = arith.constant 0 : index
    %78 = vector.load %arg2[%c1, %c0_30, %c0_31] : memref<2x16x16xf32, #tpu.memory_space<vmem>>, vector<1x16x16xf32>
    %79 = vector.shape_cast %78 : vector<1x16x16xf32> to vector<16x16xf32>
    %80 = vector.shape_cast %79 : vector<16x16xf32> to vector<1x16x16xf32>
    %81 = vector.broadcast %80 : vector<1x16x16xf32> to vector<4x16x16xf32>
    %82 = arith.addf %77, %81 : vector<4x16x16xf32>
    %c0_32 = arith.constant 0 : index
    %c0_33 = arith.constant 0 : index
    %c0_34 = arith.constant 0 : index
    %83 = vector.load %arg3[%c0_32, %c0_33, %c0_34] : memref<4x16x16xf32, #tpu.memory_space<vmem>>, vector<4x16x16xf32>
    %84 = arith.addf %82, %83 : vector<4x16x16xf32>
    %cst_35 = arith.constant dense<0xFF800000> : vector<4x16xf32>
    %85 = vector.multi_reduction <maximumf>, %84, %cst_35 [2] : vector<4x16x16xf32> to vector<4x16xf32>
    %86 = vector.shape_cast %85 : vector<4x16xf32> to vector<4x16x1xf32>
    %87 = vector.broadcast %86 : vector<4x16x1xf32> to vector<4x16x16xf32>
    %88 = arith.subf %84, %87 : vector<4x16x16xf32>
    %89 = math.exp %88 : vector<4x16x16xf32>
    %cst_36 = arith.constant dense<0.000000e+00> : vector<4x16xf32>
    %90 = vector.multi_reduction <add>, %89, %cst_36 [2] : vector<4x16x16xf32> to vector<4x16xf32>
    %91 = vector.shape_cast %90 : vector<4x16xf32> to vector<4x16x1xf32>
    %92 = tpu.reciprocal %91 {approx = true} : vector<4x16x1xf32> -> vector<4x16x1xf32>
    %93 = vector.broadcast %92 : vector<4x16x1xf32> to vector<4x16x16xf32>
    %94 = arith.mulf %89, %93 : vector<4x16x16xf32>
    %95 = arith.truncf %94 : vector<4x16x16xf32> to vector<4x16x16xbf16>
    %96 = arith.truncf %74 : vector<4x16x16xf32> to vector<4x16x16xbf16>
    "tpu.trace_start"() <{level = 10 : i32, message = "wnm,wmd->wnd"}> : () -> ()
    %cst_37 = arith.constant dense<0.000000e+00> : vector<4x16x16xf32>
    %97 = tpu.matmul %95, %96, %cst_37 {dimension_numbers = #tpu.dot_dimension_numbers<[2], [1], [1], [2], [0, 0, 0, 1, 1, 2], [0], [0]>} : vector<4x16x16xbf16>, vector<4x16x16xbf16>, vector<4x16x16xf32> -> vector<4x16x16xf32>
    "tpu.trace_stop"() : () -> ()
    %98 = vector.shape_cast %97 : vector<4x16x16xf32> to vector<64x16xf32>
    %99 = arith.truncf %98 : vector<64x16xf32> to vector<64x16xbf16>
    %c16 = arith.constant 16 : index
    %c0_38 = arith.constant 0 : index
    %100 = vector.load %arg8[%c16, %c0_38] : memref<32x32xbf16, #tpu.memory_space<vmem>>, vector<16x32xbf16>
    %cst_39 = arith.constant dense<0.000000e+00> : vector<64x32xf32>
    %101 = tpu.matmul %99, %100, %cst_39 {dimension_numbers = #tpu.dot_dimension_numbers<[1], [0], [0], [1], [0, 0, 1, 1], [], []>} : vector<64x16xbf16>, vector<16x32xbf16>, vector<64x32xf32> -> vector<64x32xf32>
    %102 = arith.addf %71, %101 : vector<64x32xf32>
    %c0_40 = arith.constant 0 : index
    %c0_41 = arith.constant 0 : index
    %103 = vector.load %arg9[%c0_40, %c0_41] : memref<1x32xf32, #tpu.memory_space<vmem>>, vector<1x32xf32>
    %104 = vector.shape_cast %103 : vector<1x32xf32> to vector<32xf32>
    %105 = vector.shape_cast %104 : vector<32xf32> to vector<1x32xf32>
    %106 = vector.broadcast %105 : vector<1x32xf32> to vector<64x32xf32>
    %107 = arith.addf %102, %106 : vector<64x32xf32>
    %108 = vector.shape_cast %107 : vector<64x32xf32> to vector<4x16x32xf32>
    %109 = arith.truncf %108 : vector<4x16x32xf32> to vector<4x16x32xbf16>
    %c0_42 = arith.constant 0 : index
    %c0_43 = arith.constant 0 : index
    %c0_44 = arith.constant 0 : index
    %110 = vector.load %arg10[%c0_42, %c0_43, %c0_44] : memref<4x16x32xbf16, #tpu.memory_space<vmem>>, vector<4x16x32xbf16>
    tpu.vector_store %arg10[%c0_42, %c0_43, %c0_44], %109 {strides = array<i32>} : memref<4x16x32xbf16, #tpu.memory_space<vmem>>, vector<4x16x32xbf16>,
    return
  }
  func.func @transform_0(%arg0: i32) -> (i32, i32, i32) {
    %c0_i32 = arith.constant 0 : i32
    %c0_i32_0 = arith.constant 0 : i32
    %c0_i32_1 = arith.constant 0 : i32
    return %arg0, %c0_i32, %c0_i32_0 : i32, i32, i32
  }
  func.func @transform_1(%arg0: i32) -> (i32, i32, i32) {
    %c0_i32 = arith.constant 0 : i32
    %c0_i32_0 = arith.constant 0 : i32
    %c0_i32_1 = arith.constant 0 : i32
    %c0_i32_2 = arith.constant 0 : i32
    return %c0_i32, %c0_i32_0, %c0_i32_1 : i32, i32, i32
  }
  func.func @transform_2(%arg0: i32) -> (i32, i32, i32) {
    %c0_i32 = arith.constant 0 : i32
    %c0_i32_0 = arith.constant 0 : i32
    %c0_i32_1 = arith.constant 0 : i32
    %c0_i32_2 = arith.constant 0 : i32
    return %c0_i32, %c0_i32_0, %c0_i32_1 : i32, i32, i32
  }
  func.func @transform_3(%arg0: i32) -> (i32, i32) {
    %c0_i32 = arith.constant 0 : i32
    %c0_i32_0 = arith.constant 0 : i32
    %c0_i32_1 = arith.constant 0 : i32
    return %c0_i32, %c0_i32_0 : i32, i32
  }
  func.func @transform_4(%arg0: i32) -> (i32, i32) {
    %c0_i32 = arith.constant 0 : i32
    %c0_i32_0 = arith.constant 0 : i32
    %c0_i32_1 = arith.constant 0 : i32
    return %c0_i32, %c0_i32_0 : i32, i32
  }
  func.func @transform_5(%arg0: i32) -> (i32, i32) {
    %c0_i32 = arith.constant 0 : i32
    %c0_i32_0 = arith.constant 0 : i32
    %c0_i32_1 = arith.constant 0 : i32
    return %c0_i32, %c0_i32_0 : i32, i32
  }
  func.func @transform_6(%arg0: i32) -> (i32, i32) {
    %c0_i32 = arith.constant 0 : i32
    %c0_i32_0 = arith.constant 0 : i32
    %c0_i32_1 = arith.constant 0 : i32
    return %c0_i32, %c0_i32_0 : i32, i32
  }
  func.func @transform_7(%arg0: i32) -> (i32, i32) {
    %c0_i32 = arith.constant 0 : i32
    %c0_i32_0 = arith.constant 0 : i32
    %c0_i32_1 = arith.constant 0 : i32
    return %c0_i32, %c0_i32_0 : i32, i32
  }
  func.func @transform_8(%arg0: i32) -> (i32, i32) {
    %c0_i32 = arith.constant 0 : i32
    %c0_i32_0 = arith.constant 0 : i32
    %c0_i32_1 = arith.constant 0 : i32
    return %c0_i32, %c0_i32_0 : i32, i32
  }
  func.func @transform_9(%arg0: i32) -> (i32, i32, i32) {
    %c0_i32 = arith.constant 0 : i32
    %c0_i32_0 = arith.constant 0 : i32
    %c0_i32_1 = arith.constant 0 : i32
    return %arg0, %c0_i32, %c0_i32_0 : i32, i32, i32
  }
}

</mosaic_0001>

<bundles_post_ra>
// kernel: tpu_custom_call.1
= control target key start
LH: loop header
LB: loop body
LE: loop exit
PB: predicated region body
PF: predicated region fallthrough
CT: control target
= control target key end

     0   :  { %6 = vsyncpa [#allocation3], 0  ;;  %s124_s0 = inlined_call_operand.hbm [shape: f32[8,128], index: 0, kind: input, shape index: {}]   ;;  %s125_s1 = inlined_call_operand.hbm [shape: f32[8,128], index: 1, kind: output, shape index: {}]  }
   0x1   :  { %7 = vsyncpa [#allocation4], 0  ;;  %s88_s6 = smov [#allocation2]   ;;  %s40_s10 = scalar_lea.hbm %s124_s0, 128 }
   0x2   :  { %s14_s7 = sshll.u32 %s88_s6, 4  ;;  %p41_p0 = scmp.ne.s32.totalorder %s124_s0, %s40_s10  ;;  %s15_s7 = int_to_ptr.vmem [resolvable:$true] %s14_s7 }
   0x3   :  { %p44_p1 = scmp.lt.u32.totalorder %s40_s10, %s124_s0 }
   0x5   :  { %p46_p2 = pnand %p44_p1, %p41_p0 }
   0x7   :  { %49 = shalt.err (!%p46_p2)
}
   0x8   :  { %s50_s15 = scalar_lea.vmem %s15_s7, 128  ;;  %p55_p4 = scmp.lt.s32.totalorder %s15_s7, %s15_s7 }
   0x9   :  { %p51_p3 = scmp.ne.s32.totalorder %s15_s7, %s50_s15  ;;  %p56_p5 = scmp.lt.s32.totalorder %s50_s15, %s50_s15 }
   0xb   :  { %p57_p6 = por %p56_p5, %p55_p4 }
   0xd   :  { %p58_p7 = pnand %p57_p6, %p51_p3 }
   0xf   :  { %61 = shalt.err (!%p58_p7)
}
  0x10   :  { %17 = dma.hbm_to_vmem [thread:$0]  %s124_s0, 128, %s15_s7, [#allocation3]  }
  0x11   :  { %84 = dma.done.wait [#allocation3], 128  }
  0x12   :  { %85 = vsyncadd [#allocation3], 4294967168  ;;  %s89_s18 = smov [#allocation5]   ;;  %v21_v0 = vld [vmem:[#allocation2] sm:$0xff] }
  0x13   :  { %s29_s19 = sshll.u32 %s89_s18, 4  ;;  %22 = vst [vmem:[#allocation5] sm:$0xff] %v21_v0  ;;  %s30_s19 = int_to_ptr.vmem [resolvable:$true] %s29_s19 }
  0x14   :  { %s62_s20 = scalar_lea.vmem %s30_s19, 128  ;;  %p67_p9 = scmp.lt.s32.totalorder %s30_s19, %s30_s19 }
  0x15   :  { %p63_p8 = scmp.ne.s32.totalorder %s30_s19, %s62_s20  ;;  %p68_p10 = scmp.lt.s32.totalorder %s62_s20, %s62_s20 }
  0x17   :  { %p69_p11 = por %p68_p10, %p67_p9 }
  0x19   :  { %p70_p12 = pnand %p69_p11, %p63_p8 }
  0x1b   :  { %73 = shalt.err (!%p70_p12)
}
  0x1c   :  { %s74_s23 = scalar_lea.hbm %s125_s1, 128 }
  0x1d   :  { %p75_p13 = scmp.ne.s32.totalorder %s125_s1, %s74_s23  ;;  %p78_p0 = scmp.lt.u32.totalorder %s74_s23, %s125_s1 }
  0x1f   :  { %p80_p1 = pnand %p78_p0, %p75_p13 }
  0x21   :  { %83 = shalt.err (!%p80_p1)
}
  0x22   :  { %32 = dma.vmem_to_hbm [thread:$0]  %s30_s19, 128, %s125_s1, [#allocation4]  }
  0x23   :  { %86 = dma.done.wait [#allocation4], 128  }
  0x24   :  { %87 = vsyncadd [#allocation4], 4294967168 }
  0x25   :  { %36 = vsyncpa [#allocation3], 1 }
  0x26   :  { %37 = vsyncpa [#allocation4], 1 }

// kernel: _lambda_.5
= control target key start
LH: loop header
LB: loop body
LE: loop exit
PB: predicated region body
PF: predicated region fallthrough
CT: control target
= control target key end

     0   :  { %s1380_s27 = smov 0   ;;  %s1382_s28 = smov 0   ;;  %s1643_s0 = inlined_call_operand.vmem [shape: bf16[128,32], index: 0, kind: input, shape index: {}]   ;;  %s1644_s1 = inlined_call_operand.vmem [shape: bf16[128,32], index: 1, kind: input, shape index: {}]   ;;  %s1645_s2 = inlined_call_operand.vmem [shape: f32[1,32], index: 2, kind: input, shape index: {}]   ;;  %s1646_s3 = inlined_call_operand.vmem [shape: f32[1,32], index: 3, kind: input, shape index: {}]   ;;  %s1647_s4 = inlined_call_operand.vmem [shape: bf16[32,128], index: 4, kind: input, shape index: {}]   ;;  %s1648_s5 = inlined_call_operand.vmem [shape: f32[1,128], index: 5, kind: input, shape index: {}]   ;;  %s1649_s6 = inlined_call_operand.vmem [shape: bf16[128,32], index: 6, kind: input, shape index: {}]   ;;  %s1650_s7 = inlined_call_operand.vmem [shape: f32[1,32], index: 7, kind: input, shape index: {}]   ;;  %s1651_s8 = inlined_call_operand.vmem [shape: bf16[128,32], index: 8, kind: output, shape index: {}]  }
   0x1   :  { %s1384_s29 = smov 0  }
   0x2 LB: > { %s30_s30 = sadd.s32 1, %s1328_s28  ;;  %p1070_p0 = scmp.ge.s32.totalorder %s1332_s29, 1  ;;  %s1332_s29 = sphi %s1384_s29, %s18_s29   ;;  %s1328_s28 = sphi %s1382_s28, %s1653_s28   ;;  %s1324_s27 = sphi %s1380_s27, %s1652_s27  }
   0x3   : > { %p32_p1 = scmp.ge.s32.totalorder %s30_s30, 2  ;;  %p286_p2 = scmp.lt.s32.totalorder %s1332_s29, 3 }
   0x5   : > { %s1655_s30 = smov (%p32_p1, %s30_s30), 0  ;;  %p287_p3 = pnand %p1070_p0, %p286_p2 }
   0x6   : > { %s1071_s9 = sshll.u32 (!%p287_p3), %s1324_s27, 3  ;;  %vm390_vm0 = vcmask (!%p287_p3), 261120   ;;  %vm980_vm1 = vcmask (!%p287_p3), 257024  }
   0x7   : > { %290 = sbr.rel (%p287_p3) target bundleno = 839 (0x347), region = 52  ;;  %p326_p4 = scmp.lt.s32.totalorder (!%p287_p3), %s1071_s9, 15 }
   0xe   : > { %s1657_s9 = smov (!%p326_p4, %s1071_s9), 15 }
   0xf   : > { %s1398_s10 = sshll.u32 %s1657_s9, 2 }
  0x10   : > { %s329_s13 = scalar_lea.vmem %s1643_s0, %s1398_s10  ;;  %s335_s16 = scalar_lea.vmem %s1644_s1, %s1398_s10 }
  0x11   : > { %v1114_v0 = vld [vmem:[%s329_s13] sm:$0xff]   ;;  %v1183_v2 = vld [vmem:[%s329_s13 + $0x8] sm:$0xff]   ;;  %v1184_v7 = vld [vmem:[%s329_s13 + $0x10] sm:$0xff]   ;;  %s1610_s11 = scalar_lea.vmem %s1651_s8, %s1398_s10 }
  0x12   : > { %v1130_v1 = vld [vmem:[%s335_s16] sm:$0xff]   ;;  %v1115_v3 = vunpack.c.l.bf16 %v1114_v0  ;;  %v1148_v5 = vunpack.c.h.bf16 %v1114_v0  ;;  %v1151_v6 = vunpack.c.l.bf16 %v1183_v2  ;;  %v1186_v8 = vld [vmem:[%s335_s16 + $0x8] sm:$0xff]   ;;  %v1152_v9 = vunpack.c.h.bf16 %v1183_v2  ;;  %v1187_v10 = vld [vmem:[%s335_s16 + $0x10] sm:$0xff]  }
  0x13   : > { %v1131_v4 = vunpack.c.l.bf16 %v1130_v1  ;;  %v1155_v12 = vunpack.c.l.bf16 %v1184_v7  ;;  %v1185_v13 = vld [vmem:[%s329_s13 + $0x18] sm:$0xff]   ;;  %v1164_v14 = vunpack.c.h.bf16 %v1130_v1  ;;  %v1167_v15 = vunpack.c.l.bf16 %v1186_v8 }
  0x14   : > { %v1156_v16 = vunpack.c.h.bf16 %v1184_v7  ;;  %v1168_v17 = vunpack.c.h.bf16 %v1186_v8  ;;  %v1171_v18 = vunpack.c.l.bf16 %v1187_v10  ;;  %v1188_v19 = vld [vmem:[%s335_s16 + $0x18] sm:$0xff]   ;;  %v1172_v21 = vunpack.c.h.bf16 %v1187_v10 }
  0x15   : > { %v1408_v11 = vadd.f32 %v1131_v4, %v1115_v3  ;;  %v1412_v22 = vadd.f32 %v1164_v14, %v1148_v5  ;;  %v1414_v23 = vadd.f32 %v1167_v15, %v1151_v6  ;;  %v1159_v24 = vunpack.c.l.bf16 %v1185_v13 }
  0x16   : > { %v1416_v25 = vadd.f32 %v1168_v17, %v1152_v9  ;;  %v1175_v26 = vunpack.c.l.bf16 %v1188_v19  ;;  %v1418_v27 = vadd.f32 %v1171_v18, %v1155_v12  ;;  %v1160_v30 = vunpack.c.h.bf16 %v1185_v13  ;;  %v1268_v17 = vld [vmem:[%s1647_s4] sm:$0xff]   ;;  %v1269_v18 = vld [vmem:[%s1647_s4 + $0x8] sm:$0xff]  }
  0x17   : > { %v391_v20 = vsel %vm390_vm0, %v1408_v11, 0.0  ;;  %v397_v28 = vsel %vm390_vm0, %v1414_v23, 0.0  ;;  %v394_v29 = vsel %vm390_vm0, %v1412_v22, 0.0  ;;  %v1176_v31 = vunpack.c.h.bf16 %v1188_v19  ;;  %1207 = vmatprep.subr.bf16.mxu0 %v1268_v17 }
  0x18   : > { %392 = vadd.xlane.f32.xlu0 %v391_v20  ;;  %398 = vadd.xlane.f32.xlu1 %v397_v28  ;;  %v1424_v32 = vadd.f32 %v1172_v21, %v1156_v16  ;;  %v400_v33 = vsel %vm390_vm0, %v1416_v25, 0.0  ;;  %v1428_v34 = vadd.f32 %v1175_v26, %v1159_v24  ;;  %v403_v35 = vsel %vm390_vm0, %v1418_v27, 0.0 }
  0x19   : > { %v1432_v36 = vadd.f32 %v1176_v31, %v1160_v30  ;;  %1208 = vmatpush3.bf16.msra.mxu0 %v1268_v17 }
  0x1a   : > { %v406_v37 = vsel %vm390_vm0, %v1424_v32, 0.0  ;;  %v409_v38 = vsel %vm390_vm0, %v1428_v34, 0.0  ;;  %1209 = vmatprep.subr.bf16.mxu0 %v1269_v18 }
  0x1b   : > { %v412_v39 = vsel %vm390_vm0, %v1432_v36, 0.0 }
  0x1c   : > { %395 = vadd.xlane.f32.xlu0 %v394_v29  ;;  %401 = vadd.xlane.f32.xlu1 %v400_v33 }
  0x1d   : > { %1210 = vmatpush3.bf16.msra.mxu0 %v1269_v18 }
  0x20   : > { %404 = vadd.xlane.f32.xlu0 %v403_v35  ;;  %407 = vadd.xlane.f32.xlu1 %v406_v37 }
  0x24   : > { %410 = vadd.xlane.f32.xlu0 %v409_v38  ;;  %413 = vadd.xlane.f32.xlu1 %v412_v39 }
  0xa5   : > { %v393_v40 = vpop.xlane.xlu0 %392  ;;  %v399_v42 = vpop.xlane.xlu1 %398 }
  0xa6   : > { %v416_v41 = vmul.f32 0.03125, %v393_v40  ;;  %v418_v44 = vmul.f32 0.03125, %v399_v42 }
  0xa8   : > { %v1441_v43 = vsub.f32 %v1408_v11, %v416_v41  ;;  %v1444_v46 = vsub.f32 %v1414_v23, %v418_v44 }
  0xa9   : > { %v396_v45 = vpop.xlane.xlu0 %395  ;;  %v402_v49 = vpop.xlane.xlu1 %401 }
  0xaa   : > { %v417_v47 = vmul.f32 0.03125, %v396_v45  ;;  %v432_v48 = vmul.f32 %v1441_v43, %v1441_v43  ;;  %v419_v51 = vmul.f32 0.03125, %v402_v49  ;;  %v434_v53 = vmul.f32 %v1444_v46, %v1444_v46 }
  0xac   : > { %v1449_v50 = vsub.f32 %v1412_v22, %v417_v47  ;;  %v440_v52 = vsel %vm390_vm0, %v432_v48, 0.0  ;;  %v1455_v55 = vsub.f32 %v1416_v25, %v419_v51  ;;  %v446_v57 = vsel %vm390_vm0, %v434_v53, 0.0  ;;  %v1077_v53 = vld [vmem:[%s1645_s2] ss:$0 sm:$0xff] }
  0xad   : > { %441 = vadd.xlane.f32.xlu0 %v440_v52  ;;  %v405_v54 = vpop.xlane.xlu0 %404  ;;  %v408_v59 = vpop.xlane.xlu1 %407 }
  0xae   : > { %v420_v56 = vmul.f32 0.03125, %v405_v54  ;;  %v433_v58 = vmul.f32 %v1449_v50, %v1449_v50  ;;  %v421_v61 = vmul.f32 0.03125, %v408_v59  ;;  %v435_v63 = vmul.f32 %v1455_v55, %v1455_v55 }
  0xb0   : > { %v1461_v60 = vsub.f32 %v1418_v27, %v420_v56  ;;  %v443_v62 = vsel %vm390_vm0, %v433_v58, 0.0  ;;  %v1467_v1 = vsub.f32 %v1424_v32, %v421_v61  ;;  %v449_v3 = vsel %vm390_vm0, %v435_v63, 0.0 }
  0xb1   : > { %447 = vadd.xlane.f32.xlu0 %v446_v57  ;;  %444 = vadd.xlane.f32.xlu1 %v443_v62  ;;  %v411_v0 = vpop.xlane.xlu0 %410  ;;  %v414_v5 = vpop.xlane.xlu1 %413  ;;  %v1078_v62 = vld [vmem:[%s1646_s3] ss:$0 sm:$0xff] }
  0xb2   : > { %v422_v2 = vmul.f32 0.03125, %v411_v0  ;;  %v436_v4 = vmul.f32 %v1461_v60, %v1461_v60  ;;  %v423_v7 = vmul.f32 0.03125, %v414_v5  ;;  %v437_v9 = vmul.f32 %v1467_v1, %v1467_v1 }
  0xb4   : > { %v1473_v6 = vsub.f32 %v1428_v34, %v422_v2  ;;  %v452_v8 = vsel %vm390_vm0, %v436_v4, 0.0  ;;  %v1479_v10 = vsub.f32 %v1432_v36, %v423_v7  ;;  %v455_v12 = vsel %vm390_vm0, %v437_v9, 0.0 }
  0xb5   : > { %450 = vadd.xlane.f32.xlu1 %v449_v3  ;;  %453 = vadd.xlane.f32.xlu0 %v452_v8 }
  0xb6   : > { %v438_v13 = vmul.f32 %v1473_v6, %v1473_v6  ;;  %v439_v15 = vmul.f32 %v1479_v10, %v1479_v10 }
  0xb8   : > { %v458_v14 = vsel %vm390_vm0, %v438_v13, 0.0  ;;  %v461_v16 = vsel %vm390_vm0, %v439_v15, 0.0 }
  0xb9   : > { %456 = vadd.xlane.f32.xlu1 %v455_v12  ;;  %459 = vadd.xlane.f32.xlu0 %v458_v14 }
  0xbd   : > { %462 = vadd.xlane.f32.xlu1 %v461_v16 }
 0x13a   : > { %v442_v19 = vpop.xlane.xlu0 %441 }
 0x13b   : > { %v464_v20 = vmul.f32 0.03125, %v442_v19 }
 0x13d   : > { %v472_v21 = vadd.f32 1e-05, %v464_v20 }
 0x13e   : > { %v445_v24 = vpop.xlane.xlu1 %444  ;;  %v448_v26 = vpop.xlane.xlu0 %447 }
 0x13f   : > { %1278 = vrsqrt.f32 %v472_v21  ;;  %v465_v28 = vmul.f32 0.03125, %v445_v24  ;;  %v466_v29 = vmul.f32 0.03125, %v448_v26 }
 0x141   : > { %v473_v30 = vadd.f32 1e-05, %v465_v28  ;;  %v474_v31 = vadd.f32 1e-05, %v466_v29 }
 0x142   : > { %v451_v33 = vpop.xlane.xlu1 %450  ;;  %v454_v35 = vpop.xlane.xlu0 %453 }
 0x143   : > { %1280 = vrsqrt.f32 %v473_v30  ;;  %v467_v37 = vmul.f32 0.03125, %v451_v33  ;;  %v468_v38 = vmul.f32 0.03125, %v454_v35 }
 0x144   : > { %1282 = vrsqrt.f32 %v474_v31 }
 0x145   : > { %v475_v39 = vadd.f32 1e-05, %v467_v37  ;;  %v476_v40 = vadd.f32 1e-05, %v468_v38  ;;  %v1271_v37 = vld [vmem:[%s1649_s6 + $0x8] sm:$0xff]   ;;  %v1272_v38 = vld [vmem:[%s1649_s6 + $0x10] sm:$0xff]  }
 0x146   : > { %v457_v41 = vpop.xlane.xlu1 %456  ;;  %v460_v42 = vpop.xlane.xlu0 %459 }
 0x147   : > { %1284 = vrsqrt.f32 %v475_v39  ;;  %v469_v44 = vmul.f32 0.03125, %v457_v41  ;;  %v470_v45 = vmul.f32 0.03125, %v460_v42  ;;  %v1273_v39 = vld [vmem:[%s1649_s6 + $0x18] sm:$0xff]   ;;  %v1275_v41 = vld [vmem:[%s1649_s6 + $0x28] sm:$0xff]   ;;  %v1276_v42 = vld [vmem:[%s1649_s6 + $0x30] sm:$0xff]  }
 0x148   : > { %1286 = vrsqrt.f32 %v476_v40  ;;  %v1274_v40 = vld [vmem:[%s1649_s6 + $0x20] sm:$0xff]  }
 0x149   : > { %v1279_v47 = vpop.eup %1278  ;;  %v477_v48 = vadd.f32 1e-05, %v469_v44  ;;  %v478_v49 = vadd.f32 1e-05, %v470_v45  ;;  %v1277_v44 = vld [vmem:[%s1649_s6 + $0x38] sm:$0xff]   ;;  %v1334_v45 = vmov 0.0  }
 0x14a   : > { %v488_v51 = vmul.f32 %v1279_v47, %v1441_v43  ;;  %v463_v52 = vpop.xlane.xlu1 %462  ;;  %534 = vst.msk [vmem:[#allocation3 + $0x10] sm:$0xff] %vm390_vm0, %v1334_v45  ;;  %532 = vst.msk [vmem:[#allocation3] sm:$0xff] %vm390_vm0, %v1334_v45  ;;  %v1079_v47 = vld [vmem:[%s1648_s5] ss:$0 sm:$0xff] }
 0x14b   : > { %1288 = vrsqrt.f32 %v477_v48  ;;  %v471_v54 = vmul.f32 0.03125, %v463_v52  ;;  %533 = vst.msk [vmem:[#allocation3 + $0x8] sm:$0xff] %vm390_vm0, %v1334_v45  ;;  %535 = vst.msk [vmem:[#allocation3 + $0x18] sm:$0xff] %vm390_vm0, %v1334_v45 }
 0x14c   : > { %1290 = vrsqrt.f32 %v478_v49  ;;  %v502_v59 = vmul.f32 %v1077_v53, %v488_v51  ;;  %536 = vst.msk [vmem:[#allocation3 + $0x20] sm:$0xff] %vm390_vm0, %v1334_v45  ;;  %537 = vst.msk [vmem:[#allocation3 + $0x28] sm:$0xff] %vm390_vm0, %v1334_v45 }
 0x14d   : > { %v1281_v56 = vpop.eup %1280  ;;  %v479_v57 = vadd.f32 1e-05, %v471_v54  ;;  %538 = vst.msk [vmem:[#allocation3 + $0x30] sm:$0xff] %vm390_vm0, %v1334_v45  ;;  %539 = vst.msk [vmem:[#allocation3 + $0x38] sm:$0xff] %vm390_vm0, %v1334_v45 }
 0x14e   : > { %v1283_v58 = vpop.eup %1282  ;;  %v489_v61 = vmul.f32 %v1281_v56, %v1449_v50  ;;  %v516_v3 = vadd.f32 %v1078_v62, %v502_v59 }
 0x14f   : > { %v490_v43 = vmul.f32 %v1283_v58, %v1444_v46  ;;  %1292 = vrsqrt.f32 %v479_v57 }
 0x150   : > { %v503_v63 = vmul.f32 %v1077_v53, %v489_v61 }
 0x151   : > { %v1285_v0 = vpop.eup %1284  ;;  %v504_v5 = vmul.f32 %v1077_v53, %v490_v43 }
 0x152   : > { %v1287_v2 = vpop.eup %1286  ;;  %v517_v4 = vadd.f32 %v1078_v62, %v503_v63  ;;  %v491_v7 = vmul.f32 %v1285_v0, %v1455_v55 }
 0x153   : > { %v492_v8 = vmul.f32 %v1287_v2, %v1461_v60  ;;  %v518_v14 = vadd.f32 %v1078_v62, %v504_v5 }
 0x154   : > { %v524_v9 = vpack.c.bf16 %v517_v4, %v516_v3  ;;  %v505_v12 = vmul.f32 %v1077_v53, %v491_v7 }
 0x155   : > { %v1289_v50 = vpop.eup %1288  ;;  %v506_v46 = vmul.f32 %v1077_v53, %v492_v8 }
 0x156   : > { %v1291_v13 = vpop.eup %1290  ;;  %528 = vst.msk [vmem:[#allocation2] sm:$0xff] %vm390_vm0, %v524_v9  ;;  %v519_v15 = vadd.f32 %v1078_v62, %v505_v12  ;;  %v493_v16 = vmul.f32 %v1289_v50, %v1467_v1 }
 0x157   : > { %v494_v17 = vmul.f32 %v1291_v13, %v1473_v6  ;;  %v520_v55 = vadd.f32 %v1078_v62, %v506_v46 }
 0x158   : > { %v525_v18 = vpack.c.bf16 %v519_v15, %v518_v14  ;;  %v507_v19 = vmul.f32 %v1077_v53, %v493_v16 }
 0x159   : > { %v1293_v20 = vpop.eup %1292  ;;  %v508_v21 = vmul.f32 %v1077_v53, %v494_v17 }
 0x15a   : > { %529 = vst.msk [vmem:[#allocation2 + $0x8] sm:$0xff] %vm390_vm0, %v525_v18  ;;  %v521_v60 = vadd.f32 %v1078_v62, %v507_v19  ;;  %v495_v24 = vmul.f32 %v1293_v20, %v1479_v10  ;;  %v1270_v10 = vld [vmem:[%s1649_s6] sm:$0xff]  }
 0x15b   : > { %v522_v30 = vadd.f32 %v1078_v62, %v508_v21  ;;  %1219 = vmatprep.subr.bf16.mxu1 %v1270_v10 }
 0x15c   : > { %v526_v26 = vpack.c.bf16 %v521_v60, %v520_v55  ;;  %v509_v28 = vmul.f32 %v1077_v53, %v495_v24  ;;  %1220 = vmatpush3.bf16.msra.mxu1 %v1270_v10 }
 0x15d   : > { %v540_v29 = vld [vmem:[#allocation2] sm:$0xff]  ;;  %1221 = vmatprep.subr.bf16.mxu1 %v1271_v37 }
 0x15e   : > { %530 = vst.msk [vmem:[#allocation2 + $0x10] sm:$0xff] %vm390_vm0, %v526_v26  ;;  %v523_v31 = vadd.f32 %v1078_v62, %v509_v28  ;;  %1211 = vmatprep.mubr.msk.bf16.mxu0 %vm390_vm0, %v540_v29 }
 0x160   : > { %v527_v1 = vpack.c.bf16 %v523_v31, %v522_v30  ;;  %1222 = vmatpush3.bf16.msra.mxu1 %v1271_v37 }
 0x161   : > { %v541_v6 = vld [vmem:[#allocation2 + $0x8] sm:$0xff]  ;;  %1223 = vmatprep.subr.bf16.mxu1 %v1272_v38 }
 0x162   : > { %531 = vst.msk [vmem:[#allocation2 + $0x18] sm:$0xff] %vm390_vm0, %v527_v1  ;;  %1212 = vmatmul.mubr.msk.bf16.vlgmr.msra.gmra.mrb[0].mxu0 %vm390_vm0, %v541_v6 }
 0x164   : > { %1224 = vmatpush3.bf16.msra.mxu1 %v1272_v38 }
 0x165   : > { %v542_v33 = vld [vmem:[#allocation2 + $0x10] sm:$0xff]  ;;  %1225 = vmatprep.subr.bf16.mxu1 %v1273_v39 }
 0x166   : > { %1215 = vmatprep.mubr.msk.bf16.mxu0 %vm390_vm0, %v542_v33 }
 0x168   : > { %1226 = vmatpush3.bf16.msra.mxu1 %v1273_v39 }
 0x169   : > { %v543_v35 = vld [vmem:[#allocation2 + $0x18] sm:$0xff]  ;;  %1227 = vmatprep.subr.bf16.mxu1 %v1274_v40 }
 0x16a   : > { %1216 = vmatmul.mubr.msk.bf16.gmra.mrb[4].mxu0 %vm390_vm0, %v543_v35 }
 0x16c   : > { %1228 = vmatpush3.bf16.msra.mxu1 %v1274_v40 }
 0x16d   : > { %1229 = vmatprep.subr.bf16.mxu1 %v1275_v41 }
 0x170   : > { %1230 = vmatpush3.bf16.msra.mxu1 %v1275_v41 }
 0x171   : > { %1231 = vmatprep.subr.bf16.mxu1 %v1276_v42 }
 0x174   : > { %1232 = vmatpush3.bf16.msra.mxu1 %v1276_v42 }
 0x175   : > { %1233 = vmatprep.subr.bf16.mxu1 %v1277_v44 }
 0x178   : > { %1234 = vmatpush3.bf16.msra.mxu1 %v1277_v44 }
 0x235   : > { %v1213_v48 = vpop.f32.mrb[0].mxu0 }
 0x236   : > { %v1551_v49 = vadd.f32 %v1213_v48, %v1079_v47  ;;  %v614_v51 = vpop.f32.mrb[1].mxu0 }
 0x237   : > { %v1553_v52 = vadd.f32 %v1079_v47, %v614_v51  ;;  %v1214_v53 = vpop.f32.mrb[2].mxu0 }
 0x238   : > { %v663_v54 = vmul.f32 0.044715, %v1551_v49  ;;  %v1556_v56 = vadd.f32 %v1214_v53, %v1079_v47  ;;  %v617_v57 = vpop.f32.mrb[3].mxu0 }
 0x239   : > { %v661_v58 = vmul.f32 0.044715, %v1553_v52  ;;  %v1559_v59 = vadd.f32 %v1079_v47, %v617_v57 }
 0x23a   : > { %v671_v61 = vmul.f32 %v663_v54, %v1551_v49  ;;  %v664_v62 = vmul.f32 0.044715, %v1556_v56 }
 0x23b   : > { %v662_v43 = vmul.f32 0.044715, %v1559_v59  ;;  %v669_v63 = vmul.f32 %v661_v58, %v1553_v52 }
 0x23c   : > { %v679_v0 = vmul.f32 %v671_v61, %v1551_v49  ;;  %v672_v2 = vmul.f32 %v664_v62, %v1556_v56  ;;  %v655_v61 = vmul.f32 0.5, %v1551_v49  ;;  %v656_v62 = vmul.f32 0.5, %v1556_v56 }
 0x23d   : > { %v1217_v3 = vpop.f32.mrb[4].mxu0  ;;  %v670_v4 = vmul.f32 %v662_v43, %v1559_v59  ;;  %v677_v5 = vmul.f32 %v669_v63, %v1553_v52  ;;  %v653_v63 = vmul.f32 0.5, %v1553_v52 }
 0x23e   : > { %v680_v7 = vmul.f32 %v672_v2, %v1556_v56  ;;  %v1570_v8 = vadd.f32 %v1217_v3, %v1079_v47  ;;  %v630_v9 = vpop.f32.mrb[5].mxu0  ;;  %v687_v12 = vadd.f32 %v679_v0, %v1551_v49  ;;  %v654_v0 = vmul.f32 0.5, %v1559_v59 }
 0x23f   : > { %v1573_v50 = vadd.f32 %v1079_v47, %v630_v9  ;;  %v1218_v13 = vpop.f32.mrb[6].mxu0  ;;  %v678_v14 = vmul.f32 %v670_v4, %v1559_v59  ;;  %v685_v15 = vadd.f32 %v677_v5, %v1553_v52 }
 0x240   : > { %v667_v46 = vmul.f32 0.044715, %v1570_v8  ;;  %v642_v16 = vadd.f32 %v1218_v13, %v1079_v47  ;;  %v633_v17 = vpop.f32.mrb[7].mxu0  ;;  %v688_v18 = vadd.f32 %v680_v7, %v1556_v56  ;;  %v695_v19 = vmul.f32 0.7978846, %v687_v12 }
 0x241   : > { %v665_v20 = vmul.f32 0.044715, %v1573_v50  ;;  %v634_v55 = vadd.f32 %v1079_v47, %v633_v17  ;;  %v686_v60 = vadd.f32 %v678_v14, %v1559_v59  ;;  %v693_v21 = vmul.f32 0.7978846, %v685_v15 }
 0x242   : > { %v675_v24 = vmul.f32 %v667_v46, %v1570_v8  ;;  %v668_v26 = vmul.f32 0.044715, %v642_v16  ;;  %v696_v28 = vmul.f32 0.7978846, %v688_v18  ;;  %1294 = vtanh.f32 %v695_v19 }
 0x243   : > { %v673_v29 = vmul.f32 %v665_v20, %v1573_v50  ;;  %v666_v30 = vmul.f32 0.044715, %v634_v55  ;;  %v694_v31 = vmul.f32 0.7978846, %v686_v60  ;;  %1296 = vtanh.f32 %v693_v21 }
 0x244   : > { %v683_v1 = vmul.f32 %v675_v24, %v1570_v8  ;;  %v676_v6 = vmul.f32 %v668_v26, %v642_v16  ;;  %1298 = vtanh.f32 %v696_v28  ;;  %v659_v56 = vmul.f32 0.5, %v1570_v8 }
 0x245   : > { %v681_v33 = vmul.f32 %v673_v29, %v1573_v50  ;;  %v674_v35 = vmul.f32 %v666_v30, %v634_v55  ;;  %1300 = vtanh.f32 %v694_v31  ;;  %v660_v52 = vmul.f32 0.5, %v642_v16  ;;  %v647_v30 = vld [vmem:[#allocation3 + $0x10] sm:$0xff]  ;;  %v645_v31 = vld [vmem:[#allocation3] sm:$0xff] }
 0x246   : > { %v684_v10 = vmul.f32 %v676_v6, %v642_v16  ;;  %v691_v37 = vadd.f32 %v683_v1, %v1570_v8  ;;  %v657_v59 = vmul.f32 0.5, %v1573_v50  ;;  %v658_v19 = vmul.f32 0.5, %v634_v55  ;;  %v648_v6 = vld [vmem:[#allocation3 + $0x18] sm:$0xff] }
 0x247   : > { %v682_v38 = vmul.f32 %v674_v35, %v634_v55  ;;  %v689_v39 = vadd.f32 %v681_v33, %v1573_v50 }
 0x248   : > { %v692_v40 = vadd.f32 %v684_v10, %v642_v16  ;;  %v699_v41 = vmul.f32 0.7978846, %v691_v37  ;;  %v646_v16 = vld [vmem:[#allocation3 + $0x8] sm:$0xff] }
 0x249   : > { %v690_v42 = vadd.f32 %v682_v38, %v634_v55  ;;  %v697_v44 = vmul.f32 0.7978846, %v689_v39  ;;  %v651_v38 = vld [vmem:[#allocation3 + $0x30] sm:$0xff]  ;;  %v649_v39 = vld [vmem:[#allocation3 + $0x20] sm:$0xff] }
 0x24a   : > { %v700_v45 = vmul.f32 0.7978846, %v692_v40  ;;  %1302 = vtanh.f32 %v699_v41  ;;  %v652_v41 = vld [vmem:[#allocation3 + $0x38] sm:$0xff] }
 0x24b   : > { %v698_v47 = vmul.f32 0.7978846, %v690_v42  ;;  %1304 = vtanh.f32 %v697_v44 }
 0x24c   : > { %v1295_v48 = vpop.eup %1294  ;;  %1306 = vtanh.f32 %v700_v45  ;;  %v650_v45 = vld [vmem:[#allocation3 + $0x28] sm:$0xff] }
 0x24d   : > { %v1297_v51 = vpop.eup %1296  ;;  %v711_v53 = vadd.f32 1.0, %v1295_v48  ;;  %1308 = vtanh.f32 %v698_v47  ;;  %v1094_v48 = vld [vmem:[%s1650_s7] ss:$0 sm:$0xff] }
 0x24e   : > { %v1299_v54 = vpop.eup %1298  ;;  %v709_v57 = vadd.f32 1.0, %v1297_v51 }
 0x24f   : > { %v1301_v58 = vpop.eup %1300  ;;  %v712_v43 = vadd.f32 1.0, %v1299_v54  ;;  %v719_v3 = vmul.f32 %v711_v53, %v655_v61 }
 0x250   : > { %v710_v2 = vadd.f32 1.0, %v1301_v58  ;;  %v717_v5 = vmul.f32 %v709_v57, %v653_v63 }
 0x251   : > { %v720_v4 = vmul.f32 %v712_v43, %v656_v62 }
 0x252   : > { %v718_v7 = vmul.f32 %v710_v2, %v654_v0 }
 0x253   : > { %v726_v9 = vpack.c.bf16 %v720_v4, %v719_v3 }
 0x254   : > { %v1303_v12 = vpop.eup %1302  ;;  %v725_v13 = vpack.c.bf16 %v718_v7, %v717_v5 }
 0x255   : > { %v1305_v14 = vpop.eup %1304  ;;  %v715_v15 = vadd.f32 1.0, %v1303_v12 }
 0x256   : > { %v1307_v46 = vpop.eup %1306  ;;  %1235 = vmatprep.mubr.bf16.mxu1 %v725_v13  ;;  %v713_v49 = vadd.f32 1.0, %v1305_v14 }
 0x257   : > { %v1309_v17 = vpop.eup %1308  ;;  %1236 = vmatmul.mubr.bf16.vlgmr.msra.gmra.mrb[0].mxu1 %v726_v9  ;;  %v716_v18 = vadd.f32 1.0, %v1307_v46  ;;  %v723_v60 = vmul.f32 %v715_v15, %v659_v56 }
 0x258   : > { %v714_v20 = vadd.f32 1.0, %v1309_v17  ;;  %v721_v24 = vmul.f32 %v713_v49, %v657_v59 }
 0x259   : > { %v724_v21 = vmul.f32 %v716_v18, %v660_v52 }
 0x25a   : > { %v722_v26 = vmul.f32 %v714_v20, %v658_v19 }
 0x25b   : > { %v728_v28 = vpack.c.bf16 %v724_v21, %v723_v60 }
 0x25c   : > { %v727_v29 = vpack.c.bf16 %v722_v26, %v721_v24 }
 0x25e   : > { %1239 = vmatprep.mubr.bf16.mxu1 %v727_v29 }
 0x25f   : > { %1240 = vmatmul.mubr.bf16.gmra.mrb[4].mxu1 %v728_v28 }
 0x32a   : > { %v1237_v1 = vpop.f32.mrb[0].mxu1 }
 0x32b   : > { %v860_v33 = vadd.f32 %v1237_v1, %v647_v30  ;;  %v827_v8 = vpop.f32.mrb[1].mxu1 }
 0x32c   : > { %v858_v35 = vadd.f32 %v827_v8, %v645_v31  ;;  %v1238_v10 = vpop.f32.mrb[2].mxu1 }
 0x32d   : > { %868 = vst.msk [vmem:[#allocation3 + $0x10] sm:$0xff] %vm390_vm0, %v860_v33  ;;  %v861_v50 = vadd.f32 %v1238_v10, %v648_v6  ;;  %v830_v55 = vpop.f32.mrb[3].mxu1 }
 0x32e   : > { %866 = vst.msk [vmem:[#allocation3] sm:$0xff] %vm390_vm0, %v858_v35  ;;  %v859_v37 = vadd.f32 %v830_v55, %v646_v16 }
 0x32f   : > { %869 = vst.msk [vmem:[#allocation3 + $0x18] sm:$0xff] %vm390_vm0, %v861_v50 }
 0x330   : > { %867 = vst.msk [vmem:[#allocation3 + $0x8] sm:$0xff] %vm390_vm0, %v859_v37 }
 0x332   : > { %v1241_v40 = vpop.f32.mrb[4].mxu1 }
 0x333   : > { %v864_v42 = vadd.f32 %v1241_v40, %v651_v38  ;;  %v843_v44 = vpop.f32.mrb[5].mxu1 }
 0x334   : > { %v919_v47 = vld [vmem:[#allocation3 + $0x10] sm:$0xff]  ;;  %v862_v51 = vadd.f32 %v843_v44, %v649_v39  ;;  %v1242_v53 = vpop.f32.mrb[6].mxu1 }
 0x335   : > { %v927_v54 = vadd.f32 %v919_v47, %v1414_v23  ;;  %v917_v57 = vld [vmem:[#allocation3] sm:$0xff]  ;;  %872 = vst.msk [vmem:[#allocation3 + $0x30] sm:$0xff] %vm390_vm0, %v864_v42  ;;  %v865_v58 = vadd.f32 %v1242_v53, %v652_v41  ;;  %v846_v61 = vpop.f32.mrb[7].mxu1 }
 0x336   : > { %v925_v62 = vadd.f32 %v917_v57, %v1408_v11  ;;  %v920_v43 = vld [vmem:[#allocation3 + $0x18] sm:$0xff]  ;;  %870 = vst.msk [vmem:[#allocation3 + $0x20] sm:$0xff] %vm390_vm0, %v862_v51  ;;  %v863_v63 = vadd.f32 %v846_v61, %v650_v45 }
 0x337   : > { %v942_v0 = vadd.f32 %v1094_v48, %v927_v54  ;;  %v928_v2 = vadd.f32 %v920_v43, %v1416_v25  ;;  %v918_v3 = vld [vmem:[#allocation3 + $0x8] sm:$0xff]  ;;  %873 = vst.msk [vmem:[#allocation3 + $0x38] sm:$0xff] %vm390_vm0, %v865_v58 }
 0x338   : > { %v940_v11 = vadd.f32 %v1094_v48, %v925_v62  ;;  %v926_v23 = vadd.f32 %v918_v3, %v1412_v22  ;;  %871 = vst.msk [vmem:[#allocation3 + $0x28] sm:$0xff] %vm390_vm0, %v863_v63 }
 0x339   : > { %v1107_v4 = vpack.c.bf16 %v942_v0, %v942_v0  ;;  %v943_v25 = vadd.f32 %v1094_v48, %v928_v2 }
 0x33a   : > { %v1105_v5 = vpack.c.bf16 %v940_v11, %v940_v11  ;;  %v941_v7 = vadd.f32 %v1094_v48, %v926_v23 }
 0x33b   : > { %983 = vst.msk [vmem:[%s1610_s11 + $0x8] sm:$0xf] %vm980_vm1, %v1107_v4  ;;  %v1108_v9 = vpack.c.bf16 %v943_v25, %v943_v25 }
 0x33c   : > { %981 = vst.msk [vmem:[%s1610_s11] sm:$0xf] %vm980_vm1, %v1105_v5  ;;  %v1106_v12 = vpack.c.bf16 %v941_v7, %v941_v7  ;;  %v923_v13 = vld [vmem:[#allocation3 + $0x30] sm:$0xff] }
 0x33d   : > { %984 = vst.msk [vmem:[%s1610_s11 + $0xc] sm:$0xf] %vm980_vm1, %v1108_v9  ;;  %v931_v14 = vadd.f32 %v923_v13, %v1428_v34  ;;  %v921_v22 = vld [vmem:[#allocation3 + $0x20] sm:$0xff] }
 0x33e   : > { %982 = vst.msk [vmem:[%s1610_s11 + $0x4] sm:$0xf] %vm980_vm1, %v1106_v12  ;;  %v929_v15 = vadd.f32 %v921_v22, %v1418_v27  ;;  %v924_v46 = vld [vmem:[#allocation3 + $0x38] sm:$0xff] }
 0x33f   : > { %v946_v49 = vadd.f32 %v1094_v48, %v931_v14  ;;  %v932_v17 = vadd.f32 %v924_v46, %v1432_v36  ;;  %v922_v56 = vld [vmem:[#allocation3 + $0x28] sm:$0xff] }
 0x340   : > { %v944_v52 = vadd.f32 %v1094_v48, %v929_v15  ;;  %v930_v18 = vadd.f32 %v922_v56, %v1424_v32 }
 0x341   : > { %v1111_v59 = vpack.c.bf16 %v946_v49, %v946_v49  ;;  %v947_v19 = vadd.f32 %v1094_v48, %v932_v17 }
 0x342   : > { %v1109_v20 = vpack.c.bf16 %v944_v52, %v944_v52  ;;  %v945_v34 = vadd.f32 %v1094_v48, %v930_v18 }
 0x343   : > { %987 = vst.msk [vmem:[%s1610_s11 + $0x18] sm:$0xf] %vm980_vm1, %v1111_v59  ;;  %v1112_v60 = vpack.c.bf16 %v947_v19, %v947_v19 }
 0x344   : > { %985 = vst.msk [vmem:[%s1610_s11 + $0x10] sm:$0xf] %vm980_vm1, %v1109_v20  ;;  %v1110_v21 = vpack.c.bf16 %v945_v34, %v945_v34 }
 0x345   : > { %988 = vst.msk [vmem:[%s1610_s11 + $0x1c] sm:$0xf] %vm980_vm1, %v1112_v60 }
 0x346   : > { %986 = vst.msk [vmem:[%s1610_s11 + $0x14] sm:$0xf] %vm980_vm1, %v1110_v21 }
 0x347 PF: > { %s18_s29 = sadd.s32 1, %s1332_s29   ;;  %s1652_s27 = smov %s1328_s28 }
 0x348   : > { %p15_p5 = scmp.ge.s32.totalorder %s18_s29, 4   ;;  %s1653_s28 = smov %s1655_s30 }
 0x34a   :  { %17 = sbr.rel (!%p15_p5) target bundleno = 2 (0x2), region = 93 }

// kernel: _lambda_.4
= control target key start
LH: loop header
LB: loop body
LE: loop exit
PB: predicated region body
PF: predicated region fallthrough
CT: control target
= control target key end

     0   :  { %s2268_s27 = smov 0   ;;  %s2608_s0 = inlined_call_operand.vmem [shape: bf16[8,16,32], index: 0, kind: input, shape index: {}]   ;;  %s2609_s1 = inlined_call_operand.vmem [shape: f32[2,16,16], index: 1, kind: input, shape index: {}]   ;;  %s2610_s2 = inlined_call_operand.vmem [shape: f32[1,32], index: 2, kind: input, shape index: {}]   ;;  %s2611_s3 = inlined_call_operand.vmem [shape: f32[1,32], index: 3, kind: input, shape index: {}]   ;;  %s2612_s4 = inlined_call_operand.vmem [shape: bf16[32,96], index: 4, kind: input, shape index: {}]   ;;  %s2613_s5 = inlined_call_operand.vmem [shape: f32[1,96], index: 5, kind: input, shape index: {}]   ;;  %s2614_s6 = inlined_call_operand.vmem [shape: bf16[32,32], index: 6, kind: input, shape index: {}]   ;;  %s2615_s7 = inlined_call_operand.vmem [shape: f32[1,32], index: 7, kind: input, shape index: {}]   ;;  %s2616_s8 = inlined_call_operand.vmem [shape: bf16[8,16,32], index: 8, kind: output, shape index: {}]  }
   0x1 LB: > { %s1837_s28 = sadd.s32 4294967295, %s2214_s27   ;;  %p1841_p0 = scmp.ge.s32.totalorder %s2214_s27, 1  ;;  %s2214_s27 = sphi %s2268_s27, %s18_s27  }
   0x2   : > { %p264_p1 = scmp.lt.s32.totalorder %s2214_s27, 3 }
   0x4   : > { %p265_p2 = pnand %p1841_p0, %p264_p1 }
   0x5   : > { %s1842_s29 = sshll.u32 (!%p265_p2), %s1837_s28, 2  ;;  %vm333_vm0 = vcmask (!%p265_p2), 261120   ;;  %v2124_v60 = vld [vmem:[%s2612_s4] sm:$0xff] (!%p265_p2)   ;;  %v2125_v61 = vld [vmem:[%s2612_s4 + $0x8] sm:$0xff] (!%p265_p2)   ;;  %vm2217_vm1 = vmmov (!%p265_p2), 0   ;;  %s2218_s22 = smov (!%p265_p2), 96  }
   0x6   : > { %268 = sbr.rel (%p265_p2) target bundleno = 2338 (0x922), region = 52  ;;  %p301_p3 = scmp.lt.s32.totalorder (!%p265_p2), %s1842_s29, 7  ;;  %1973 = vmatprep.subr.bf16.mxu1 (!%p265_p2), %v2124_v60  ;;  %vm580_vm2 = vcmask (!%p265_p2), 130048   ;;  %vm1770_vm3 = vcmask (!%p265_p2), 257024  }
   0x7   : > { %1974 = vmatpush3.bf16.msra.mxu1 (!%p265_p2), %v2124_v60  ;;  %s2219_s28 = smov (!%p265_p2), 64   ;;  %s2220_s9 = smov (!%p265_p2), 80  }
   0x8   : > { %1975 = vmatprep.subr.bf16.mxu1 (!%p265_p2), %v2125_v61  ;;  %s2221_s10 = smov (!%p265_p2), 112   ;;  %s2222_s15 = smov (!%p265_p2), 48  }
   0xb   : > { %1976 = vmatpush3.bf16.msra.mxu1 (!%p265_p2), %v2125_v61 }
   0xd   : > { %s2618_s29 = smov (!%p301_p3, %s1842_s29), 7 }
   0xe   : > { %s1896_s30 = sshll.u32 %s2618_s29, 3 }
   0xf   : > { %s305_s11 = scalar_lea.vmem %s2608_s0, %s1896_s30  ;;  %s312_s24 = scalar_lea.vmem %s2616_s8, %s1896_s30 }
  0x10   : > { %v1907_v0 = vld [vmem:[%s305_s11] sm:$0xff]   ;;  %v1922_v1 = vld [vmem:[%s305_s11 + $0x8] sm:$0xff]   ;;  %v1923_v6 = vld [vmem:[%s305_s11 + $0x10] sm:$0xff]  }
  0x11   : > { %v1908_v2 = vunpack.c.l.bf16 %v1907_v0  ;;  %v1912_v3 = vunpack.c.l.bf16 %v1922_v1  ;;  %v1909_v4 = vunpack.c.h.bf16 %v1907_v0  ;;  %v1913_v5 = vunpack.c.h.bf16 %v1922_v1  ;;  %v1924_v13 = vld [vmem:[%s305_s11 + $0x18] sm:$0xff]  }
  0x12   : > { %v1916_v11 = vunpack.c.l.bf16 %v1923_v6  ;;  %v1917_v12 = vunpack.c.h.bf16 %v1923_v6  ;;  %v1920_v16 = vunpack.c.l.bf16 %v1924_v13  ;;  %v1921_v17 = vunpack.c.h.bf16 %v1924_v13 }
  0x13   : > { %v334_v7 = vsel %vm333_vm0, %v1908_v2, 0.0  ;;  %v340_v8 = vsel %vm333_vm0, %v1912_v3, 0.0  ;;  %v337_v9 = vsel %vm333_vm0, %v1909_v4, 0.0  ;;  %v343_v10 = vsel %vm333_vm0, %v1913_v5, 0.0 }
  0x14   : > { %335 = vadd.xlane.f32.xlu0 %v334_v7  ;;  %341 = vadd.xlane.f32.xlu1 %v340_v8  ;;  %v346_v14 = vsel %vm333_vm0, %v1916_v11, 0.0  ;;  %v349_v15 = vsel %vm333_vm0, %v1917_v12, 0.0  ;;  %v352_v18 = vsel %vm333_vm0, %v1920_v16, 0.0  ;;  %v355_v19 = vsel %vm333_vm0, %v1921_v17, 0.0 }
  0x18   : > { %338 = vadd.xlane.f32.xlu0 %v337_v9  ;;  %344 = vadd.xlane.f32.xlu1 %v343_v10 }
  0x1c   : > { %347 = vadd.xlane.f32.xlu0 %v346_v14  ;;  %350 = vadd.xlane.f32.xlu1 %v349_v15 }
  0x20   : > { %353 = vadd.xlane.f32.xlu0 %v352_v18  ;;  %356 = vadd.xlane.f32.xlu1 %v355_v19 }
  0xa1   : > { %v336_v20 = vpop.xlane.xlu0 %335  ;;  %v342_v21 = vpop.xlane.xlu1 %341 }
  0xa2   : > { %v359_v22 = vmul.f32 0.03125, %v336_v20  ;;  %v361_v23 = vmul.f32 0.03125, %v342_v21 }
  0xa4   : > { %v2292_v24 = vsub.f32 %v1908_v2, %v359_v22  ;;  %v2294_v25 = vsub.f32 %v1912_v3, %v361_v23  ;;  %v1848_v23 = vld [vmem:[%s2610_s2] ss:$0 sm:$0xff] }
  0xa5   : > { %v339_v26 = vpop.xlane.xlu0 %338  ;;  %v345_v27 = vpop.xlane.xlu1 %344 }
  0xa6   : > { %v360_v28 = vmul.f32 0.03125, %v339_v26  ;;  %v362_v29 = vmul.f32 0.03125, %v345_v27  ;;  %v375_v30 = vmul.f32 %v2292_v24, %v2292_v24  ;;  %v377_v31 = vmul.f32 %v2294_v25, %v2294_v25 }
  0xa8   : > { %v2300_v32 = vsub.f32 %v1909_v4, %v360_v28  ;;  %v2302_v33 = vsub.f32 %v1913_v5, %v362_v29  ;;  %v383_v34 = vsel %vm333_vm0, %v375_v30, 0.0  ;;  %v389_v37 = vsel %vm333_vm0, %v377_v31, 0.0 }
  0xa9   : > { %384 = vadd.xlane.f32.xlu0 %v383_v34  ;;  %v348_v35 = vpop.xlane.xlu0 %347  ;;  %v351_v36 = vpop.xlane.xlu1 %350 }
  0xaa   : > { %v363_v38 = vmul.f32 0.03125, %v348_v35  ;;  %v364_v39 = vmul.f32 0.03125, %v351_v36  ;;  %v376_v40 = vmul.f32 %v2300_v32, %v2300_v32  ;;  %v378_v41 = vmul.f32 %v2302_v33, %v2302_v33 }
  0xac   : > { %v2310_v42 = vsub.f32 %v1916_v11, %v363_v38  ;;  %v2312_v43 = vsub.f32 %v1917_v12, %v364_v39  ;;  %v386_v44 = vsel %vm333_vm0, %v376_v40, 0.0  ;;  %v392_v47 = vsel %vm333_vm0, %v378_v41, 0.0 }
  0xad   : > { %390 = vadd.xlane.f32.xlu0 %v389_v37  ;;  %387 = vadd.xlane.f32.xlu1 %v386_v44  ;;  %v354_v45 = vpop.xlane.xlu0 %353  ;;  %v357_v46 = vpop.xlane.xlu1 %356 }
  0xae   : > { %v365_v48 = vmul.f32 0.03125, %v354_v45  ;;  %v366_v49 = vmul.f32 0.03125, %v357_v46  ;;  %v379_v50 = vmul.f32 %v2310_v42, %v2310_v42  ;;  %v380_v51 = vmul.f32 %v2312_v43, %v2312_v43 }
  0xb0   : > { %v2320_v52 = vsub.f32 %v1920_v16, %v365_v48  ;;  %v2322_v53 = vsub.f32 %v1921_v17, %v366_v49  ;;  %v395_v54 = vsel %vm333_vm0, %v379_v50, 0.0  ;;  %v398_v55 = vsel %vm333_vm0, %v380_v51, 0.0 }
  0xb1   : > { %393 = vadd.xlane.f32.xlu1 %v392_v47  ;;  %396 = vadd.xlane.f32.xlu0 %v395_v54 }
  0xb2   : > { %v381_v56 = vmul.f32 %v2320_v52, %v2320_v52  ;;  %v382_v57 = vmul.f32 %v2322_v53, %v2322_v53 }
  0xb4   : > { %v401_v58 = vsel %vm333_vm0, %v381_v56, 0.0  ;;  %v404_v59 = vsel %vm333_vm0, %v382_v57, 0.0 }
  0xb5   : > { %399 = vadd.xlane.f32.xlu1 %v398_v55  ;;  %402 = vadd.xlane.f32.xlu0 %v401_v58 }
  0xb9   : > { %405 = vadd.xlane.f32.xlu1 %v404_v59 }
 0x136   : > { %v385_v62 = vpop.xlane.xlu0 %384 }
 0x137   : > { %v407_v63 = vmul.f32 0.03125, %v385_v62  ;;  %v1850_v62 = vld [vmem:[%s2613_s5] ss:$0 sm:$0xff] }
 0x139   : > { %v415_v0 = vadd.f32 1e-05, %v407_v63 }
 0x13a   : > { %v388_v1 = vpop.xlane.xlu1 %387  ;;  %v391_v2 = vpop.xlane.xlu0 %390 }
 0x13b   : > { %2128 = vrsqrt.f32 %v415_v0  ;;  %v408_v3 = vmul.f32 0.03125, %v388_v1  ;;  %v409_v4 = vmul.f32 0.03125, %v391_v2 }
 0x13d   : > { %v416_v5 = vadd.f32 1e-05, %v408_v3  ;;  %v417_v6 = vadd.f32 1e-05, %v409_v4 }
 0x13e   : > { %v394_v7 = vpop.xlane.xlu1 %393  ;;  %v397_v8 = vpop.xlane.xlu0 %396 }
 0x13f   : > { %2130 = vrsqrt.f32 %v416_v5  ;;  %v410_v9 = vmul.f32 0.03125, %v394_v7  ;;  %v411_v10 = vmul.f32 0.03125, %v397_v8 }
 0x140   : > { %2132 = vrsqrt.f32 %v417_v6 }
 0x141   : > { %v418_v11 = vadd.f32 1e-05, %v410_v9  ;;  %v419_v12 = vadd.f32 1e-05, %v411_v10 }
 0x142   : > { %v400_v13 = vpop.xlane.xlu1 %399  ;;  %v403_v14 = vpop.xlane.xlu0 %402 }
 0x143   : > { %2134 = vrsqrt.f32 %v418_v11  ;;  %v412_v15 = vmul.f32 0.03125, %v400_v13  ;;  %v413_v16 = vmul.f32 0.03125, %v403_v14 }
 0x144   : > { %2136 = vrsqrt.f32 %v419_v12 }
 0x145   : > { %v2129_v17 = vpop.eup %2128  ;;  %v420_v18 = vadd.f32 1e-05, %v412_v15  ;;  %v421_v19 = vadd.f32 1e-05, %v413_v16 }
 0x146   : > { %v406_v20 = vpop.xlane.xlu1 %405  ;;  %v431_v21 = vmul.f32 %v2129_v17, %v2292_v24  ;;  %v1849_v24 = vld [vmem:[%s2611_s3] ss:$0 sm:$0xff] }
 0x147   : > { %2138 = vrsqrt.f32 %v420_v18  ;;  %v414_v22 = vmul.f32 0.03125, %v406_v20 }
 0x148   : > { %2140 = vrsqrt.f32 %v421_v19  ;;  %v445_v30 = vmul.f32 %v1848_v23, %v431_v21 }
 0x149   : > { %v2131_v26 = vpop.eup %2130  ;;  %v422_v27 = vadd.f32 1e-05, %v414_v22 }
 0x14a   : > { %v2133_v28 = vpop.eup %2132  ;;  %v432_v29 = vmul.f32 %v2131_v26, %v2300_v32  ;;  %v459_v38 = vadd.f32 %v1849_v24, %v445_v30  ;;  %v576_v30 = vld [vmem:[%s2609_s1 + $0x8] sm:$0xff] }
 0x14b   : > { %v433_v31 = vmul.f32 %v2133_v28, %v2294_v25  ;;  %2142 = vrsqrt.f32 %v422_v27  ;;  %v575_v28 = vld [vmem:[%s2609_s1] sm:$0xff] }
 0x14c   : > { %v446_v34 = vmul.f32 %v1848_v23, %v432_v29 }
 0x14d   : > { %v2135_v35 = vpop.eup %2134  ;;  %v447_v40 = vmul.f32 %v1848_v23, %v433_v31 }
 0x14e   : > { %v2137_v36 = vpop.eup %2136  ;;  %v434_v37 = vmul.f32 %v2135_v35, %v2302_v33  ;;  %v460_v39 = vadd.f32 %v1849_v24, %v446_v34 }
 0x14f   : > { %v435_v41 = vmul.f32 %v2137_v36, %v2310_v42  ;;  %v461_v47 = vadd.f32 %v1849_v24, %v447_v40 }
 0x150   : > { %v467_v44 = vpack.c.bf16 %v460_v39, %v459_v38  ;;  %v448_v32 = vmul.f32 %v1848_v23, %v434_v37 }
 0x151   : > { %v2139_v45 = vpop.eup %2138  ;;  %v449_v49 = vmul.f32 %v1848_v23, %v435_v41 }
 0x152   : > { %v2141_v46 = vpop.eup %2140  ;;  %v436_v25 = vmul.f32 %v2139_v45, %v2312_v43  ;;  %1977 = vmatprep.mubr.msk.bf16.mxu1 %vm333_vm0, %v467_v44  ;;  %v462_v48 = vadd.f32 %v1849_v24, %v448_v32 }
 0x153   : > { %v437_v50 = vmul.f32 %v2141_v46, %v2320_v52  ;;  %v463_v42 = vadd.f32 %v1849_v24, %v449_v49  ;;  %v2216_v52 = vmov 0.0  }
 0x154   : > { %v468_v51 = vpack.c.bf16 %v462_v48, %v461_v47  ;;  %v450_v33 = vmul.f32 %v1848_v23, %v436_v25  ;;  %1985 = vmatprep.subr.bf16.mxu1 %v2216_v52  ;;  %1997 = vmatprep.subr.bf16.mxu0 %v2216_v52 }
 0x155   : > { %v2143_v54 = vpop.eup %2142  ;;  %v451_v57 = vmul.f32 %v1848_v23, %v437_v50  ;;  %1999 = vmatprep.mubr.msk.bf16.mxu0 %vm2217_vm1, %v2216_v52 }
 0x156   : > { %v438_v55 = vmul.f32 %v2143_v54, %v2322_v53  ;;  %1978 = vmatmul.mubr.msk.bf16.vlgmr.msra.gmra.mrb[0].mxu1 %vm333_vm0, %v468_v51  ;;  %v464_v56 = vadd.f32 %v1849_v24, %v450_v33 }
 0x157   : > { %v465_v43 = vadd.f32 %v1849_v24, %v451_v57 }
 0x158   : > { %v469_v58 = vpack.c.bf16 %v464_v56, %v463_v42  ;;  %v452_v59 = vmul.f32 %v1848_v23, %v438_v55 }
 0x15a   : > { %1981 = vmatprep.mubr.msk.bf16.mxu1 %vm333_vm0, %v469_v58  ;;  %v466_v60 = vadd.f32 %v1849_v24, %v452_v59 }
 0x15c   : > { %v470_v61 = vpack.c.bf16 %v466_v60, %v465_v43 }
 0x15e   : > { %1982 = vmatmul.mubr.msk.bf16.gmra.mrb[4].mxu1 %vm333_vm0, %v470_v61 }
 0x15f   : > { %1987 = vmatprep.mubr.msk.bf16.mxu1 %vm2217_vm1, %v2216_v52 }
 0x229   : > { %v1979_v53 = vpop.f32.mrb[0].mxu1 }
 0x22a   : > { %v540_v63 = vpop.f32.mrb[1].mxu1  ;;  %v549_v1 = vadd.f32 %v1979_v53, %v1850_v62 }
 0x22b   : > { %v1980_v0 = vpop.f32.mrb[2].mxu1  ;;  %v541_v4 = vadd.f32 %v1850_v62, %v540_v63 }
 0x22c   : > { %v552_v2 = vadd.f32 %v1980_v0, %v1850_v62  ;;  %v543_v3 = vpop.f32.mrb[3].mxu1 }
 0x22d   : > { %v544_v5 = vadd.f32 %v1850_v62, %v543_v3 }
 0x22e   : > { %v2365_v6 = vpack.c.bf16 %v552_v2, %v549_v1 }
 0x22f   : > { %v2367_v7 = vpack.c.bf16 %v544_v5, %v541_v4 }
 0x230   : > { %629 = vrot.lane.b32.xlu1 %v2365_v6, %s2218_s22 }
 0x231   : > { %578 = vrot.lane.b32.xlu0 %v2367_v7, %s2218_s22  ;;  %v1983_v8 = vpop.f32.mrb[4].mxu1 }
 0x232   : > { %v556_v9 = vpop.f32.mrb[5].mxu1  ;;  %v565_v11 = vadd.f32 %v1983_v8, %v1850_v62 }
 0x233   : > { %v1984_v10 = vpop.f32.mrb[6].mxu1  ;;  %v557_v14 = vadd.f32 %v1850_v62, %v556_v9 }
 0x234   : > { %v568_v12 = vadd.f32 %v1984_v10, %v1850_v62  ;;  %v559_v13 = vpop.f32.mrb[7].mxu1 }
 0x235   : > { %v560_v15 = vadd.f32 %v1850_v62, %v559_v13 }
 0x236   : > { %v2371_v16 = vpack.c.bf16 %v568_v12, %v565_v11 }
 0x237   : > { %v2373_v17 = vpack.c.bf16 %v560_v15, %v557_v14 }
 0x239   : > { %679 = vrot.lane.b32.xlu1 %v2373_v17, %s2218_s22 }
 0x23d   : > { %729 = vrot.lane.b32.xlu1 %v2371_v16, %s2218_s22 }
 0x2a2   : > { %v630_v20 = vpop.permute.xlu1 %629 }
 0x2a3   : > { %v579_v18 = vpop.permute.xlu0 %578  ;;  %v635_v22 = vsel %vm580_vm2, %v630_v20, 0 }
 0x2a4   : > { %v585_v19 = vsel %vm580_vm2, %v579_v18, 0 }
 0x2a5   : > { %1986 = vmatpush3.bf16.xpose.msra.mxu1 %v585_v19 }
 0x2a6   : > { %1991 = vmatprep.subr.bf16.mxu1 %v2216_v52 }
 0x2ab   : > { %v680_v21 = vpop.permute.xlu1 %679 }
 0x2ac   : > { %1988 = vmatmul.mubr.msk.bf16.vlgmr.msra.gmra.mrb[8].mxu1 %vm580_vm2, %v2367_v7  ;;  %v685_v23 = vsel %vm580_vm2, %v680_v21, 0 }
 0x2ad   : > { %1992 = vmatpush3.bf16.xpose.msra.mxu1 %v635_v22  ;;  %1998 = vmatpush3.bf16.xpose.msra.mxu0 %v685_v23 }
 0x2ae   : > { %1993 = vmatprep.mubr.msk.bf16.mxu1 %vm2217_vm1, %v2216_v52  ;;  %2003 = vmatprep.subr.bf16.mxu1 %v2216_v52 }
 0x2af   : > { %2009 = vmatprep.subr.bf16.mxu0 %v2216_v52  ;;  %v730_v26 = vpop.permute.xlu1 %729 }
 0x2b0   : > { %v735_v27 = vsel %vm580_vm2, %v730_v26, 0 }
 0x2b4   : > { %1994 = vmatmul.mubr.msk.bf16.vlgmr.msra.gmra.mrb[12].mxu1 %vm580_vm2, %v2365_v6  ;;  %2000 = vmatmul.mubr.msk.bf16.vlgmr.msra.gmra.mrb[0].mxu0 %vm580_vm2, %v2373_v17 }
 0x2b5   : > { %2004 = vmatpush3.bf16.xpose.msra.mxu1 %v735_v27  ;;  %2005 = vmatprep.mubr.msk.bf16.mxu1 %vm2217_vm1, %v2216_v52 }
 0x2b6   : > { %2015 = vmatprep.subr.bf16.mxu1 %v2216_v52  ;;  %2011 = vmatprep.mubr.msk.bf16.mxu0 %vm2217_vm1, %v2216_v52 }
 0x2bc   : > { %2006 = vmatmul.mubr.msk.bf16.vlgmr.msra.gmra.mrb[16].mxu1 %vm580_vm2, %v2371_v16 }
 0x2bd   : > { %2017 = vmatprep.mubr.msk.bf16.mxu1 %vm2217_vm1, %v2216_v52 }
 0x37f   : > { %v621_v29 = vpop.f32.mrb[8].mxu1 }
 0x380   : > { %v622_v31 = vadd.f32 %v621_v29, %v575_v28  ;;  %v1989_v24 = vpop.f32.mrb[9].mxu1 }
 0x381   : > { %v624_v34 = vpop.f32.mrb[10].mxu1 }
 0x382   : > { %v625_v35 = vadd.f32 %v624_v34, %v576_v30  ;;  %v1990_v36 = vpop.f32.mrb[11].mxu1  ;;  %v778_v37 = vsel %vm580_vm2, %v622_v31, -inf }
 0x383   : > { %779 = vmax.xlane.f32.xlu0 %v778_v37 }
 0x384   : > { %v781_v38 = vsel %vm580_vm2, %v625_v35, -inf }
 0x385   : > { %782 = vmax.xlane.f32.xlu1 %v781_v38 }
 0x387   : > { %v671_v39 = vpop.f32.mrb[12].mxu1  ;;  %v721_v40 = vpop.f32.mrb[0].mxu0 }
 0x388   : > { %v672_v41 = vadd.f32 %v671_v39, %v575_v28  ;;  %v1995_v44 = vpop.f32.mrb[13].mxu1  ;;  %v2001_v32 = vpop.f32.mrb[1].mxu0  ;;  %v722_v33 = vadd.f32 %v721_v40, %v575_v28 }
 0x389   : > { %v674_v45 = vpop.f32.mrb[14].mxu1  ;;  %v724_v46 = vpop.f32.mrb[2].mxu0 }
 0x38a   : > { %v675_v25 = vadd.f32 %v674_v45, %v576_v30  ;;  %v725_v47 = vadd.f32 %v724_v46, %v576_v30  ;;  %v1996_v48 = vpop.f32.mrb[15].mxu1  ;;  %v2002_v49 = vpop.f32.mrb[3].mxu0  ;;  %v784_v50 = vsel %vm580_vm2, %v672_v41, -inf  ;;  %v790_v43 = vsel %vm580_vm2, %v722_v33, -inf }
 0x38b   : > { %785 = vmax.xlane.f32.xlu0 %v784_v50 }
 0x38c   : > { %v793_v51 = vsel %vm580_vm2, %v725_v47, -inf  ;;  %v787_v54 = vsel %vm580_vm2, %v675_v25, -inf }
 0x38d   : > { %794 = vmax.xlane.f32.xlu1 %v793_v51 }
 0x38f   : > { %788 = vmax.xlane.f32.xlu0 %v787_v54  ;;  %v771_v55 = vpop.f32.mrb[16].mxu1 }
 0x390   : > { %v2007_v42 = vpop.f32.mrb[17].mxu1  ;;  %v772_v57 = vadd.f32 %v771_v55, %v575_v28 }
 0x391   : > { %v774_v56 = vpop.f32.mrb[18].mxu1 }
 0x392   : > { %v2412_v58 = vadd.f32 %v774_v56, %v576_v30  ;;  %v2008_v59 = vpop.f32.mrb[19].mxu1  ;;  %v796_v60 = vsel %vm580_vm2, %v772_v57, -inf }
 0x393   : > { %791 = vmax.xlane.f32.xlu0 %v790_v43 }
 0x394   : > { %v799_v61 = vsel %vm580_vm2, %v2412_v58, -inf }
 0x397   : > { %797 = vmax.xlane.f32.xlu0 %v796_v60 }
 0x39e   : > { %917 = vrot.lane.b32.xlu1 %v2365_v6, %s2219_s28 }
 0x3a2   : > { %964 = vrot.lane.b32.xlu1 %v2373_v17, %s2219_s28 }
 0x3ad   : > { %870 = vrot.lane.b32.xlu0 %v2367_v7, %s2219_s28 }
 0x3c6   : > { %800 = vmax.xlane.f32.xlu1 %v799_v61 }
 0x3d7   : > { %1011 = vrot.lane.b32.xlu1 %v2371_v16, %s2219_s28 }
 0x410   : > { %v780_v53 = vpop.xlane.xlu0 %779 }
 0x411   : > { %v802_v62 = vsub.f32 %v622_v31, %v780_v53 }
 0x412   : > { %v783_v63 = vpop.xlane.xlu1 %782 }
 0x413   : > { %v810_v0 = vmul.f32 1.442695, %v802_v62  ;;  %v803_v1 = vsub.f32 %v625_v35, %v783_v63 }
 0x415   : > { %2144 = vpow2.f32 %v810_v0  ;;  %v812_v2 = vmul.f32 1.442695, %v803_v1 }
 0x417   : > { %2146 = vpow2.f32 %v812_v2 }
 0x418   : > { %v786_v3 = vpop.xlane.xlu0 %785 }
 0x419   : > { %v804_v4 = vsub.f32 %v672_v41, %v786_v3 }
 0x41a   : > { %v795_v5 = vpop.xlane.xlu1 %794 }
 0x41b   : > { %v814_v8 = vmul.f32 1.442695, %v804_v4  ;;  %v807_v9 = vsub.f32 %v725_v47, %v795_v5 }
 0x41c   : > { %v789_v10 = vpop.xlane.xlu0 %788 }
 0x41d   : > { %2148 = vpow2.f32 %v814_v8  ;;  %v805_v11 = vsub.f32 %v675_v25, %v789_v10  ;;  %v820_v14 = vmul.f32 1.442695, %v807_v9 }
 0x41e   : > { %v918_v12 = vpop.permute.xlu1 %917 }
 0x41f   : > { %v2422_v13 = vpop.eup %2144  ;;  %v816_v15 = vmul.f32 1.442695, %v805_v11  ;;  %2016 = vmatpush3.bf16.msra.mxu1 %v918_v12 }
 0x420   : > { %v792_v18 = vpop.xlane.xlu0 %791  ;;  %v826_v19 = vsel %vm580_vm2, %v2422_v13, 0.0  ;;  %2027 = vmatprep.subr.bf16.mxu1 %v2216_v52 }
 0x421   : > { %v2147_v20 = vpop.eup %2146  ;;  %2150 = vpow2.f32 %v816_v15  ;;  %v806_v21 = vsub.f32 %v722_v33, %v792_v18  ;;  %827 = vadd.xlane.f32.xlu0 %v826_v19 }
 0x422   : > { %v829_v22 = vsel %vm580_vm2, %v2147_v20, 0.0  ;;  %2152 = vpow2.f32 %v820_v14  ;;  %v965_v41 = vpop.permute.xlu1 %964 }
 0x423   : > { %v818_v23 = vmul.f32 1.442695, %v806_v21  ;;  %830 = vadd.xlane.f32.xlu1 %v829_v22 }
 0x424   : > { %v798_v26 = vpop.xlane.xlu0 %797 }
 0x425   : > { %2154 = vpow2.f32 %v818_v23  ;;  %v808_v27 = vsub.f32 %v772_v57, %v798_v26 }
 0x427   : > { %v2149_v28 = vpop.eup %2148  ;;  %v822_v29 = vmul.f32 1.442695, %v808_v27 }
 0x428   : > { %v871_v30 = vpop.permute.xlu0 %870  ;;  %v832_v31 = vsel %vm580_vm2, %v2149_v28, 0.0 }
 0x429   : > { %2156 = vpow2.f32 %v822_v29  ;;  %833 = vadd.xlane.f32.xlu0 %v832_v31  ;;  %2010 = vmatpush3.bf16.msra.mxu0 %v871_v30 }
 0x42a   : > { %2021 = vmatprep.subr.bf16.mxu0 %v2216_v52 }
 0x42b   : > { %v2151_v24 = vpop.eup %2150 }
 0x42c   : > { %v835_v34 = vsel %vm580_vm2, %v2151_v24, 0.0  ;;  %v2153_v35 = vpop.eup %2152 }
 0x42d   : > { %836 = vadd.xlane.f32.xlu1 %v835_v34  ;;  %v841_v38 = vsel %vm580_vm2, %v2153_v35, 0.0 }
 0x42f   : > { %v2155_v36 = vpop.eup %2154 }
 0x430   : > { %v838_v37 = vsel %vm580_vm2, %v2155_v36, 0.0 }
 0x431   : > { %839 = vadd.xlane.f32.xlu0 %v838_v37  ;;  %842 = vadd.xlane.f32.xlu1 %v841_v38 }
 0x433   : > { %v2433_v39 = vpop.eup %2156 }
 0x434   : > { %v844_v40 = vsel %vm580_vm2, %v2433_v39, 0.0 }
 0x435   : > { %845 = vadd.xlane.f32.xlu0 %v844_v40 }
 0x442   : > { %1120 = vrot.lane.b32.xlu1 %v2365_v6, %s2220_s9 }
 0x44b   : > { %1069 = vrot.lane.b32.xlu0 %v2367_v7, %s2220_s9 }
 0x44f   : > { %1067 = vrot.lane.b32.xlu0 %v2367_v7, %s2221_s10 }
 0x453   : > { %1118 = vrot.lane.b32.xlu0 %v2365_v6, %s2221_s10  ;;  %v801_v44 = vpop.xlane.xlu1 %800 }
 0x454   : > { %v809_v32 = vsub.f32 %v2412_v58, %v801_v44 }
 0x456   : > { %v824_v45 = vmul.f32 1.442695, %v809_v32 }
 0x457   : > { %1169 = vrot.lane.b32.xlu0 %v2373_v17, %s2221_s10  ;;  %v1012_v47 = vpop.permute.xlu1 %1011 }
 0x458   : > { %2158 = vpow2.f32 %v824_v45  ;;  %v1865_v45 = vld [vmem:[%s2609_s1 + $0x10] sm:$0xff] }
 0x462   : > { %v2443_v46 = vpop.eup %2158 }
 0x463   : > { %v847_v25 = vsel %vm580_vm2, %v2443_v46, 0.0 }
 0x466   : > { %848 = vadd.xlane.f32.xlu1 %v847_v25  ;;  %v1866_v25 = vld [vmem:[%s2609_s1 + $0x18] sm:$0xff] }
 0x477   : > { %1171 = vrot.lane.b32.xlu1 %v2373_v17, %s2220_s9 }
 0x47b   : > { %1222 = vrot.lane.b32.xlu1 %v2371_v16, %s2220_s9 }
 0x47f   : > { %1220 = vrot.lane.b32.xlu1 %v2371_v16, %s2221_s10 }
 0x4ae   : > { %v828_v48 = vpop.xlane.xlu0 %827 }
 0x4af   : > { %2160 = vrcp.f32 %v828_v48 }
 0x4b0   : > { %v831_v49 = vpop.xlane.xlu1 %830 }
 0x4b1   : > { %2162 = vrcp.f32 %v831_v49 }
 0x4b6   : > { %v834_v50 = vpop.xlane.xlu0 %833 }
 0x4b7   : > { %2164 = vrcp.f32 %v834_v50 }
 0x4b9   : > { %v2161_v51 = vpop.eup %2160 }
 0x4ba   : > { %v837_v33 = vpop.xlane.xlu1 %836  ;;  %v858_v55 = vmul.f32 %v2161_v51, %v2422_v13 }
 0x4bb   : > { %v2163_v54 = vpop.eup %2162  ;;  %2166 = vrcp.f32 %v837_v33 }
 0x4bc   : > { %v859_v42 = vmul.f32 %v2163_v54, %v2147_v20 }
 0x4be   : > { %v840_v56 = vpop.xlane.xlu0 %839  ;;  %v843_v57 = vpop.xlane.xlu1 %842  ;;  %v866_v58 = vpack.c.bf16 %v859_v42, %v858_v55 }
 0x4bf   : > { %2168 = vrcp.f32 %v840_v56 }
 0x4c0   : > { %2170 = vrcp.f32 %v843_v57  ;;  %2012 = vmatmul.mubr.msk.bf16.vlgmr.msra.gmra.mrb[4].mxu0 %vm580_vm2, %v866_v58 }
 0x4c1   : > { %2022 = vmatpush3.bf16.msra.mxu0 %v965_v41  ;;  %2023 = vmatprep.mubr.msk.bf16.mxu0 %vm2217_vm1, %v2216_v52  ;;  %v2165_v59 = vpop.eup %2164 }
 0x4c2   : > { %2033 = vmatprep.subr.bf16.mxu0 %v2216_v52  ;;  %v860_v60 = vmul.f32 %v2165_v59, %v2149_v28  ;;  %v846_v53 = vpop.xlane.xlu0 %845  ;;  %v1121_v9 = vpop.permute.xlu1 %1120 }
 0x4c3   : > { %2172 = vrcp.f32 %v846_v53  ;;  %v1126_v22 = vsel %vm580_vm2, %v1121_v9, 0 }
 0x4c5   : > { %v2167_v43 = vpop.eup %2166 }
 0x4c6   : > { %v861_v61 = vmul.f32 %v2167_v43, %v2151_v24  ;;  %v1070_v3 = vpop.permute.xlu0 %1069 }
 0x4c7   : > { %v1075_v5 = vsel %vm580_vm2, %v1070_v3, 0 }
 0x4c8   : > { %v867_v62 = vpack.c.bf16 %v861_v61, %v860_v60 }
 0x4c9   : > { %v2169_v63 = vpop.eup %2168 }
 0x4ca   : > { %v2171_v0 = vpop.eup %2170  ;;  %v862_v1 = vmul.f32 %v2169_v63, %v2155_v36  ;;  %2018 = vmatmul.mubr.msk.bf16.vlgmr.msra.gmra.mrb[20].mxu1 %vm580_vm2, %v867_v62  ;;  %v1068_v8 = vpop.permute.xlu0 %1067 }
 0x4cb   : > { %v863_v2 = vmul.f32 %v2171_v0, %v2153_v35  ;;  %2028 = vmatpush3.bf16.msra.mxu1 %v1012_v47  ;;  %2029 = vmatprep.mubr.msk.bf16.mxu1 %vm2217_vm1, %v2216_v52 }
 0x4cc   : > { %2039 = vmatprep.subr.bf16.mxu1 %v2216_v52 }
 0x4cd   : > { %v868_v4 = vpack.c.bf16 %v863_v2, %v862_v1  ;;  %v2173_v14 = vpop.eup %2172 }
 0x4ce   : > { %v1119_v13 = vpop.permute.xlu0 %1118  ;;  %v864_v18 = vmul.f32 %v2173_v14, %v2433_v39 }
 0x4cf   : > { %2024 = vmatmul.mubr.msk.bf16.vlgmr.msra.gmra.mrb[8].mxu0 %vm580_vm2, %v868_v4 }
 0x4d0   : > { %2034 = vmatpush3.bf16.xpose.msra.mxu0 %v1075_v5  ;;  %2035 = vmatprep.mubr.msk.bf16.mxu0 %vm2217_vm1, %v2216_v52 }
 0x4d1   : > { %2045 = vmatprep.subr.bf16.mxu0 %v2216_v52 }
 0x4d2   : > { %v1170_v19 = vpop.permute.xlu0 %1169 }
 0x4d7   : > { %2036 = vmatmul.mubr.msk.bf16.vlgmr.msra.gmra.mrb[12].mxu0 %vm580_vm2, %v1068_v8 }
 0x4d8   : > { %2047 = vmatprep.mubr.msk.bf16.mxu0 %vm2217_vm1, %v2216_v52 }
 0x4f3   : > { %v849_v10 = vpop.xlane.xlu1 %848 }
 0x4f4   : > { %2174 = vrcp.f32 %v849_v10 }
 0x4f7   : > { %v1172_v11 = vpop.permute.xlu1 %1171 }
 0x4f8   : > { %v1177_v12 = vsel %vm580_vm2, %v1172_v11, 0 }
 0x4f9   : > { %2046 = vmatpush3.bf16.xpose.msra.mxu0 %v1177_v12 }
 0x4fa   : > { %2057 = vmatprep.subr.bf16.mxu0 %v2216_v52 }
 0x4fb   : > { %v1223_v23 = vpop.permute.xlu1 %1222 }
 0x4fc   : > { %v1228_v26 = vsel %vm580_vm2, %v1223_v23, 0 }
 0x4fe   : > { %v2175_v15 = vpop.eup %2174 }
 0x4ff   : > { %v865_v20 = vmul.f32 %v2175_v15, %v2443_v46  ;;  %v1221_v27 = vpop.permute.xlu1 %1220 }
 0x500   : > { %2048 = vmatmul.mubr.msk.bf16.vlgmr.msra.gmra.mrb[16].mxu0 %vm580_vm2, %v1170_v19 }
 0x501   : > { %v869_v21 = vpack.c.bf16 %v865_v20, %v864_v18  ;;  %2059 = vmatprep.mubr.msk.bf16.mxu0 %vm2217_vm1, %v2216_v52 }
 0x503   : > { %2030 = vmatmul.mubr.msk.bf16.vlgmr.msra.gmra.mrb[24].mxu1 %vm580_vm2, %v869_v21 }
 0x504   : > { %2040 = vmatpush3.bf16.xpose.msra.mxu1 %v1126_v22  ;;  %2041 = vmatprep.mubr.msk.bf16.mxu1 %vm2217_vm1, %v2216_v52 }
 0x505   : > { %2051 = vmatprep.subr.bf16.mxu1 %v2216_v52 }
 0x50b   : > { %2042 = vmatmul.mubr.msk.bf16.vlgmr.msra.gmra.mrb[28].mxu1 %vm580_vm2, %v1119_v13 }
 0x50c   : > { %2052 = vmatpush3.bf16.xpose.msra.mxu1 %v1228_v26  ;;  %2053 = vmatprep.mubr.msk.bf16.mxu1 %vm2217_vm1, %v2216_v52 }
 0x50d   : > { %2063 = vmatprep.subr.bf16.mxu1 %v2216_v52 }
 0x513   : > { %2054 = vmatmul.mubr.msk.bf16.vlgmr.msra.gmra.mrb[32].mxu1 %vm580_vm2, %v1221_v27 }
 0x514   : > { %2065 = vmatprep.mubr.msk.bf16.mxu1 %vm2217_vm1, %v2216_v52 }
 0x593   : > { %v2487_v28 = vpop.f32.mrb[4].mxu0 }
 0x594   : > { %v2013_v29 = vpop.f32.mrb[5].mxu0 }
 0x595   : > { %v2489_v30 = vpop.f32.mrb[6].mxu0 }
 0x596   : > { %v1058_v31 = vpack.c.bf16 %v2489_v30, %v2487_v28  ;;  %v2014_v24 = vpop.f32.mrb[7].mxu0  ;;  %v1885_v28 = vld [vmem:[%s2615_s7] ss:$0 sm:$0xff] }
 0x59d   : > { %v2493_v34 = vpop.f32.mrb[20].mxu1 }
 0x59e   : > { %v2019_v35 = vpop.f32.mrb[21].mxu1 }
 0x59f   : > { %v2495_v36 = vpop.f32.mrb[22].mxu1 }
 0x5a0   : > { %v1059_v37 = vpack.c.bf16 %v2495_v36, %v2493_v34  ;;  %v2020_v38 = vpop.f32.mrb[23].mxu1 }
 0x5a2   : > { %v2499_v39 = vpop.f32.mrb[8].mxu0 }
 0x5a3   : > { %v2025_v40 = vpop.f32.mrb[9].mxu0 }
 0x5a4   : > { %v2501_v41 = vpop.f32.mrb[10].mxu0 }
 0x5a5   : > { %v1060_v44 = vpack.c.bf16 %v2501_v41, %v2499_v39  ;;  %v2026_v32 = vpop.f32.mrb[11].mxu0 }
 0x5aa   : > { %v1111_v46 = vpop.f32.mrb[12].mxu0 }
 0x5ab   : > { %v1112_v47 = vadd.f32 %v1865_v45, %v1111_v46  ;;  %v2037_v48 = vpop.f32.mrb[13].mxu0 }
 0x5ac   : > { %v1114_v49 = vpop.f32.mrb[14].mxu0 }
 0x5ad   : > { %v1115_v50 = vadd.f32 %v1866_v25, %v1114_v49  ;;  %v2038_v51 = vpop.f32.mrb[15].mxu0  ;;  %v1271_v33 = vsel %vm580_vm2, %v1112_v47, -inf }
 0x5ae   : > { %1272 = vmax.xlane.f32.xlu0 %v1271_v33 }
 0x5af   : > { %v1274_v54 = vsel %vm580_vm2, %v1115_v50, -inf }
 0x5b0   : > { %1275 = vmax.xlane.f32.xlu1 %v1274_v54 }
 0x5d3   : > { %v1213_v55 = vpop.f32.mrb[16].mxu0 }
 0x5d4   : > { %v2049_v42 = vpop.f32.mrb[17].mxu0  ;;  %v1214_v8 = vadd.f32 %v1865_v45, %v1213_v55 }
 0x5d5   : > { %v1216_v56 = vpop.f32.mrb[18].mxu0 }
 0x5d6   : > { %v1217_v57 = vadd.f32 %v1866_v25, %v1216_v56  ;;  %v2513_v58 = vpop.f32.mrb[24].mxu1  ;;  %v2050_v59 = vpop.f32.mrb[19].mxu0  ;;  %v1283_v18 = vsel %vm580_vm2, %v1214_v8, -inf }
 0x5d7   : > { %v2031_v43 = vpop.f32.mrb[25].mxu1 }
 0x5d8   : > { %v2515_v60 = vpop.f32.mrb[26].mxu1  ;;  %v1286_v61 = vsel %vm580_vm2, %v1217_v57, -inf }
 0x5d9   : > { %v1061_v53 = vpack.c.bf16 %v2515_v60, %v2513_v58  ;;  %1287 = vmax.xlane.f32.xlu1 %v1286_v61  ;;  %v2032_v62 = vpop.f32.mrb[27].mxu1 }
 0x5de   : > { %v1162_v63 = vpop.f32.mrb[28].mxu1 }
 0x5df   : > { %v1163_v0 = vadd.f32 %v1865_v45, %v1162_v63  ;;  %v2043_v1 = vpop.f32.mrb[29].mxu1 }
 0x5e0   : > { %v1165_v2 = vpop.f32.mrb[30].mxu1 }
 0x5e1   : > { %v1166_v3 = vadd.f32 %v1866_v25, %v1165_v2  ;;  %v2044_v4 = vpop.f32.mrb[31].mxu1  ;;  %v1277_v5 = vsel %vm580_vm2, %v1163_v0, -inf }
 0x5e2   : > { %1278 = vmax.xlane.f32.xlu0 %v1277_v5 }
 0x5e3   : > { %v1280_v9 = vsel %vm580_vm2, %v1166_v3, -inf }
 0x5e6   : > { %1281 = vmax.xlane.f32.xlu0 %v1280_v9  ;;  %v1264_v10 = vpop.f32.mrb[32].mxu1 }
 0x5e7   : > { %v1265_v11 = vadd.f32 %v1865_v45, %v1264_v10  ;;  %v2055_v12 = vpop.f32.mrb[33].mxu1 }
 0x5e8   : > { %v1267_v13 = vpop.f32.mrb[34].mxu1 }
 0x5e9   : > { %v2522_v14 = vadd.f32 %v1866_v25, %v1267_v13  ;;  %v2056_v15 = vpop.f32.mrb[35].mxu1  ;;  %v1289_v20 = vsel %vm580_vm2, %v1265_v11, -inf }
 0x5ea   : > { %1284 = vmax.xlane.f32.xlu0 %v1283_v18 }
 0x5eb   : > { %v1292_v19 = vsel %vm580_vm2, %v2522_v14, -inf }
 0x5ec   : > { %1293 = vmax.xlane.f32.xlu1 %v1292_v19 }
 0x5ee   : > { %1290 = vmax.xlane.f32.xlu0 %v1289_v20 }
 0x63b   : > { %v1273_v21 = vpop.xlane.xlu0 %1272 }
 0x63c   : > { %v1295_v22 = vsub.f32 %v1112_v47, %v1273_v21 }
 0x63d   : > { %v1276_v23 = vpop.xlane.xlu1 %1275 }
 0x63e   : > { %v1303_v26 = vmul.f32 1.442695, %v1295_v22  ;;  %v1296_v27 = vsub.f32 %v1115_v50, %v1276_v23 }
 0x640   : > { %2176 = vpow2.f32 %v1303_v26  ;;  %v1305_v29 = vmul.f32 1.442695, %v1296_v27 }
 0x642   : > { %2178 = vpow2.f32 %v1305_v29 }
 0x64a   : > { %v2528_v24 = vpop.eup %2176 }
 0x64b   : > { %v1319_v35 = vsel %vm580_vm2, %v2528_v24, 0.0 }
 0x64c   : > { %v2532_v38 = vpop.eup %2178  ;;  %1320 = vadd.xlane.f32.xlu0 %v1319_v35 }
 0x64d   : > { %v1322_v40 = vsel %vm580_vm2, %v2532_v38, 0.0 }
 0x64e   : > { %1323 = vadd.xlane.f32.xlu1 %v1322_v40 }
 0x666   : > { %v1288_v32 = vpop.xlane.xlu1 %1287 }
 0x667   : > { %v1300_v25 = vsub.f32 %v1217_v57, %v1288_v32 }
 0x669   : > { %v1313_v50 = vmul.f32 1.442695, %v1300_v25 }
 0x66f   : > { %v1279_v45 = vpop.xlane.xlu0 %1278 }
 0x670   : > { %v1297_v46 = vsub.f32 %v1163_v0, %v1279_v45 }
 0x672   : > { %v1307_v47 = vmul.f32 1.442695, %v1297_v46 }
 0x673   : > { %v1282_v48 = vpop.xlane.xlu0 %1281 }
 0x674   : > { %2180 = vpow2.f32 %v1307_v47  ;;  %v1298_v49 = vsub.f32 %v1166_v3, %v1282_v48 }
 0x676   : > { %v1309_v51 = vmul.f32 1.442695, %v1298_v49 }
 0x677   : > { %v1285_v33 = vpop.xlane.xlu0 %1284 }
 0x678   : > { %2182 = vpow2.f32 %v1309_v51  ;;  %v1299_v54 = vsub.f32 %v1214_v8, %v1285_v33 }
 0x679   : > { %2184 = vpow2.f32 %v1313_v50  ;;  %v1294_v5 = vpop.xlane.xlu1 %1293 }
 0x67a   : > { %v1311_v55 = vmul.f32 1.442695, %v1299_v54  ;;  %v1302_v8 = vsub.f32 %v2522_v14, %v1294_v5 }
 0x67b   : > { %v1291_v42 = vpop.xlane.xlu0 %1290 }
 0x67c   : > { %2186 = vpow2.f32 %v1311_v55  ;;  %v1301_v56 = vsub.f32 %v1265_v11, %v1291_v42  ;;  %v1317_v9 = vmul.f32 1.442695, %v1302_v8  ;;  %v2127_v55 = vld [vmem:[%s2614_s6] sm:$0xff]  }
 0x67e   : > { %v2181_v59 = vpop.eup %2180  ;;  %v1315_v43 = vmul.f32 1.442695, %v1301_v56 }
 0x67f   : > { %v1325_v61 = vsel %vm580_vm2, %v2181_v59, 0.0 }
 0x680   : > { %2188 = vpow2.f32 %v1315_v43  ;;  %1326 = vadd.xlane.f32.xlu0 %v1325_v61 }
 0x681   : > { %2190 = vpow2.f32 %v1317_v9 }
 0x682   : > { %v2183_v57 = vpop.eup %2182 }
 0x683   : > { %v1328_v62 = vsel %vm580_vm2, %v2183_v57, 0.0  ;;  %v2185_v63 = vpop.eup %2184 }
 0x684   : > { %1329 = vadd.xlane.f32.xlu1 %v1328_v62  ;;  %v1334_v2 = vsel %vm580_vm2, %v2185_v63, 0.0 }
 0x686   : > { %v2187_v0 = vpop.eup %2186 }
 0x687   : > { %v1331_v1 = vsel %vm580_vm2, %v2187_v0, 0.0 }
 0x688   : > { %1332 = vadd.xlane.f32.xlu0 %v1331_v1  ;;  %1335 = vadd.xlane.f32.xlu1 %v1334_v2 }
 0x68a   : > { %v2540_v3 = vpop.eup %2188 }
 0x68b   : > { %v1337_v4 = vsel %vm580_vm2, %v2540_v3, 0.0  ;;  %v2191_v10 = vpop.eup %2190 }
 0x68c   : > { %1338 = vadd.xlane.f32.xlu0 %v1337_v4  ;;  %v1340_v11 = vsel %vm580_vm2, %v2191_v10, 0.0 }
 0x699   : > { %1410 = vrot.lane.b32.xlu1 %v2365_v6, %s2222_s15 }
 0x69d   : > { %1457 = vrot.lane.b32.xlu1 %v2373_v17, %s2222_s15 }
 0x6a2   : > { %1363 = vrot.lane.b32.xlu0 %v2367_v7, %s2222_s15 }
 0x6c1   : > { %1341 = vadd.xlane.f32.xlu1 %v1340_v11 }
 0x6d2   : > { %1504 = vrot.lane.b32.xlu1 %v2371_v16, %s2222_s15 }
 0x6d9   : > { %v1321_v12 = vpop.xlane.xlu0 %1320 }
 0x6db   : > { %v1324_v13 = vpop.xlane.xlu1 %1323 }
 0x6dc   : > { %2192 = vrcp.f32 %v1324_v13 }
 0x6dd   : > { %2194 = vrcp.f32 %v1321_v12 }
 0x6e6   : > { %v2193_v14 = vpop.eup %2192 }
 0x6e7   : > { %v2195_v18 = vpop.eup %2194  ;;  %v1352_v16 = vmul.f32 %v2193_v14, %v2532_v38 }
 0x6e8   : > { %v1351_v23 = vmul.f32 %v2195_v18, %v2528_v24 }
 0x6ea   : > { %v1359_v35 = vpack.c.bf16 %v1352_v16, %v1351_v23 }
 0x70d   : > { %v1327_v15 = vpop.xlane.xlu0 %1326 }
 0x70e   : > { %2196 = vrcp.f32 %v1327_v15 }
 0x711   : > { %v1330_v6 = vpop.xlane.xlu1 %1329 }
 0x712   : > { %2198 = vrcp.f32 %v1330_v6 }
 0x715   : > { %v1333_v7 = vpop.xlane.xlu0 %1332  ;;  %v1336_v17 = vpop.xlane.xlu1 %1335 }
 0x716   : > { %2200 = vrcp.f32 %v1333_v7 }
 0x717   : > { %2202 = vrcp.f32 %v1336_v17 }
 0x718   : > { %v2197_v21 = vpop.eup %2196 }
 0x719   : > { %v1339_v19 = vpop.xlane.xlu0 %1338  ;;  %v1411_v20 = vpop.permute.xlu1 %1410  ;;  %v1353_v26 = vmul.f32 %v2197_v21, %v2181_v59 }
 0x71a   : > { %2064 = vmatpush3.bf16.msra.mxu1 %v1411_v20  ;;  %2204 = vrcp.f32 %v1339_v19 }
 0x71b   : > { %2075 = vmatprep.subr.bf16.mxu1 %v2216_v52 }
 0x71c   : > { %v2199_v22 = vpop.eup %2198 }
 0x71d   : > { %v1354_v27 = vmul.f32 %v2199_v22, %v2183_v57  ;;  %v1364_v29 = vpop.permute.xlu0 %1363  ;;  %v1458_v46 = vpop.permute.xlu1 %1457 }
 0x71e   : > { %2058 = vmatpush3.bf16.msra.mxu0 %v1364_v29 }
 0x71f   : > { %v1360_v40 = vpack.c.bf16 %v1354_v27, %v1353_v26  ;;  %2069 = vmatprep.subr.bf16.mxu0 %v2216_v52 }
 0x720   : > { %v2201_v32 = vpop.eup %2200 }
 0x721   : > { %v2203_v45 = vpop.eup %2202  ;;  %2060 = vmatmul.mubr.msk.bf16.vlgmr.msra.gmra.mrb[20].mxu0 %vm580_vm2, %v1359_v35  ;;  %2066 = vmatmul.mubr.msk.bf16.vlgmr.msra.gmra.mrb[36].mxu1 %vm580_vm2, %v1360_v40  ;;  %v1355_v24 = vmul.f32 %v2201_v32, %v2187_v0 }
 0x722   : > { %2070 = vmatpush3.bf16.msra.mxu0 %v1458_v46  ;;  %2071 = vmatprep.mubr.msk.bf16.mxu0 %vm2217_vm1, %v2216_v52  ;;  %v1356_v38 = vmul.f32 %v2203_v45, %v2185_v63 }
 0x723   : > { %2077 = vmatprep.mubr.msk.bf16.mxu1 %vm2217_vm1, %v2216_v52  ;;  %v2126_v52 = vld [vmem:[%s2614_s6 + $0x8] sm:$0xff]  }
 0x724   : > { %v1361_v25 = vpack.c.bf16 %v1356_v38, %v1355_v24  ;;  %v2205_v49 = vpop.eup %2204  ;;  %2081 = vmatprep.subr.bf16.mxu0 %v2126_v52 }
 0x725   : > { %v1357_v51 = vmul.f32 %v2205_v49, %v2540_v3 }
 0x729   : > { %2072 = vmatmul.mubr.msk.bf16.vlgmr.msra.gmra.mrb[24].mxu0 %vm580_vm2, %v1361_v25 }
 0x72a   : > { %2082 = vmatpush3.bf16.msra.mxu0 %v2126_v52 }
 0x72b   : > { %2091 = vmatprep.subr.bf16.mxu0 %v2127_v55 }
 0x74e   : > { %v1342_v47 = vpop.xlane.xlu1 %1341 }
 0x74f   : > { %2206 = vrcp.f32 %v1342_v47 }
 0x752   : > { %v1505_v48 = vpop.permute.xlu1 %1504 }
 0x753   : > { %2076 = vmatpush3.bf16.msra.mxu1 %v1505_v48 }
 0x759   : > { %v2207_v50 = vpop.eup %2206 }
 0x75a   : > { %v1358_v33 = vmul.f32 %v2207_v50, %v2191_v10 }
 0x75c   : > { %v1362_v54 = vpack.c.bf16 %v1358_v33, %v1357_v51 }
 0x75e   : > { %2078 = vmatmul.mubr.msk.bf16.vlgmr.msra.gmra.mrb[40].mxu1 %vm580_vm2, %v1362_v54 }
 0x7f4   : > { %v1403_v42 = vpop.f32.mrb[20].mxu0  ;;  %v1450_v56 = vpop.f32.mrb[36].mxu1 }
 0x7f5   : > { %v2061_v59 = vpop.f32.mrb[21].mxu0  ;;  %v2067_v43 = vpop.f32.mrb[37].mxu1 }
 0x7f6   : > { %v1406_v61 = vpop.f32.mrb[22].mxu0  ;;  %v1453_v57 = vpop.f32.mrb[38].mxu1 }
 0x7f7   : > { %v1551_v62 = vpack.c.bf16 %v1406_v61, %v1403_v42  ;;  %v1552_v63 = vpack.c.bf16 %v1453_v57, %v1450_v56  ;;  %v2062_v0 = vpop.f32.mrb[23].mxu0  ;;  %v2068_v1 = vpop.f32.mrb[39].mxu1 }
 0x7f9   : > { %2083 = vmatprep.mubr.msk.bf16.mxu0 %vm580_vm2, %v1551_v62 }
 0x7fa   : > { %2084 = vmatmul.mubr.msk.bf16.vlgmr.msra.gmra.mrb[28].mxu0 %vm580_vm2, %v1552_v63 }
 0x7fb   : > { %2092 = vmatpush3.bf16.msra.mxu0 %v2127_v55 }
 0x7fc   : > { %v1497_v2 = vpop.f32.mrb[24].mxu0 }
 0x7fd   : > { %v2073_v3 = vpop.f32.mrb[25].mxu0 }
 0x7fe   : > { %v1500_v4 = vpop.f32.mrb[26].mxu0 }
 0x7ff   : > { %v1553_v5 = vpack.c.bf16 %v1500_v4, %v1497_v2  ;;  %v2074_v8 = vpop.f32.mrb[27].mxu0 }
 0x801   : > { %2087 = vmatprep.mubr.msk.bf16.mxu0 %vm580_vm2, %v1553_v5 }
 0x831   : > { %v1544_v9 = vpop.f32.mrb[40].mxu1 }
 0x832   : > { %v2079_v10 = vpop.f32.mrb[41].mxu1 }
 0x833   : > { %v1547_v11 = vpop.f32.mrb[42].mxu1 }
 0x834   : > { %v1554_v12 = vpack.c.bf16 %v1547_v11, %v1544_v9  ;;  %v2080_v13 = vpop.f32.mrb[43].mxu1 }
 0x836   : > { %2088 = vmatmul.mubr.msk.bf16.gmra.mrb[32].mxu0 %vm580_vm2, %v1554_v12 }
 0x837   : > { %2093 = vmatprep.mubr.msk.bf16.mxu0 %vm580_vm2, %v1058_v31 }
 0x83e   : > { %2094 = vmatmul.mubr.msk.bf16.vlgmr.msra.gmra.mrb[28].mxu0 %vm580_vm2, %v1059_v37 }
 0x83f   : > { %2097 = vmatprep.mubr.msk.bf16.mxu0 %vm580_vm2, %v1060_v44 }
 0x846   : > { %2098 = vmatmul.mubr.msk.bf16.gmra.mrb[32].mxu0 %vm580_vm2, %v1061_v53 }
 0x911   : > { %v2095_v30 = vpop.f32.mrb[28].mxu0 }
 0x912   : > { %v1732_v31 = vadd.f32 %v2095_v30, %v1885_v28  ;;  %v1692_v15 = vpop.f32.mrb[29].mxu0 }
 0x913   : > { %v1730_v34 = vadd.f32 %v1885_v28, %v1692_v15  ;;  %v2096_v36 = vpop.f32.mrb[30].mxu0 }
 0x914   : > { %v1733_v37 = vadd.f32 %v2096_v36, %v1885_v28  ;;  %v1695_v39 = vpop.f32.mrb[31].mxu0  ;;  %v1900_v58 = vpack.c.bf16 %v1732_v31, %v1732_v31 }
 0x915   : > { %v1898_v41 = vpack.c.bf16 %v1730_v34, %v1730_v34  ;;  %v1731_v44 = vadd.f32 %v1885_v28, %v1695_v39 }
 0x916   : > { %1773 = vst.msk [vmem:[%s312_s24 + $0x8] sm:$0xf] %vm1770_vm3, %v1900_v58  ;;  %v1901_v53 = vpack.c.bf16 %v1733_v37, %v1733_v37 }
 0x917   : > { %1771 = vst.msk [vmem:[%s312_s24] sm:$0xf] %vm1770_vm3, %v1898_v41  ;;  %v1899_v60 = vpack.c.bf16 %v1731_v44, %v1731_v44 }
 0x918   : > { %1774 = vst.msk [vmem:[%s312_s24 + $0xc] sm:$0xf] %vm1770_vm3, %v1901_v53 }
 0x919   : > { %1772 = vst.msk [vmem:[%s312_s24 + $0x4] sm:$0xf] %vm1770_vm3, %v1899_v60  ;;  %v2099_v6 = vpop.f32.mrb[32].mxu0 }
 0x91a   : > { %v1736_v7 = vadd.f32 %v2099_v6, %v1885_v28  ;;  %v1708_v17 = vpop.f32.mrb[33].mxu0 }
 0x91b   : > { %v1734_v14 = vadd.f32 %v1885_v28, %v1708_v17  ;;  %v2100_v18 = vpop.f32.mrb[34].mxu0 }
 0x91c   : > { %v1737_v19 = vadd.f32 %v2100_v18, %v1885_v28  ;;  %v1711_v20 = vpop.f32.mrb[35].mxu0  ;;  %v1904_v22 = vpack.c.bf16 %v1736_v7, %v1736_v7 }
 0x91d   : > { %v1902_v21 = vpack.c.bf16 %v1734_v14, %v1734_v14  ;;  %v1735_v16 = vadd.f32 %v1885_v28, %v1711_v20 }
 0x91e   : > { %1777 = vst.msk [vmem:[%s312_s24 + $0x18] sm:$0xf] %vm1770_vm3, %v1904_v22  ;;  %v1905_v26 = vpack.c.bf16 %v1737_v19, %v1737_v19 }
 0x91f   : > { %1775 = vst.msk [vmem:[%s312_s24 + $0x10] sm:$0xf] %vm1770_vm3, %v1902_v21  ;;  %v1903_v23 = vpack.c.bf16 %v1735_v16, %v1735_v16 }
 0x920   : > { %1778 = vst.msk [vmem:[%s312_s24 + $0x1c] sm:$0xf] %vm1770_vm3, %v1905_v26 }
 0x921   : > { %1776 = vst.msk [vmem:[%s312_s24 + $0x14] sm:$0xf] %vm1770_vm3, %v1903_v23 }
 0x922 PF: > { %s18_s27 = sadd.s32 1, %s2214_s27  }
 0x923   : > { %p15_p4 = scmp.ge.s32.totalorder %s18_s27, 4  }
 0x925   :  { %17 = sbr.rel (!%p15_p4) target bundleno = 1 (0x1), region = 83 }

// kernel: _lambda_.6
= control target key start
LH: loop header
LB: loop body
LE: loop exit
PB: predicated region body
PF: predicated region fallthrough
CT: control target
= control target key end

     0   :  { %s2332_s30 = smov 0   ;;  %s2724_s0 = inlined_call_operand.vmem [shape: bf16[8,16,32], index: 0, kind: input, shape index: {}]   ;;  %s2725_s1 = inlined_call_operand.vmem [shape: f32[2,16,16], index: 1, kind: input, shape index: {}]   ;;  %s2726_s2 = inlined_call_operand.vmem [shape: f32[4,16,16], index: 2, kind: input, shape index: {}]   ;;  %s2727_s3 = inlined_call_operand.vmem [shape: f32[1,32], index: 3, kind: input, shape index: {}]   ;;  %s2728_s4 = inlined_call_operand.vmem [shape: f32[1,32], index: 4, kind: input, shape index: {}]   ;;  %s2729_s5 = inlined_call_operand.vmem [shape: bf16[32,96], index: 5, kind: input, shape index: {}]   ;;  %s2730_s6 = inlined_call_operand.vmem [shape: f32[1,96], index: 6, kind: input, shape index: {}]   ;;  %s2731_s7 = inlined_call_operand.vmem [shape: bf16[32,32], index: 7, kind: input, shape index: {}]   ;;  %s2732_s8 = inlined_call_operand.vmem [shape: f32[1,32], index: 8, kind: input, shape index: {}]   ;;  %s2733_s9 = inlined_call_operand.vmem [shape: bf16[8,16,32], index: 9, kind: output, shape index: {}]  }
   0x1 LB: > { %s1896_s10 = sadd.s32 4294967295, %s2273_s30   ;;  %p1900_p0 = scmp.ge.s32.totalorder %s2273_s30, 1  ;;  %s2273_s30 = sphi %s2332_s30, %s19_s30  }
   0x2   : > { %p289_p1 = scmp.lt.s32.totalorder %s2273_s30, 3 }
   0x4   : > { %p290_p2 = pnand %p1900_p0, %p289_p1 }
   0x5   : > { %s1901_s11 = sshll.u32 (!%p290_p2), %s1896_s10, 2  ;;  %vm360_vm0 = vcmask (!%p290_p2), 261120   ;;  %v2183_v60 = vld [vmem:[%s2729_s5] sm:$0xff] (!%p290_p2)   ;;  %v2184_v61 = vld [vmem:[%s2729_s5 + $0x8] sm:$0xff] (!%p290_p2)   ;;  %vm2276_vm1 = vmmov (!%p290_p2), 0   ;;  %s2277_s26 = smov (!%p290_p2), 96  }
   0x6   : > { %293 = sbr.rel (%p290_p2) target bundleno = 2342 (0x926), region = 56  ;;  %p328_p3 = scmp.lt.s32.totalorder (!%p290_p2), %s1901_s11, 7  ;;  %2032 = vmatprep.subr.bf16.mxu1 (!%p290_p2), %v2183_v60  ;;  %vm607_vm2 = vcmask (!%p290_p2), 130048   ;;  %vm1829_vm3 = vcmask (!%p290_p2), 257024  }
   0x7   : > { %2033 = vmatpush3.bf16.msra.mxu1 (!%p290_p2), %v2183_v60  ;;  %s2278_s27 = smov (!%p290_p2), 64   ;;  %s2279_s10 = smov (!%p290_p2), 80  }
   0x8   : > { %2034 = vmatprep.subr.bf16.mxu1 (!%p290_p2), %v2184_v61  ;;  %s2280_s13 = smov (!%p290_p2), 112   ;;  %s2281_s18 = smov (!%p290_p2), 48  }
   0xb   : > { %2035 = vmatpush3.bf16.msra.mxu1 (!%p290_p2), %v2184_v61 }
   0xd   : > { %s2735_s11 = smov (!%p328_p3, %s1901_s11), 7 }
   0xe   : > { %s1955_s12 = sshll.u32 %s2735_s11, 3 }
   0xf   : > { %s332_s15 = scalar_lea.vmem %s2724_s0, %s1955_s12 }
  0x10   : > { %v1966_v0 = vld [vmem:[%s332_s15] sm:$0xff]   ;;  %v1981_v1 = vld [vmem:[%s332_s15 + $0x8] sm:$0xff]   ;;  %v1982_v6 = vld [vmem:[%s332_s15 + $0x10] sm:$0xff]  }
  0x11   : > { %v1967_v2 = vunpack.c.l.bf16 %v1966_v0  ;;  %v1971_v3 = vunpack.c.l.bf16 %v1981_v1  ;;  %v1968_v4 = vunpack.c.h.bf16 %v1966_v0  ;;  %v1972_v5 = vunpack.c.h.bf16 %v1981_v1  ;;  %v1983_v13 = vld [vmem:[%s332_s15 + $0x18] sm:$0xff]  }
  0x12   : > { %v1975_v11 = vunpack.c.l.bf16 %v1982_v6  ;;  %v1976_v12 = vunpack.c.h.bf16 %v1982_v6  ;;  %v1979_v16 = vunpack.c.l.bf16 %v1983_v13  ;;  %v1980_v17 = vunpack.c.h.bf16 %v1983_v13 }
  0x13   : > { %v361_v7 = vsel %vm360_vm0, %v1967_v2, 0.0  ;;  %v367_v8 = vsel %vm360_vm0, %v1971_v3, 0.0  ;;  %v364_v9 = vsel %vm360_vm0, %v1968_v4, 0.0  ;;  %v370_v10 = vsel %vm360_vm0, %v1972_v5, 0.0 }
  0x14   : > { %362 = vadd.xlane.f32.xlu0 %v361_v7  ;;  %368 = vadd.xlane.f32.xlu1 %v367_v8  ;;  %v373_v14 = vsel %vm360_vm0, %v1975_v11, 0.0  ;;  %v376_v15 = vsel %vm360_vm0, %v1976_v12, 0.0  ;;  %v379_v18 = vsel %vm360_vm0, %v1979_v16, 0.0  ;;  %v382_v19 = vsel %vm360_vm0, %v1980_v17, 0.0 }
  0x18   : > { %365 = vadd.xlane.f32.xlu0 %v364_v9  ;;  %371 = vadd.xlane.f32.xlu1 %v370_v10 }
  0x1c   : > { %374 = vadd.xlane.f32.xlu0 %v373_v14  ;;  %377 = vadd.xlane.f32.xlu1 %v376_v15 }
  0x20   : > { %380 = vadd.xlane.f32.xlu0 %v379_v18  ;;  %383 = vadd.xlane.f32.xlu1 %v382_v19 }
  0xa1   : > { %v363_v20 = vpop.xlane.xlu0 %362  ;;  %v369_v21 = vpop.xlane.xlu1 %368 }
  0xa2   : > { %v386_v22 = vmul.f32 0.03125, %v363_v20  ;;  %v388_v23 = vmul.f32 0.03125, %v369_v21 }
  0xa4   : > { %v2356_v24 = vsub.f32 %v1967_v2, %v386_v22  ;;  %v2358_v25 = vsub.f32 %v1971_v3, %v388_v23  ;;  %v1907_v23 = vld [vmem:[%s2727_s3] ss:$0 sm:$0xff] }
  0xa5   : > { %v366_v26 = vpop.xlane.xlu0 %365  ;;  %v372_v27 = vpop.xlane.xlu1 %371 }
  0xa6   : > { %v387_v28 = vmul.f32 0.03125, %v366_v26  ;;  %v389_v29 = vmul.f32 0.03125, %v372_v27  ;;  %v402_v30 = vmul.f32 %v2356_v24, %v2356_v24  ;;  %v404_v31 = vmul.f32 %v2358_v25, %v2358_v25 }
  0xa8   : > { %v2364_v32 = vsub.f32 %v1968_v4, %v387_v28  ;;  %v2366_v33 = vsub.f32 %v1972_v5, %v389_v29  ;;  %v410_v34 = vsel %vm360_vm0, %v402_v30, 0.0  ;;  %v416_v37 = vsel %vm360_vm0, %v404_v31, 0.0 }
  0xa9   : > { %411 = vadd.xlane.f32.xlu0 %v410_v34  ;;  %v375_v35 = vpop.xlane.xlu0 %374  ;;  %v378_v36 = vpop.xlane.xlu1 %377 }
  0xaa   : > { %v390_v38 = vmul.f32 0.03125, %v375_v35  ;;  %v391_v39 = vmul.f32 0.03125, %v378_v36  ;;  %v403_v40 = vmul.f32 %v2364_v32, %v2364_v32  ;;  %v405_v41 = vmul.f32 %v2366_v33, %v2366_v33 }
  0xac   : > { %v2374_v42 = vsub.f32 %v1975_v11, %v390_v38  ;;  %v2376_v43 = vsub.f32 %v1976_v12, %v391_v39  ;;  %v413_v44 = vsel %vm360_vm0, %v403_v40, 0.0  ;;  %v419_v47 = vsel %vm360_vm0, %v405_v41, 0.0 }
  0xad   : > { %417 = vadd.xlane.f32.xlu0 %v416_v37  ;;  %414 = vadd.xlane.f32.xlu1 %v413_v44  ;;  %v381_v45 = vpop.xlane.xlu0 %380  ;;  %v384_v46 = vpop.xlane.xlu1 %383 }
  0xae   : > { %v392_v48 = vmul.f32 0.03125, %v381_v45  ;;  %v393_v49 = vmul.f32 0.03125, %v384_v46  ;;  %v406_v50 = vmul.f32 %v2374_v42, %v2374_v42  ;;  %v407_v51 = vmul.f32 %v2376_v43, %v2376_v43 }
  0xb0   : > { %v2384_v52 = vsub.f32 %v1979_v16, %v392_v48  ;;  %v2386_v53 = vsub.f32 %v1980_v17, %v393_v49  ;;  %v422_v54 = vsel %vm360_vm0, %v406_v50, 0.0  ;;  %v425_v55 = vsel %vm360_vm0, %v407_v51, 0.0 }
  0xb1   : > { %420 = vadd.xlane.f32.xlu1 %v419_v47  ;;  %423 = vadd.xlane.f32.xlu0 %v422_v54 }
  0xb2   : > { %v408_v56 = vmul.f32 %v2384_v52, %v2384_v52  ;;  %v409_v57 = vmul.f32 %v2386_v53, %v2386_v53 }
  0xb4   : > { %v428_v58 = vsel %vm360_vm0, %v408_v56, 0.0  ;;  %v431_v59 = vsel %vm360_vm0, %v409_v57, 0.0 }
  0xb5   : > { %426 = vadd.xlane.f32.xlu1 %v425_v55  ;;  %429 = vadd.xlane.f32.xlu0 %v428_v58 }
  0xb9   : > { %432 = vadd.xlane.f32.xlu1 %v431_v59 }
 0x136   : > { %v412_v62 = vpop.xlane.xlu0 %411 }
 0x137   : > { %v434_v63 = vmul.f32 0.03125, %v412_v62  ;;  %v1909_v62 = vld [vmem:[%s2730_s6] ss:$0 sm:$0xff] }
 0x139   : > { %v442_v0 = vadd.f32 1e-05, %v434_v63 }
 0x13a   : > { %v415_v1 = vpop.xlane.xlu1 %414  ;;  %v418_v2 = vpop.xlane.xlu0 %417 }
 0x13b   : > { %2187 = vrsqrt.f32 %v442_v0  ;;  %v435_v3 = vmul.f32 0.03125, %v415_v1  ;;  %v436_v4 = vmul.f32 0.03125, %v418_v2 }
 0x13d   : > { %v443_v5 = vadd.f32 1e-05, %v435_v3  ;;  %v444_v6 = vadd.f32 1e-05, %v436_v4 }
 0x13e   : > { %v421_v7 = vpop.xlane.xlu1 %420  ;;  %v424_v8 = vpop.xlane.xlu0 %423 }
 0x13f   : > { %2189 = vrsqrt.f32 %v443_v5  ;;  %v437_v9 = vmul.f32 0.03125, %v421_v7  ;;  %v438_v10 = vmul.f32 0.03125, %v424_v8 }
 0x140   : > { %2191 = vrsqrt.f32 %v444_v6 }
 0x141   : > { %v445_v11 = vadd.f32 1e-05, %v437_v9  ;;  %v446_v12 = vadd.f32 1e-05, %v438_v10 }
 0x142   : > { %v427_v13 = vpop.xlane.xlu1 %426  ;;  %v430_v14 = vpop.xlane.xlu0 %429 }
 0x143   : > { %2193 = vrsqrt.f32 %v445_v11  ;;  %v439_v15 = vmul.f32 0.03125, %v427_v13  ;;  %v440_v16 = vmul.f32 0.03125, %v430_v14 }
 0x144   : > { %2195 = vrsqrt.f32 %v446_v12 }
 0x145   : > { %v2188_v17 = vpop.eup %2187  ;;  %v447_v18 = vadd.f32 1e-05, %v439_v15  ;;  %v448_v19 = vadd.f32 1e-05, %v440_v16 }
 0x146   : > { %v433_v20 = vpop.xlane.xlu1 %432  ;;  %v458_v21 = vmul.f32 %v2188_v17, %v2356_v24  ;;  %v1908_v24 = vld [vmem:[%s2728_s4] ss:$0 sm:$0xff] }
 0x147   : > { %2197 = vrsqrt.f32 %v447_v18  ;;  %v441_v22 = vmul.f32 0.03125, %v433_v20 }
 0x148   : > { %2199 = vrsqrt.f32 %v448_v19  ;;  %v472_v30 = vmul.f32 %v1907_v23, %v458_v21 }
 0x149   : > { %v2190_v26 = vpop.eup %2189  ;;  %v449_v27 = vadd.f32 1e-05, %v441_v22 }
 0x14a   : > { %v2192_v28 = vpop.eup %2191  ;;  %v459_v29 = vmul.f32 %v2190_v26, %v2364_v32  ;;  %v486_v38 = vadd.f32 %v1908_v24, %v472_v30  ;;  %v603_v30 = vld [vmem:[%s2725_s1 + $0x8] sm:$0xff] }
 0x14b   : > { %v460_v31 = vmul.f32 %v2192_v28, %v2358_v25  ;;  %2201 = vrsqrt.f32 %v449_v27  ;;  %v602_v28 = vld [vmem:[%s2725_s1] sm:$0xff] }
 0x14c   : > { %v473_v34 = vmul.f32 %v1907_v23, %v459_v29 }
 0x14d   : > { %v2194_v35 = vpop.eup %2193  ;;  %v474_v40 = vmul.f32 %v1907_v23, %v460_v31  ;;  %v2474_v31 = vld [vmem:[%s2726_s2] sm:$0xff] }
 0x14e   : > { %v2196_v36 = vpop.eup %2195  ;;  %v461_v37 = vmul.f32 %v2194_v35, %v2366_v33  ;;  %v487_v39 = vadd.f32 %v1908_v24, %v473_v34 }
 0x14f   : > { %v462_v41 = vmul.f32 %v2196_v36, %v2374_v42  ;;  %v488_v47 = vadd.f32 %v1908_v24, %v474_v40  ;;  %v2479_v36 = vld [vmem:[%s2726_s2 + $0x8] sm:$0xff] }
 0x150   : > { %v494_v44 = vpack.c.bf16 %v487_v39, %v486_v38  ;;  %v475_v32 = vmul.f32 %v1907_v23, %v461_v37 }
 0x151   : > { %v2198_v45 = vpop.eup %2197  ;;  %v476_v49 = vmul.f32 %v1907_v23, %v462_v41 }
 0x152   : > { %v2200_v46 = vpop.eup %2199  ;;  %v463_v25 = vmul.f32 %v2198_v45, %v2376_v43  ;;  %2036 = vmatprep.mubr.msk.bf16.mxu1 %vm360_vm0, %v494_v44  ;;  %v489_v48 = vadd.f32 %v1908_v24, %v475_v32 }
 0x153   : > { %v464_v50 = vmul.f32 %v2200_v46, %v2384_v52  ;;  %v490_v42 = vadd.f32 %v1908_v24, %v476_v49  ;;  %v2275_v52 = vmov 0.0   ;;  %v2488_v46 = vld [vmem:[%s2726_s2 + $0x10] sm:$0xff] }
 0x154   : > { %v495_v51 = vpack.c.bf16 %v489_v48, %v488_v47  ;;  %v477_v33 = vmul.f32 %v1907_v23, %v463_v25  ;;  %2044 = vmatprep.subr.bf16.mxu1 %v2275_v52  ;;  %2056 = vmatprep.subr.bf16.mxu0 %v2275_v52 }
 0x155   : > { %v2202_v54 = vpop.eup %2201  ;;  %v478_v57 = vmul.f32 %v1907_v23, %v464_v50  ;;  %2058 = vmatprep.mubr.msk.bf16.mxu0 %vm2276_vm1, %v2275_v52 }
 0x156   : > { %v465_v55 = vmul.f32 %v2202_v54, %v2386_v53  ;;  %2037 = vmatmul.mubr.msk.bf16.vlgmr.msra.gmra.mrb[0].mxu1 %vm360_vm0, %v495_v51  ;;  %v491_v56 = vadd.f32 %v1908_v24, %v477_v33  ;;  %v2493_v51 = vld [vmem:[%s2726_s2 + $0x28] sm:$0xff]  ;;  %v2498_v33 = vld [vmem:[%s2726_s2 + $0x18] sm:$0xff] }
 0x157   : > { %v492_v43 = vadd.f32 %v1908_v24, %v478_v57 }
 0x158   : > { %v496_v58 = vpack.c.bf16 %v491_v56, %v490_v42  ;;  %v479_v59 = vmul.f32 %v1907_v23, %v465_v55 }
 0x15a   : > { %2040 = vmatprep.mubr.msk.bf16.mxu1 %vm360_vm0, %v496_v58  ;;  %v493_v60 = vadd.f32 %v1908_v24, %v479_v59 }
 0x15c   : > { %v497_v61 = vpack.c.bf16 %v493_v60, %v492_v43 }
 0x15e   : > { %2041 = vmatmul.mubr.msk.bf16.gmra.mrb[4].mxu1 %vm360_vm0, %v497_v61  ;;  %v2507_v61 = vld [vmem:[%s2726_s2 + $0x20] sm:$0xff] }
 0x15f   : > { %2046 = vmatprep.mubr.msk.bf16.mxu1 %vm2276_vm1, %v2275_v52 }
 0x229   : > { %v2038_v53 = vpop.f32.mrb[0].mxu1 }
 0x22a   : > { %v567_v63 = vpop.f32.mrb[1].mxu1  ;;  %v576_v1 = vadd.f32 %v2038_v53, %v1909_v62 }
 0x22b   : > { %v2039_v0 = vpop.f32.mrb[2].mxu1  ;;  %v568_v4 = vadd.f32 %v1909_v62, %v567_v63 }
 0x22c   : > { %v579_v2 = vadd.f32 %v2039_v0, %v1909_v62  ;;  %v570_v3 = vpop.f32.mrb[3].mxu1 }
 0x22d   : > { %v571_v5 = vadd.f32 %v1909_v62, %v570_v3 }
 0x22e   : > { %v2429_v6 = vpack.c.bf16 %v579_v2, %v576_v1 }
 0x22f   : > { %v2431_v7 = vpack.c.bf16 %v571_v5, %v568_v4  ;;  %v2515_v4 = vld [vmem:[%s2726_s2 + $0x30] sm:$0xff] }
 0x230   : > { %656 = vrot.lane.b32.xlu1 %v2429_v6, %s2277_s26 }
 0x231   : > { %605 = vrot.lane.b32.xlu0 %v2431_v7, %s2277_s26  ;;  %v2042_v8 = vpop.f32.mrb[4].mxu1 }
 0x232   : > { %v583_v9 = vpop.f32.mrb[5].mxu1  ;;  %v592_v11 = vadd.f32 %v2042_v8, %v1909_v62 }
 0x233   : > { %v2043_v10 = vpop.f32.mrb[6].mxu1  ;;  %v584_v14 = vadd.f32 %v1909_v62, %v583_v9 }
 0x234   : > { %v595_v12 = vadd.f32 %v2043_v10, %v1909_v62  ;;  %v586_v13 = vpop.f32.mrb[7].mxu1 }
 0x235   : > { %v587_v15 = vadd.f32 %v1909_v62, %v586_v13 }
 0x236   : > { %v2435_v16 = vpack.c.bf16 %v595_v12, %v592_v11  ;;  %v2526_v12 = vld [vmem:[%s2726_s2 + $0x38] sm:$0xff] }
 0x237   : > { %v2437_v17 = vpack.c.bf16 %v587_v15, %v584_v14 }
 0x239   : > { %706 = vrot.lane.b32.xlu1 %v2437_v17, %s2277_s26 }
 0x23d   : > { %756 = vrot.lane.b32.xlu1 %v2435_v16, %s2277_s26 }
 0x2a2   : > { %v657_v20 = vpop.permute.xlu1 %656 }
 0x2a3   : > { %v606_v18 = vpop.permute.xlu0 %605  ;;  %v662_v22 = vsel %vm607_vm2, %v657_v20, 0 }
 0x2a4   : > { %v612_v19 = vsel %vm607_vm2, %v606_v18, 0 }
 0x2a5   : > { %2045 = vmatpush3.bf16.xpose.msra.mxu1 %v612_v19 }
 0x2a6   : > { %2050 = vmatprep.subr.bf16.mxu1 %v2275_v52 }
 0x2ab   : > { %v707_v21 = vpop.permute.xlu1 %706 }
 0x2ac   : > { %2047 = vmatmul.mubr.msk.bf16.vlgmr.msra.gmra.mrb[8].mxu1 %vm607_vm2, %v2431_v7  ;;  %v712_v23 = vsel %vm607_vm2, %v707_v21, 0 }
 0x2ad   : > { %2051 = vmatpush3.bf16.xpose.msra.mxu1 %v662_v22  ;;  %2057 = vmatpush3.bf16.xpose.msra.mxu0 %v712_v23 }
 0x2ae   : > { %2052 = vmatprep.mubr.msk.bf16.mxu1 %vm2276_vm1, %v2275_v52  ;;  %2062 = vmatprep.subr.bf16.mxu1 %v2275_v52 }
 0x2af   : > { %2068 = vmatprep.subr.bf16.mxu0 %v2275_v52  ;;  %v757_v26 = vpop.permute.xlu1 %756 }
 0x2b0   : > { %v762_v27 = vsel %vm607_vm2, %v757_v26, 0 }
 0x2b4   : > { %2053 = vmatmul.mubr.msk.bf16.vlgmr.msra.gmra.mrb[12].mxu1 %vm607_vm2, %v2429_v6  ;;  %2059 = vmatmul.mubr.msk.bf16.vlgmr.msra.gmra.mrb[0].mxu0 %vm607_vm2, %v2437_v17 }
 0x2b5   : > { %2063 = vmatpush3.bf16.xpose.msra.mxu1 %v762_v27  ;;  %2064 = vmatprep.mubr.msk.bf16.mxu1 %vm2276_vm1, %v2275_v52 }
 0x2b6   : > { %2074 = vmatprep.subr.bf16.mxu1 %v2275_v52  ;;  %2070 = vmatprep.mubr.msk.bf16.mxu0 %vm2276_vm1, %v2275_v52 }
 0x2bc   : > { %2065 = vmatmul.mubr.msk.bf16.vlgmr.msra.gmra.mrb[16].mxu1 %vm607_vm2, %v2435_v16 }
 0x2bd   : > { %2076 = vmatprep.mubr.msk.bf16.mxu1 %vm2276_vm1, %v2275_v52 }
 0x37f   : > { %v648_v29 = vpop.f32.mrb[8].mxu1 }
 0x380   : > { %v649_v24 = vadd.f32 %v648_v29, %v602_v28  ;;  %v2048_v34 = vpop.f32.mrb[9].mxu1 }
 0x381   : > { %v651_v35 = vpop.f32.mrb[10].mxu1 }
 0x382   : > { %v652_v37 = vadd.f32 %v651_v35, %v603_v30  ;;  %v2049_v38 = vpop.f32.mrb[11].mxu1  ;;  %v813_v39 = vadd.f32 %v2474_v31, %v649_v24 }
 0x384   : > { %v821_v40 = vsel %vm607_vm2, %v813_v39, -inf  ;;  %v814_v41 = vadd.f32 %v2479_v36, %v652_v37 }
 0x385   : > { %822 = vmax.xlane.f32.xlu0 %v821_v40 }
 0x386   : > { %v824_v44 = vsel %vm607_vm2, %v814_v41, -inf }
 0x387   : > { %v748_v32 = vpop.f32.mrb[0].mxu0  ;;  %825 = vmax.xlane.f32.xlu1 %v824_v44  ;;  %v698_v45 = vpop.f32.mrb[12].mxu1 }
 0x388   : > { %v699_v25 = vadd.f32 %v698_v45, %v602_v28  ;;  %v2054_v47 = vpop.f32.mrb[13].mxu1  ;;  %v2060_v48 = vpop.f32.mrb[1].mxu0  ;;  %v749_v58 = vadd.f32 %v748_v32, %v602_v28 }
 0x389   : > { %v701_v49 = vpop.f32.mrb[14].mxu1  ;;  %v751_v50 = vpop.f32.mrb[2].mxu0 }
 0x38a   : > { %v702_v54 = vadd.f32 %v701_v49, %v603_v30  ;;  %v752_v55 = vadd.f32 %v751_v50, %v603_v30  ;;  %v2055_v42 = vpop.f32.mrb[15].mxu1  ;;  %v2061_v56 = vpop.f32.mrb[3].mxu0  ;;  %v815_v57 = vadd.f32 %v2488_v46, %v699_v25  ;;  %v817_v2 = vadd.f32 %v2507_v61, %v749_v58 }
 0x38c   : > { %v827_v59 = vsel %vm607_vm2, %v815_v57, -inf  ;;  %v818_v43 = vadd.f32 %v2493_v51, %v752_v55  ;;  %v816_v60 = vadd.f32 %v2498_v33, %v702_v54  ;;  %v833_v9 = vsel %vm607_vm2, %v817_v2, -inf }
 0x38d   : > { %828 = vmax.xlane.f32.xlu0 %v827_v59 }
 0x38e   : > { %v836_v53 = vsel %vm607_vm2, %v818_v43, -inf  ;;  %v830_v1 = vsel %vm607_vm2, %v816_v60, -inf }
 0x38f   : > { %837 = vmax.xlane.f32.xlu1 %v836_v53  ;;  %v798_v62 = vpop.f32.mrb[16].mxu1 }
 0x390   : > { %v799_v63 = vadd.f32 %v798_v62, %v602_v28  ;;  %v2066_v0 = vpop.f32.mrb[17].mxu1 }
 0x391   : > { %831 = vmax.xlane.f32.xlu0 %v830_v1  ;;  %v801_v3 = vpop.f32.mrb[18].mxu1 }
 0x392   : > { %v802_v5 = vadd.f32 %v801_v3, %v603_v30  ;;  %v2067_v8 = vpop.f32.mrb[19].mxu1  ;;  %v819_v10 = vadd.f32 %v2515_v4, %v799_v63 }
 0x394   : > { %v839_v11 = vsel %vm607_vm2, %v819_v10, -inf  ;;  %v2529_v13 = vadd.f32 %v2526_v12, %v802_v5 }
 0x395   : > { %834 = vmax.xlane.f32.xlu0 %v833_v9 }
 0x396   : > { %v842_v14 = vsel %vm607_vm2, %v2529_v13, -inf }
 0x399   : > { %840 = vmax.xlane.f32.xlu0 %v839_v11 }
 0x3a0   : > { %960 = vrot.lane.b32.xlu1 %v2429_v6, %s2278_s27 }
 0x3a4   : > { %1007 = vrot.lane.b32.xlu1 %v2437_v17, %s2278_s27 }
 0x3af   : > { %913 = vrot.lane.b32.xlu0 %v2431_v7, %s2278_s27 }
 0x3c8   : > { %843 = vmax.xlane.f32.xlu1 %v842_v14 }
 0x3d9   : > { %1054 = vrot.lane.b32.xlu1 %v2435_v16, %s2278_s27  ;;  %s339_s27 = scalar_lea.vmem %s2733_s9, %s1955_s12 }
 0x412   : > { %v823_v15 = vpop.xlane.xlu0 %822 }
 0x413   : > { %v845_v18 = vsub.f32 %v813_v39, %v823_v15 }
 0x414   : > { %v826_v19 = vpop.xlane.xlu1 %825 }
 0x415   : > { %v853_v20 = vmul.f32 1.442695, %v845_v18  ;;  %v846_v21 = vsub.f32 %v814_v41, %v826_v19 }
 0x417   : > { %2203 = vpow2.f32 %v853_v20  ;;  %v855_v22 = vmul.f32 1.442695, %v846_v21 }
 0x419   : > { %2205 = vpow2.f32 %v855_v22 }
 0x41a   : > { %v829_v23 = vpop.xlane.xlu0 %828 }
 0x41b   : > { %v847_v26 = vsub.f32 %v815_v57, %v829_v23 }
 0x41c   : > { %v838_v27 = vpop.xlane.xlu1 %837 }
 0x41d   : > { %v857_v28 = vmul.f32 1.442695, %v847_v26  ;;  %v850_v29 = vsub.f32 %v818_v43, %v838_v27 }
 0x41e   : > { %v832_v30 = vpop.xlane.xlu0 %831 }
 0x41f   : > { %2207 = vpow2.f32 %v857_v28  ;;  %v848_v24 = vsub.f32 %v816_v60, %v832_v30  ;;  %v863_v37 = vmul.f32 1.442695, %v850_v29 }
 0x420   : > { %v961_v34 = vpop.permute.xlu1 %960 }
 0x421   : > { %v2534_v35 = vpop.eup %2203  ;;  %v859_v38 = vmul.f32 1.442695, %v848_v24  ;;  %2075 = vmatpush3.bf16.msra.mxu1 %v961_v34 }
 0x422   : > { %v835_v39 = vpop.xlane.xlu0 %834  ;;  %v869_v40 = vsel %vm607_vm2, %v2534_v35, 0.0  ;;  %2086 = vmatprep.subr.bf16.mxu1 %v2275_v52 }
 0x423   : > { %v2206_v41 = vpop.eup %2205  ;;  %2209 = vpow2.f32 %v859_v38  ;;  %v849_v44 = vsub.f32 %v817_v2, %v835_v39  ;;  %870 = vadd.xlane.f32.xlu0 %v869_v40 }
 0x424   : > { %v872_v32 = vsel %vm607_vm2, %v2206_v41, 0.0  ;;  %2211 = vpow2.f32 %v863_v37  ;;  %v1008_v53 = vpop.permute.xlu1 %1007 }
 0x425   : > { %v861_v45 = vmul.f32 1.442695, %v849_v44  ;;  %873 = vadd.xlane.f32.xlu1 %v872_v32 }
 0x426   : > { %v841_v25 = vpop.xlane.xlu0 %840 }
 0x427   : > { %2213 = vpow2.f32 %v861_v45  ;;  %v851_v47 = vsub.f32 %v819_v10, %v841_v25 }
 0x429   : > { %v2208_v48 = vpop.eup %2207  ;;  %v865_v49 = vmul.f32 1.442695, %v851_v47 }
 0x42a   : > { %v914_v50 = vpop.permute.xlu0 %913  ;;  %v875_v54 = vsel %vm607_vm2, %v2208_v48, 0.0 }
 0x42b   : > { %2215 = vpow2.f32 %v865_v49  ;;  %876 = vadd.xlane.f32.xlu0 %v875_v54  ;;  %2069 = vmatpush3.bf16.msra.mxu0 %v914_v50 }
 0x42c   : > { %2080 = vmatprep.subr.bf16.mxu0 %v2275_v52 }
 0x42d   : > { %v2210_v55 = vpop.eup %2209 }
 0x42e   : > { %v878_v42 = vsel %vm607_vm2, %v2210_v55, 0.0  ;;  %v2212_v56 = vpop.eup %2211 }
 0x42f   : > { %879 = vadd.xlane.f32.xlu1 %v878_v42  ;;  %v884_v59 = vsel %vm607_vm2, %v2212_v56, 0.0 }
 0x431   : > { %v2214_v57 = vpop.eup %2213 }
 0x432   : > { %v881_v58 = vsel %vm607_vm2, %v2214_v57, 0.0 }
 0x433   : > { %882 = vadd.xlane.f32.xlu0 %v881_v58  ;;  %885 = vadd.xlane.f32.xlu1 %v884_v59 }
 0x435   : > { %v2545_v43 = vpop.eup %2215 }
 0x436   : > { %v887_v60 = vsel %vm607_vm2, %v2545_v43, 0.0 }
 0x437   : > { %888 = vadd.xlane.f32.xlu0 %v887_v60 }
 0x444   : > { %1163 = vrot.lane.b32.xlu1 %v2429_v6, %s2279_s10 }
 0x44d   : > { %1112 = vrot.lane.b32.xlu0 %v2431_v7, %s2279_s10 }
 0x451   : > { %1110 = vrot.lane.b32.xlu0 %v2431_v7, %s2280_s13 }
 0x455   : > { %1161 = vrot.lane.b32.xlu0 %v2429_v6, %s2280_s13  ;;  %v844_v62 = vpop.xlane.xlu1 %843 }
 0x456   : > { %v852_v63 = vsub.f32 %v2529_v13, %v844_v62 }
 0x458   : > { %v867_v0 = vmul.f32 1.442695, %v852_v63 }
 0x459   : > { %1212 = vrot.lane.b32.xlu0 %v2437_v17, %s2280_s13  ;;  %v1055_v3 = vpop.permute.xlu1 %1054 }
 0x45a   : > { %2217 = vpow2.f32 %v867_v0 }
 0x464   : > { %v2555_v1 = vpop.eup %2217 }
 0x465   : > { %v890_v2 = vsel %vm607_vm2, %v2555_v1, 0.0 }
 0x468   : > { %891 = vadd.xlane.f32.xlu1 %v890_v2 }
 0x479   : > { %1214 = vrot.lane.b32.xlu1 %v2437_v17, %s2279_s10 }
 0x47d   : > { %1265 = vrot.lane.b32.xlu1 %v2435_v16, %s2279_s10 }
 0x481   : > { %1263 = vrot.lane.b32.xlu1 %v2435_v16, %s2280_s13 }
 0x4b0   : > { %v871_v5 = vpop.xlane.xlu0 %870 }
 0x4b1   : > { %2219 = vrcp.f32 %v871_v5 }
 0x4b2   : > { %v874_v8 = vpop.xlane.xlu1 %873 }
 0x4b3   : > { %2221 = vrcp.f32 %v874_v8 }
 0x4b8   : > { %v877_v9 = vpop.xlane.xlu0 %876 }
 0x4b9   : > { %2223 = vrcp.f32 %v877_v9 }
 0x4bb   : > { %v2220_v10 = vpop.eup %2219 }
 0x4bc   : > { %v880_v11 = vpop.xlane.xlu1 %879  ;;  %v901_v14 = vmul.f32 %v2220_v10, %v2534_v35 }
 0x4bd   : > { %v2222_v13 = vpop.eup %2221  ;;  %2225 = vrcp.f32 %v880_v11  ;;  %v1924_v11 = vld [vmem:[%s2725_s1 + $0x10] sm:$0xff] }
 0x4be   : > { %v902_v15 = vmul.f32 %v2222_v13, %v2206_v41 }
 0x4c0   : > { %v883_v18 = vpop.xlane.xlu0 %882  ;;  %v886_v19 = vpop.xlane.xlu1 %885  ;;  %v909_v20 = vpack.c.bf16 %v902_v15, %v901_v14  ;;  %v1925_v14 = vld [vmem:[%s2725_s1 + $0x18] sm:$0xff] }
 0x4c1   : > { %2227 = vrcp.f32 %v883_v18 }
 0x4c2   : > { %2229 = vrcp.f32 %v886_v19  ;;  %2071 = vmatmul.mubr.msk.bf16.vlgmr.msra.gmra.mrb[4].mxu0 %vm607_vm2, %v909_v20 }
 0x4c3   : > { %2081 = vmatpush3.bf16.msra.mxu0 %v1008_v53  ;;  %2082 = vmatprep.mubr.msk.bf16.mxu0 %vm2276_vm1, %v2275_v52  ;;  %v2224_v21 = vpop.eup %2223 }
 0x4c4   : > { %2092 = vmatprep.subr.bf16.mxu0 %v2275_v52  ;;  %v903_v23 = vmul.f32 %v2224_v21, %v2208_v48  ;;  %v889_v27 = vpop.xlane.xlu0 %888  ;;  %v1164_v40 = vpop.permute.xlu1 %1163 }
 0x4c5   : > { %2231 = vrcp.f32 %v889_v27 }
 0x4c7   : > { %v2226_v22 = vpop.eup %2225 }
 0x4c8   : > { %v904_v26 = vmul.f32 %v2226_v22, %v2210_v55  ;;  %v1113_v35 = vpop.permute.xlu0 %1112  ;;  %v1169_v55 = vsel %vm607_vm2, %v1164_v40, 0 }
 0x4c9   : > { %v1118_v38 = vsel %vm607_vm2, %v1113_v35, 0 }
 0x4ca   : > { %v910_v28 = vpack.c.bf16 %v904_v26, %v903_v23 }
 0x4cb   : > { %v2228_v29 = vpop.eup %2227 }
 0x4cc   : > { %v2230_v30 = vpop.eup %2229  ;;  %v905_v24 = vmul.f32 %v2228_v29, %v2214_v57  ;;  %2077 = vmatmul.mubr.msk.bf16.vlgmr.msra.gmra.mrb[20].mxu1 %vm607_vm2, %v910_v28  ;;  %v1111_v39 = vpop.permute.xlu0 %1110 }
 0x4cd   : > { %v906_v34 = vmul.f32 %v2230_v30, %v2212_v56  ;;  %2087 = vmatpush3.bf16.msra.mxu1 %v1055_v3  ;;  %2088 = vmatprep.mubr.msk.bf16.mxu1 %vm2276_vm1, %v2275_v52 }
 0x4ce   : > { %2098 = vmatprep.subr.bf16.mxu1 %v2275_v52 }
 0x4cf   : > { %v911_v37 = vpack.c.bf16 %v906_v34, %v905_v24  ;;  %v2232_v25 = vpop.eup %2231 }
 0x4d0   : > { %v1162_v45 = vpop.permute.xlu0 %1161  ;;  %v907_v48 = vmul.f32 %v2232_v25, %v2545_v43 }
 0x4d1   : > { %2083 = vmatmul.mubr.msk.bf16.vlgmr.msra.gmra.mrb[8].mxu0 %vm607_vm2, %v911_v37 }
 0x4d2   : > { %2093 = vmatpush3.bf16.xpose.msra.mxu0 %v1118_v38  ;;  %2094 = vmatprep.mubr.msk.bf16.mxu0 %vm2276_vm1, %v2275_v52 }
 0x4d3   : > { %2104 = vmatprep.subr.bf16.mxu0 %v2275_v52 }
 0x4d4   : > { %v1213_v49 = vpop.permute.xlu0 %1212 }
 0x4d9   : > { %2095 = vmatmul.mubr.msk.bf16.vlgmr.msra.gmra.mrb[12].mxu0 %vm607_vm2, %v1111_v39 }
 0x4da   : > { %2106 = vmatprep.mubr.msk.bf16.mxu0 %vm2276_vm1, %v2275_v52 }
 0x4f5   : > { %v892_v41 = vpop.xlane.xlu1 %891 }
 0x4f6   : > { %2233 = vrcp.f32 %v892_v41 }
 0x4f9   : > { %v1215_v44 = vpop.permute.xlu1 %1214 }
 0x4fa   : > { %v1220_v32 = vsel %vm607_vm2, %v1215_v44, 0 }
 0x4fb   : > { %2105 = vmatpush3.bf16.xpose.msra.mxu0 %v1220_v32 }
 0x4fc   : > { %2116 = vmatprep.subr.bf16.mxu0 %v2275_v52 }
 0x4fd   : > { %v1266_v42 = vpop.permute.xlu1 %1265 }
 0x4fe   : > { %v1271_v56 = vsel %vm607_vm2, %v1266_v42, 0 }
 0x500   : > { %v2234_v47 = vpop.eup %2233 }
 0x501   : > { %v908_v50 = vmul.f32 %v2234_v47, %v2555_v1  ;;  %v1264_v57 = vpop.permute.xlu1 %1263 }
 0x502   : > { %2107 = vmatmul.mubr.msk.bf16.vlgmr.msra.gmra.mrb[16].mxu0 %vm607_vm2, %v1213_v49 }
 0x503   : > { %v912_v54 = vpack.c.bf16 %v908_v50, %v907_v48  ;;  %2118 = vmatprep.mubr.msk.bf16.mxu0 %vm2276_vm1, %v2275_v52 }
 0x505   : > { %2089 = vmatmul.mubr.msk.bf16.vlgmr.msra.gmra.mrb[24].mxu1 %vm607_vm2, %v912_v54 }
 0x506   : > { %2099 = vmatpush3.bf16.xpose.msra.mxu1 %v1169_v55  ;;  %2100 = vmatprep.mubr.msk.bf16.mxu1 %vm2276_vm1, %v2275_v52 }
 0x507   : > { %2110 = vmatprep.subr.bf16.mxu1 %v2275_v52 }
 0x50d   : > { %2101 = vmatmul.mubr.msk.bf16.vlgmr.msra.gmra.mrb[28].mxu1 %vm607_vm2, %v1162_v45 }
 0x50e   : > { %2111 = vmatpush3.bf16.xpose.msra.mxu1 %v1271_v56  ;;  %2112 = vmatprep.mubr.msk.bf16.mxu1 %vm2276_vm1, %v2275_v52 }
 0x50f   : > { %2122 = vmatprep.subr.bf16.mxu1 %v2275_v52 }
 0x515   : > { %2113 = vmatmul.mubr.msk.bf16.vlgmr.msra.gmra.mrb[32].mxu1 %vm607_vm2, %v1264_v57 }
 0x516   : > { %2124 = vmatprep.mubr.msk.bf16.mxu1 %vm2276_vm1, %v2275_v52 }
 0x595   : > { %v2599_v58 = vpop.f32.mrb[4].mxu0 }
 0x596   : > { %v2072_v59 = vpop.f32.mrb[5].mxu0 }
 0x597   : > { %v2601_v43 = vpop.f32.mrb[6].mxu0 }
 0x598   : > { %v1101_v60 = vpack.c.bf16 %v2601_v43, %v2599_v58  ;;  %v2073_v53 = vpop.f32.mrb[7].mxu0  ;;  %v1944_v58 = vld [vmem:[%s2732_s8] ss:$0 sm:$0xff] }
 0x59f   : > { %v2605_v62 = vpop.f32.mrb[20].mxu1 }
 0x5a0   : > { %v2078_v63 = vpop.f32.mrb[21].mxu1 }
 0x5a1   : > { %v2607_v0 = vpop.f32.mrb[22].mxu1 }
 0x5a2   : > { %v1102_v1 = vpack.c.bf16 %v2607_v0, %v2605_v62  ;;  %v2079_v2 = vpop.f32.mrb[23].mxu1 }
 0x5a4   : > { %v2611_v3 = vpop.f32.mrb[8].mxu0 }
 0x5a5   : > { %v2084_v5 = vpop.f32.mrb[9].mxu0 }
 0x5a6   : > { %v2613_v8 = vpop.f32.mrb[10].mxu0 }
 0x5a7   : > { %v1103_v9 = vpack.c.bf16 %v2613_v8, %v2611_v3  ;;  %v2085_v10 = vpop.f32.mrb[11].mxu0 }
 0x5ac   : > { %v1154_v13 = vpop.f32.mrb[12].mxu0 }
 0x5ad   : > { %v1155_v15 = vadd.f32 %v1924_v11, %v1154_v13  ;;  %v2096_v18 = vpop.f32.mrb[13].mxu0 }
 0x5ae   : > { %v1157_v19 = vpop.f32.mrb[14].mxu0 }
 0x5af   : > { %v1158_v20 = vadd.f32 %v1925_v14, %v1157_v19  ;;  %v2097_v21 = vpop.f32.mrb[15].mxu0  ;;  %v1322_v22 = vadd.f32 %v1155_v15, %v2474_v31 }
 0x5b1   : > { %v1330_v23 = vsel %vm607_vm2, %v1322_v22, -inf  ;;  %v1323_v26 = vadd.f32 %v1158_v20, %v2479_v36 }
 0x5b2   : > { %1331 = vmax.xlane.f32.xlu0 %v1330_v23 }
 0x5b3   : > { %v1333_v27 = vsel %vm607_vm2, %v1323_v26, -inf }
 0x5b4   : > { %1334 = vmax.xlane.f32.xlu1 %v1333_v27 }
 0x5d5   : > { %v1256_v28 = vpop.f32.mrb[16].mxu0 }
 0x5d6   : > { %v2108_v29 = vpop.f32.mrb[17].mxu0  ;;  %v1257_v49 = vadd.f32 %v1924_v11, %v1256_v28 }
 0x5d7   : > { %v1259_v30 = vpop.f32.mrb[18].mxu0 }
 0x5d8   : > { %v1260_v24 = vadd.f32 %v1925_v14, %v1259_v30  ;;  %v2627_v34 = vpop.f32.mrb[24].mxu1  ;;  %v2109_v35 = vpop.f32.mrb[19].mxu0  ;;  %v1326_v57 = vadd.f32 %v1257_v49, %v2507_v61 }
 0x5d9   : > { %v2090_v37 = vpop.f32.mrb[25].mxu1 }
 0x5da   : > { %v2629_v38 = vpop.f32.mrb[26].mxu1  ;;  %v1327_v31 = vadd.f32 %v1260_v24, %v2493_v51  ;;  %v1342_v2 = vsel %vm607_vm2, %v1326_v57, -inf }
 0x5db   : > { %v1104_v39 = vpack.c.bf16 %v2629_v38, %v2627_v34  ;;  %v2091_v36 = vpop.f32.mrb[27].mxu1 }
 0x5dc   : > { %v1345_v40 = vsel %vm607_vm2, %v1327_v31, -inf }
 0x5dd   : > { %1346 = vmax.xlane.f32.xlu1 %v1345_v40 }
 0x5e0   : > { %v1205_v41 = vpop.f32.mrb[28].mxu1 }
 0x5e1   : > { %v1206_v44 = vadd.f32 %v1924_v11, %v1205_v41  ;;  %v2102_v32 = vpop.f32.mrb[29].mxu1 }
 0x5e2   : > { %v1208_v45 = vpop.f32.mrb[30].mxu1 }
 0x5e3   : > { %v1209_v25 = vadd.f32 %v1925_v14, %v1208_v45  ;;  %v2103_v47 = vpop.f32.mrb[31].mxu1  ;;  %v1324_v48 = vadd.f32 %v1206_v44, %v2488_v46 }
 0x5e5   : > { %v1336_v50 = vsel %vm607_vm2, %v1324_v48, -inf  ;;  %v1325_v51 = vadd.f32 %v1209_v25, %v2498_v33 }
 0x5e6   : > { %1337 = vmax.xlane.f32.xlu0 %v1336_v50 }
 0x5e7   : > { %v1339_v56 = vsel %vm607_vm2, %v1325_v51, -inf }
 0x5e8   : > { %v1307_v54 = vpop.f32.mrb[32].mxu1 }
 0x5e9   : > { %v1308_v55 = vadd.f32 %v1924_v11, %v1307_v54  ;;  %v2114_v42 = vpop.f32.mrb[33].mxu1 }
 0x5ea   : > { %1340 = vmax.xlane.f32.xlu0 %v1339_v56  ;;  %v1310_v59 = vpop.f32.mrb[34].mxu1 }
 0x5eb   : > { %v1311_v53 = vadd.f32 %v1925_v14, %v1310_v59  ;;  %v2115_v63 = vpop.f32.mrb[35].mxu1  ;;  %v1328_v5 = vadd.f32 %v1308_v55, %v2515_v4 }
 0x5ed   : > { %v1329_v46 = vadd.f32 %v1311_v53, %v2526_v12  ;;  %v1348_v10 = vsel %vm607_vm2, %v1328_v5, -inf }
 0x5ee   : > { %1343 = vmax.xlane.f32.xlu0 %v1342_v2 }
 0x5ef   : > { %v1351_v33 = vsel %vm607_vm2, %v1329_v46, -inf }
 0x5f0   : > { %1352 = vmax.xlane.f32.xlu1 %v1351_v33 }
 0x5f2   : > { %1349 = vmax.xlane.f32.xlu0 %v1348_v10 }
 0x63f   : > { %v1332_v11 = vpop.xlane.xlu0 %1331 }
 0x640   : > { %v1354_v13 = vsub.f32 %v1322_v22, %v1332_v11 }
 0x641   : > { %v1335_v61 = vpop.xlane.xlu1 %1334 }
 0x642   : > { %v1362_v15 = vmul.f32 1.442695, %v1354_v13  ;;  %v1355_v18 = vsub.f32 %v1323_v26, %v1335_v61 }
 0x644   : > { %2235 = vpow2.f32 %v1362_v15  ;;  %v1364_v14 = vmul.f32 1.442695, %v1355_v18 }
 0x646   : > { %2237 = vpow2.f32 %v1364_v14 }
 0x64e   : > { %v2645_v19 = vpop.eup %2235 }
 0x64f   : > { %v1378_v4 = vsel %vm607_vm2, %v2645_v19, 0.0 }
 0x650   : > { %v2649_v12 = vpop.eup %2237  ;;  %1379 = vadd.xlane.f32.xlu0 %v1378_v4 }
 0x651   : > { %v1381_v20 = vsel %vm607_vm2, %v2649_v12, 0.0 }
 0x652   : > { %1382 = vadd.xlane.f32.xlu1 %v1381_v20 }
 0x66a   : > { %v1347_v21 = vpop.xlane.xlu1 %1346 }
 0x66b   : > { %v1359_v27 = vsub.f32 %v1327_v31, %v1347_v21 }
 0x66d   : > { %v1372_v30 = vmul.f32 1.442695, %v1359_v27 }
 0x673   : > { %v1338_v22 = vpop.xlane.xlu0 %1337 }
 0x674   : > { %v1356_v23 = vsub.f32 %v1324_v48, %v1338_v22 }
 0x676   : > { %v1366_v26 = vmul.f32 1.442695, %v1356_v23 }
 0x677   : > { %v1341_v28 = vpop.xlane.xlu0 %1340 }
 0x678   : > { %2239 = vpow2.f32 %v1366_v26  ;;  %v1357_v29 = vsub.f32 %v1325_v51, %v1341_v28 }
 0x67a   : > { %v1368_v24 = vmul.f32 1.442695, %v1357_v29 }
 0x67b   : > { %v1344_v35 = vpop.xlane.xlu0 %1343 }
 0x67c   : > { %2241 = vpow2.f32 %v1368_v24  ;;  %v1358_v37 = vsub.f32 %v1326_v57, %v1344_v35 }
 0x67d   : > { %2243 = vpow2.f32 %v1372_v30  ;;  %v1353_v55 = vpop.xlane.xlu1 %1352 }
 0x67e   : > { %v1370_v36 = vmul.f32 1.442695, %v1358_v37  ;;  %v1361_v42 = vsub.f32 %v1329_v46, %v1353_v55 }
 0x67f   : > { %v1350_v40 = vpop.xlane.xlu0 %1349 }
 0x680   : > { %2245 = vpow2.f32 %v1370_v36  ;;  %v1360_v41 = vsub.f32 %v1328_v5, %v1350_v40  ;;  %v1376_v56 = vmul.f32 1.442695, %v1361_v42  ;;  %v2186_v36 = vld [vmem:[%s2731_s7] sm:$0xff]  }
 0x682   : > { %v2240_v44 = vpop.eup %2239  ;;  %v1374_v32 = vmul.f32 1.442695, %v1360_v41 }
 0x683   : > { %v1384_v45 = vsel %vm607_vm2, %v2240_v44, 0.0 }
 0x684   : > { %2247 = vpow2.f32 %v1374_v32  ;;  %1385 = vadd.xlane.f32.xlu0 %v1384_v45 }
 0x685   : > { %2249 = vpow2.f32 %v1376_v56 }
 0x686   : > { %v2242_v31 = vpop.eup %2241 }
 0x687   : > { %v1387_v25 = vsel %vm607_vm2, %v2242_v31, 0.0  ;;  %v2244_v47 = vpop.eup %2243 }
 0x688   : > { %1388 = vadd.xlane.f32.xlu1 %v1387_v25  ;;  %v1393_v50 = vsel %vm607_vm2, %v2244_v47, 0.0 }
 0x68a   : > { %v2246_v48 = vpop.eup %2245 }
 0x68b   : > { %v1390_v49 = vsel %vm607_vm2, %v2246_v48, 0.0 }
 0x68c   : > { %1391 = vadd.xlane.f32.xlu0 %v1390_v49  ;;  %1394 = vadd.xlane.f32.xlu1 %v1393_v50 }
 0x68e   : > { %v2657_v51 = vpop.eup %2247 }
 0x68f   : > { %v1396_v54 = vsel %vm607_vm2, %v2657_v51, 0.0  ;;  %v2250_v57 = vpop.eup %2249 }
 0x690   : > { %1397 = vadd.xlane.f32.xlu0 %v1396_v54  ;;  %v1399_v59 = vsel %vm607_vm2, %v2250_v57, 0.0 }
 0x69d   : > { %1469 = vrot.lane.b32.xlu1 %v2429_v6, %s2281_s18 }
 0x6a1   : > { %1516 = vrot.lane.b32.xlu1 %v2437_v17, %s2281_s18 }
 0x6a6   : > { %1422 = vrot.lane.b32.xlu0 %v2431_v7, %s2281_s18 }
 0x6c5   : > { %1400 = vadd.xlane.f32.xlu1 %v1399_v59 }
 0x6d6   : > { %1563 = vrot.lane.b32.xlu1 %v2435_v16, %s2281_s18 }
 0x6dd   : > { %v1380_v53 = vpop.xlane.xlu0 %1379 }
 0x6df   : > { %v1383_v63 = vpop.xlane.xlu1 %1382 }
 0x6e0   : > { %2251 = vrcp.f32 %v1383_v63 }
 0x6e1   : > { %2253 = vrcp.f32 %v1380_v53 }
 0x6ea   : > { %v2252_v46 = vpop.eup %2251 }
 0x6eb   : > { %v2254_v5 = vpop.eup %2253  ;;  %v1411_v16 = vmul.f32 %v2252_v46, %v2649_v12 }
 0x6ec   : > { %v1410_v61 = vmul.f32 %v2254_v5, %v2645_v19 }
 0x6ee   : > { %v1418_v4 = vpack.c.bf16 %v1411_v16, %v1410_v61 }
 0x711   : > { %v1386_v2 = vpop.xlane.xlu0 %1385 }
 0x712   : > { %2255 = vrcp.f32 %v1386_v2 }
 0x715   : > { %v1389_v6 = vpop.xlane.xlu1 %1388 }
 0x716   : > { %2257 = vrcp.f32 %v1389_v6 }
 0x719   : > { %v1392_v17 = vpop.xlane.xlu0 %1391  ;;  %v1395_v7 = vpop.xlane.xlu1 %1394 }
 0x71a   : > { %2259 = vrcp.f32 %v1392_v17 }
 0x71b   : > { %2261 = vrcp.f32 %v1395_v7 }
 0x71c   : > { %v2256_v11 = vpop.eup %2255 }
 0x71d   : > { %v1398_v33 = vpop.xlane.xlu0 %1397  ;;  %v1470_v10 = vpop.permute.xlu1 %1469  ;;  %v1412_v15 = vmul.f32 %v2256_v11, %v2240_v44 }
 0x71e   : > { %2123 = vmatpush3.bf16.msra.mxu1 %v1470_v10  ;;  %2263 = vrcp.f32 %v1398_v33 }
 0x71f   : > { %2134 = vmatprep.subr.bf16.mxu1 %v2275_v52 }
 0x720   : > { %v2258_v13 = vpop.eup %2257 }
 0x721   : > { %v1413_v18 = vmul.f32 %v2258_v13, %v2242_v31  ;;  %v1423_v14 = vpop.permute.xlu0 %1422  ;;  %v1517_v23 = vpop.permute.xlu1 %1516 }
 0x722   : > { %2117 = vmatpush3.bf16.msra.mxu0 %v1423_v14 }
 0x723   : > { %v1419_v20 = vpack.c.bf16 %v1413_v18, %v1412_v15  ;;  %2128 = vmatprep.subr.bf16.mxu0 %v2275_v52 }
 0x724   : > { %v2260_v21 = vpop.eup %2259 }
 0x725   : > { %v2262_v22 = vpop.eup %2261  ;;  %2119 = vmatmul.mubr.msk.bf16.vlgmr.msra.gmra.mrb[20].mxu0 %vm607_vm2, %v1418_v4  ;;  %2125 = vmatmul.mubr.msk.bf16.vlgmr.msra.gmra.mrb[36].mxu1 %vm607_vm2, %v1419_v20  ;;  %v1414_v19 = vmul.f32 %v2260_v21, %v2246_v48 }
 0x726   : > { %2129 = vmatpush3.bf16.msra.mxu0 %v1517_v23  ;;  %2130 = vmatprep.mubr.msk.bf16.mxu0 %vm2276_vm1, %v2275_v52  ;;  %v1415_v12 = vmul.f32 %v2262_v22, %v2244_v47 }
 0x727   : > { %2136 = vmatprep.mubr.msk.bf16.mxu1 %vm2276_vm1, %v2275_v52  ;;  %v2185_v52 = vld [vmem:[%s2731_s7 + $0x8] sm:$0xff]  }
 0x728   : > { %v1420_v27 = vpack.c.bf16 %v1415_v12, %v1414_v19  ;;  %v2264_v29 = vpop.eup %2263  ;;  %2140 = vmatprep.subr.bf16.mxu0 %v2185_v52 }
 0x729   : > { %v1416_v24 = vmul.f32 %v2264_v29, %v2657_v51 }
 0x72d   : > { %2131 = vmatmul.mubr.msk.bf16.vlgmr.msra.gmra.mrb[24].mxu0 %vm607_vm2, %v1420_v27 }
 0x72e   : > { %2141 = vmatpush3.bf16.msra.mxu0 %v2185_v52 }
 0x72f   : > { %2150 = vmatprep.subr.bf16.mxu0 %v2186_v36 }
 0x752   : > { %v1401_v26 = vpop.xlane.xlu1 %1400 }
 0x753   : > { %2265 = vrcp.f32 %v1401_v26 }
 0x756   : > { %v1564_v28 = vpop.permute.xlu1 %1563 }
 0x757   : > { %2135 = vmatpush3.bf16.msra.mxu1 %v1564_v28 }
 0x75d   : > { %v2266_v30 = vpop.eup %2265 }
 0x75e   : > { %v1417_v35 = vmul.f32 %v2266_v30, %v2250_v57 }
 0x760   : > { %v1421_v37 = vpack.c.bf16 %v1417_v35, %v1416_v24 }
 0x762   : > { %2137 = vmatmul.mubr.msk.bf16.vlgmr.msra.gmra.mrb[40].mxu1 %vm607_vm2, %v1421_v37 }
 0x7f8   : > { %v1462_v40 = vpop.f32.mrb[20].mxu0  ;;  %v1509_v41 = vpop.f32.mrb[36].mxu1 }
 0x7f9   : > { %v2120_v44 = vpop.f32.mrb[21].mxu0  ;;  %v2126_v32 = vpop.f32.mrb[37].mxu1 }
 0x7fa   : > { %v1465_v45 = vpop.f32.mrb[22].mxu0  ;;  %v1512_v31 = vpop.f32.mrb[38].mxu1 }
 0x7fb   : > { %v1610_v25 = vpack.c.bf16 %v1465_v45, %v1462_v40  ;;  %v1611_v47 = vpack.c.bf16 %v1512_v31, %v1509_v41  ;;  %v2121_v48 = vpop.f32.mrb[23].mxu0  ;;  %v2127_v49 = vpop.f32.mrb[39].mxu1 }
 0x7fd   : > { %2142 = vmatprep.mubr.msk.bf16.mxu0 %vm607_vm2, %v1610_v25 }
 0x7fe   : > { %2143 = vmatmul.mubr.msk.bf16.vlgmr.msra.gmra.mrb[28].mxu0 %vm607_vm2, %v1611_v47 }
 0x7ff   : > { %2151 = vmatpush3.bf16.msra.mxu0 %v2186_v36 }
 0x800   : > { %v1556_v50 = vpop.f32.mrb[24].mxu0 }
 0x801   : > { %v2132_v51 = vpop.f32.mrb[25].mxu0 }
 0x802   : > { %v1559_v54 = vpop.f32.mrb[26].mxu0 }
 0x803   : > { %v1612_v55 = vpack.c.bf16 %v1559_v54, %v1556_v50  ;;  %v2133_v42 = vpop.f32.mrb[27].mxu0 }
 0x805   : > { %2146 = vmatprep.mubr.msk.bf16.mxu0 %vm607_vm2, %v1612_v55 }
 0x835   : > { %v1603_v56 = vpop.f32.mrb[40].mxu1 }
 0x836   : > { %v2138_v57 = vpop.f32.mrb[41].mxu1 }
 0x837   : > { %v1606_v59 = vpop.f32.mrb[42].mxu1 }
 0x838   : > { %v1613_v53 = vpack.c.bf16 %v1606_v59, %v1603_v56  ;;  %v2139_v63 = vpop.f32.mrb[43].mxu1 }
 0x83a   : > { %2147 = vmatmul.mubr.msk.bf16.gmra.mrb[32].mxu0 %vm607_vm2, %v1613_v53 }
 0x83b   : > { %2152 = vmatprep.mubr.msk.bf16.mxu0 %vm607_vm2, %v1101_v60 }
 0x842   : > { %2153 = vmatmul.mubr.msk.bf16.vlgmr.msra.gmra.mrb[28].mxu0 %vm607_vm2, %v1102_v1 }
 0x843   : > { %2156 = vmatprep.mubr.msk.bf16.mxu0 %vm607_vm2, %v1103_v9 }
 0x84a   : > { %2157 = vmatmul.mubr.msk.bf16.gmra.mrb[32].mxu0 %vm607_vm2, %v1104_v39 }
 0x915   : > { %v2154_v43 = vpop.f32.mrb[28].mxu0 }
 0x916   : > { %v1791_v60 = vadd.f32 %v2154_v43, %v1944_v58  ;;  %v1751_v2 = vpop.f32.mrb[29].mxu0 }
 0x917   : > { %v1789_v62 = vadd.f32 %v1944_v58, %v1751_v2  ;;  %v2155_v0 = vpop.f32.mrb[30].mxu0 }
 0x918   : > { %v1792_v1 = vadd.f32 %v2155_v0, %v1944_v58  ;;  %v1754_v3 = vpop.f32.mrb[31].mxu0  ;;  %v1959_v34 = vpack.c.bf16 %v1791_v60, %v1791_v60 }
 0x919   : > { %v1957_v8 = vpack.c.bf16 %v1789_v62, %v1789_v62  ;;  %v1790_v9 = vadd.f32 %v1944_v58, %v1754_v3 }
 0x91a   : > { %1832 = vst.msk [vmem:[%s339_s27 + $0x8] sm:$0xf] %vm1829_vm3, %v1959_v34  ;;  %v1960_v39 = vpack.c.bf16 %v1792_v1, %v1792_v1 }
 0x91b   : > { %1830 = vst.msk [vmem:[%s339_s27] sm:$0xf] %vm1829_vm3, %v1957_v8  ;;  %v1958_v38 = vpack.c.bf16 %v1790_v9, %v1790_v9 }
 0x91c   : > { %1833 = vst.msk [vmem:[%s339_s27 + $0xc] sm:$0xf] %vm1829_vm3, %v1960_v39 }
 0x91d   : > { %1831 = vst.msk [vmem:[%s339_s27 + $0x4] sm:$0xf] %vm1829_vm3, %v1958_v38  ;;  %v2158_v6 = vpop.f32.mrb[32].mxu0 }
 0x91e   : > { %v1795_v17 = vadd.f32 %v2158_v6, %v1944_v58  ;;  %v1767_v7 = vpop.f32.mrb[33].mxu0 }
 0x91f   : > { %v1793_v46 = vadd.f32 %v1944_v58, %v1767_v7  ;;  %v2159_v5 = vpop.f32.mrb[34].mxu0 }
 0x920   : > { %v1796_v33 = vadd.f32 %v2159_v5, %v1944_v58  ;;  %v1770_v10 = vpop.f32.mrb[35].mxu0  ;;  %v1963_v13 = vpack.c.bf16 %v1795_v17, %v1795_v17 }
 0x921   : > { %v1961_v11 = vpack.c.bf16 %v1793_v46, %v1793_v46  ;;  %v1794_v16 = vadd.f32 %v1944_v58, %v1770_v10 }
 0x922   : > { %1836 = vst.msk [vmem:[%s339_s27 + $0x18] sm:$0xf] %vm1829_vm3, %v1963_v13  ;;  %v1964_v15 = vpack.c.bf16 %v1796_v33, %v1796_v33 }
 0x923   : > { %1834 = vst.msk [vmem:[%s339_s27 + $0x10] sm:$0xf] %vm1829_vm3, %v1961_v11  ;;  %v1962_v61 = vpack.c.bf16 %v1794_v16, %v1794_v16 }
 0x924   : > { %1837 = vst.msk [vmem:[%s339_s27 + $0x1c] sm:$0xf] %vm1829_vm3, %v1964_v15 }
 0x925   : > { %1835 = vst.msk [vmem:[%s339_s27 + $0x14] sm:$0xf] %vm1829_vm3, %v1962_v61 }
 0x926 PF: > { %s19_s30 = sadd.s32 1, %s2273_s30  }
 0x927   : > { %p16_p4 = scmp.ge.s32.totalorder %s19_s30, 4  }
 0x929   :  { %18 = sbr.rel (!%p16_p4) target bundleno = 1 (0x1), region = 87 }

</bundles_post_ra>
